<compile_context>
chip_gen: v6e
topology: v6e:2x2x1
jax: 0.10.0
libtpu: 0.0.40
codegen_flags: <defaults>
</compile_context>

<pallas_src>
import math
import numpy as np
import jax
import jax.numpy as jnp
from jax.experimental import pallas as pl
from jax.experimental.pallas import tpu as pltpu

# ----- small, self-consistent configuration -----
B = 2
IN_NC = 72          # module default 288
OUT_NC = 36         # module default 144
DEFORM_GROUPS = 2   # chosen so OUT_NC == 2 * G * 3 * 3 (module default 16 is inconsistent)
G = DEFORM_GROUPS
K = 3
PAD = 1
H, W = 8, 8         # feat_l spatial
HS, WS = 4, 4       # feat_s spatial (bilinearly upsampled to H, W)
HW = H * W
HWS = HS * WS
BHW = B * HW        # 128  -> full 128-lane vreg width (lane-dense tiles & stores)
BHWS = B * HWS      # 32
KK = K * K
CG = OUT_NC // G                        # 18 input channels per deform group
CG_PAD = 24                             # CG rounded up to a multiple of 8
SLOT = G * CG_PAD                       # 48 rows written per tap (both groups, padded)
DCN_ROWS = KK * SLOT                    # 432 rows in the sampled-stack scratch
BN_SCALE = 1.0 / math.sqrt(1.0 + 1e-5)  # eval-mode BN, default params (folded into weights)
BIG = 1.0e4                             # pushes cross-batch rows outside the tent support

assert OUT_NC == 2 * G * KK, "offset channels must match deform conv"
assert BHW == 128, "batch*HW chosen to exactly fill the 128-lane vreg width"
assert CG_PAD % 8 == 0 and CG_PAD >= CG


# ----------------------------------------------------------------------------
# Pallas kernel: single grid step, batch folded into lanes, everything fused.
# ----------------------------------------------------------------------------
def feature_align_kernel(x_l_ref, x_s_blk_ref, u_blk2_ref, m_pool_ref,
                         ih_b_ref, iw_ref, base_ref,
                         w_atten_ref, w_conv_ref, w_off_a_ref, w_off_b_ref,
                         w_dcn_ref, out_ref, dcn_ref):
    f32 = jnp.float32
    bf16 = jnp.bfloat16

    x_l = x_l_ref[...]                                                    # (IN_NC, BHW)

    # ---- FeatureSelectionModule: per-batch GAP + re-broadcast is one matmul
    #      against a host constant; eval-BN scale pre-folded into w_atten. ----
    gap_full = jnp.dot(x_l, m_pool_ref[...], preferred_element_type=f32)  # (IN_NC, BHW)
    att_full = jax.nn.sigmoid(
        jnp.dot(w_atten_ref[...], gap_full, preferred_element_type=f32))  # (IN_NC, BHW)
    y = x_l + x_l * att_full                                              # x + x*atten
    feat_arm = jnp.dot(w_conv_ref[...], y, preferred_element_type=f32)    # (OUT_NC, BHW)

    # ---- bilinear upsample of feat_s: one matmul against a per-(group,batch)
    #      block-diagonal interpolation matrix.  Result arrives group-padded
    #      (CG_PAD rows per group, pad rows exactly 0) AND group-block-diagonal
    #      over the lanes -> it is directly the K=256 LHS of the tap matmuls. ----
    feat_blk_f = jnp.dot(x_s_blk_ref[...], u_blk2_ref[...],
                         preferred_element_type=f32)                      # (SLOT, G*BHW)
    feat_up_pad = feat_blk_f[:, :BHW] + feat_blk_f[:, BHW:]               # (SLOT, BHW)
    feat_blk = feat_blk_f.astype(bf16)                                    # hot-loop LHS

    # ---- offset 1x1 conv (kept in f32: offset errors are amplified by the
    #      local feature gradient; BN scale and the feat_up*2 factor are folded
    #      into w_off_a / w_off_b, whose rows are host-permuted to (k,{y,x},g)). ----
    offs = (jnp.dot(w_off_a_ref[...], feat_arm, preferred_element_type=f32)
            + jnp.dot(w_off_b_ref[...], feat_up_pad, preferred_element_type=f32))
    # absolute sample coordinates for all 18 (group, tap) pairs in one add
    pos = offs + base_ref[...]                                            # (2*G*KK, BHW)

    ih_b = ih_b_ref[...]        # (B*H, BHW) masked input-row grid (BIG off-batch)
    iw = iw_ref[...]            # (W, BHW)   input-col grid

    # ---- deformable conv v1 sampling: per tap, build the (2*BHW, BHW)
    #      separable tent sampling matrix for BOTH deform groups at once and
    #      run one K=256 bf16 MXU matmul; store the full aligned 48-row slot
    #      (no masked stores, no scratch init, nothing carried across taps). ----
    # TODO(synk): on v7x, accumulate the 9 tap matmuls in the MRB / a VMEM f32
    # accumulator instead of the sampled-stack + deep matmul, and split the tap
    # loop across the two TensorCores; at this size one TC and the MRF-friendly
    # stack form are kept so the same kernel is also best on v5e/v6e.
    for k in range(KK):
        r0 = 4 * k
        py = pos[r0:r0 + 2, :]                                            # (G, BHW)  y coords
        px = pos[r0 + 2:r0 + 4, :]                                        # (G, BHW)  x coords
        wy = jnp.maximum(1.0 - jnp.abs(ih_b[None, :, :] - py[:, None, :]), 0.0)  # (G,B*H,BHW)
        wx = jnp.maximum(1.0 - jnp.abs(iw[None, :, :] - px[:, None, :]), 0.0)    # (G,W,BHW)
        # fused expansion: only the product is materialized
        wgt = (wy[:, :, None, :] * wx[:, None, :, :]).reshape(G * BHW, BHW)
        sampled = jnp.dot(feat_blk, wgt.astype(bf16),
                          preferred_element_type=f32)                     # (SLOT, BHW)
        dcn_ref[k * SLOT:(k + 1) * SLOT, :] = sampled.astype(bf16)

    # one deep bf16 MXU matmul over the whole sampled stack
    dcn_out = jnp.dot(w_dcn_ref[...], dcn_ref[...], preferred_element_type=f32)
    out_ref[...] = jnp.maximum(dcn_out, 0.0) + feat_arm                   # relu(dcn) + feat_arm


# ----------------------------------------------------------------------------
# Host-side constants / weight folding / pallas_call wrapper.
# ----------------------------------------------------------------------------
def _bilinear_axis_matrix(out_size, in_size):
    # matches torch F.interpolate(mode='bilinear', align_corners=False)
    scale = in_size / out_size
    dst = np.arange(out_size, dtype=np.float64)
    src = np.maximum((dst + 0.5) * scale - 0.5, 0.0)
    i0 = np.minimum(np.floor(src).astype(np.int64), in_size - 1)
    i1 = np.minimum(i0 + 1, in_size - 1)
    lam = src - i0
    m = np.zeros((out_size, in_size), dtype=np.float64)
    m[np.arange(out_size), i0] += 1.0 - lam
    m[np.arange(out_size), i1] += lam
    return m


def make_upsample_matrix_t():
    wy = _bilinear_axis_matrix(H, HS)
    wx = _bilinear_axis_matrix(W, WS)
    u = np.einsum('ab,cd->acbd', wy, wx).reshape(H * W, HS * WS)   # (HW, HWS)
    return u.T                                                     # (HWS, HW) numpy


def _host_constants():
    # block-diagonal bilinear upsample matrix: batch blocks inside group blocks
    u_batch = np.kron(np.eye(B), make_upsample_matrix_t())        # (B*HWS, B*HW)
    u_blk2 = np.kron(np.eye(G), u_batch)                          # (G*BHWS, G*BHW)

    # per-batch mean + broadcast back, as one (BHW, BHW) matrix
    col_b = np.arange(BHW) // HW
    m_pool = (col_b[:, None] == col_b[None, :]).astype(np.float64) / HW

    # masked input-row grid (BIG on cross-batch entries -> tent weight 0)
    r = np.arange(B * H)
    ih_b = (r[:, None] % H) + BIG * ((r[:, None] // H) != col_b[None, :])
    iw = np.broadcast_to(np.arange(W, dtype=np.float64)[:, None], (W, BHW)).copy()

    # per-(tap, comp, group) base sample coordinates, rows ordered (k, {y,x}, g)
    oy = (np.arange(BHW) % HW) // W
    ox = np.arange(BHW) % W
    base = np.zeros((2 * G * KK, BHW))
    for k in range(KK):
        dy, dx = k // K - PAD, k % K - PAD
        for g in range(G):
            base[4 * k + g] = oy + dy
            base[4 * k + 2 + g] = ox + dx

    # offset-conv row permutation: orig row (g, k, comp) -> new row (k, comp, g)
    perm = np.array([g * 2 * KK + 2 * k + comp
                     for k in range(KK) for comp in range(2) for g in range(G)])

    asf = lambda a: jnp.asarray(a, jnp.float32)
    return asf(u_blk2), asf(m_pool), asf(ih_b), asf(iw), asf(base), perm


def feature_align_v2(feat_l, feat_s, w_atten, w_conv, w_off, w_dcn):
    f32 = jnp.float32
    u_blk2, m_pool, ih_b, iw, base, perm = _host_constants()

    # fold batch into the lane (last) dimension: column index = b*HW + pixel
    x_l = jnp.transpose(feat_l.reshape(B, IN_NC, HW), (1, 0, 2)).reshape(IN_NC, BHW)
    x_s = jnp.transpose(feat_s.reshape(B, OUT_NC, HWS), (1, 0, 2)).reshape(OUT_NC, BHWS)

    # group-pad (CG -> CG_PAD, zero rows) and group-block-diagonalize feat_s so
    # feat_blk = x_s_blk @ u_blk2 lands directly in the K=256 sampling layout.
    x_s_g = jnp.pad(x_s.reshape(G, CG, BHWS), ((0, 0), (0, CG_PAD - CG), (0, 0)))
    zero_blk = jnp.zeros((CG_PAD, BHWS), f32)
    x_s_blk = jnp.concatenate(
        [jnp.concatenate([x_s_g[g] if gg == g else zero_blk for gg in range(G)], axis=1)
         for g in range(G)], axis=0)                                   # (SLOT, G*BHWS)

    # fold eval-mode BN scale (and feat_up*2) into the 1x1 weights; permute
    # offset rows to (k, {y,x}, g); pad w_off's feat_up columns to CG_PAD.
    w_atten_s = (BN_SCALE * w_atten).astype(f32)
    w_off_p = w_off[perm, :]
    w_off_a = (BN_SCALE * w_off_p[:, :OUT_NC]).astype(f32)
    w_off_b = (2.0 * BN_SCALE * w_off_p[:, OUT_NC:]).reshape(OUT_NC, G, CG)
    w_off_b = jnp.pad(w_off_b, ((0, 0), (0, 0), (0, CG_PAD - CG))
                      ).reshape(OUT_NC, SLOT).astype(f32)

    # DCN weight (oc, ic, kh, kw) -> columns ordered (k, g, c_pad), bf16
    w_r = jnp.transpose(w_dcn.reshape(OUT_NC, G, CG, KK), (0, 3, 1, 2))  # (oc, k, g, c)
    w_r = jnp.pad(w_r, ((0, 0), (0, 0), (0, 0), (0, CG_PAD - CG)))
    w_dcn_flat = w_r.reshape(OUT_NC, DCN_ROWS).astype(jnp.bfloat16)

    # TODO(synk): at module-default sizes (IN_NC=288, larger H*W, B>2) add a
    # grid axis over 128-lane (b,h,w) column tiles (keep the (C, 128) layout
    # per tile) so the input/output DMAs pipeline and v7x can shard tiles
    # across its two TensorCores; at B*H*W == 128 one grid step is the whole
    # problem and there is nothing for double-buffering to hide.
    out = pl.pallas_call(
        feature_align_kernel,
        out_shape=jax.ShapeDtypeStruct((OUT_NC, BHW), f32),
        grid_spec=pltpu.PrefetchScalarGridSpec(
            num_scalar_prefetch=0,
            grid=(1,),
            in_specs=[
                pl.BlockSpec((IN_NC, BHW), lambda i: (0, 0)),           # x_l
                pl.BlockSpec((SLOT, G * BHWS), lambda i: (0, 0)),       # x_s_blk
                pl.BlockSpec((G * BHWS, G * BHW), lambda i: (0, 0)),    # u_blk2
                pl.BlockSpec((BHW, BHW), lambda i: (0, 0)),             # m_pool
                pl.BlockSpec((B * H, BHW), lambda i: (0, 0)),           # ih_b
                pl.BlockSpec((W, BHW), lambda i: (0, 0)),               # iw
                pl.BlockSpec((2 * G * KK, BHW), lambda i: (0, 0)),      # base
                pl.BlockSpec((IN_NC, IN_NC), lambda i: (0, 0)),         # w_atten
                pl.BlockSpec((OUT_NC, IN_NC), lambda i: (0, 0)),        # w_conv
                pl.BlockSpec((OUT_NC, OUT_NC), lambda i: (0, 0)),       # w_off_a
                pl.BlockSpec((OUT_NC, SLOT), lambda i: (0, 0)),         # w_off_b
                pl.BlockSpec((OUT_NC, DCN_ROWS), lambda i: (0, 0)),     # w_dcn (bf16)
            ],
            out_specs=pl.BlockSpec((OUT_NC, BHW), lambda i: (0, 0)),    # lane-dense output
            scratch_shapes=[pltpu.VMEM((DCN_ROWS, BHW), jnp.bfloat16)], # sampled stack
        ),
        compiler_params=pltpu.CompilerParams(dimension_semantics=("arbitrary",)),
    )(x_l, x_s_blk, u_blk2, m_pool, ih_b, iw, base,
      w_atten_s, w_conv.astype(f32), w_off_a, w_off_b, w_dcn_flat)

    # unfold the batch from the lane axis
    return jnp.transpose(out.reshape(OUT_NC, B, HW), (1, 0, 2)).reshape(B, OUT_NC, H, W)


# ----------------------------------------------------------------------------
# Pure-JAX reference (same math, no Pallas) for a sanity check.
# ----------------------------------------------------------------------------
def reference(feat_l, feat_s, w_atten, w_conv, w_off, w_dcn):
    u_t = jnp.asarray(make_upsample_matrix_t(), jnp.float32)
    feat_up = jnp.einsum('bci,io->bco', feat_s.reshape(B, OUT_NC, HWS),
                         u_t).reshape(B, OUT_NC, H, W)
    gap = jnp.mean(feat_l, axis=(2, 3))
    att = jax.nn.sigmoid(BN_SCALE * jnp.einsum('oc,bc->bo', w_atten, gap))
    y = feat_l * (1.0 + att[:, :, None, None])
    feat_arm = jnp.einsum('oc,bchw->bohw', w_conv, y)
    cat = jnp.concatenate([feat_arm, 2.0 * feat_up], axis=1)
    offs = BN_SCALE * jnp.einsum('oc,bchw->bohw', w_off, cat)
    offs = offs.reshape(B, G, KK, 2, H, W)

    oy = jnp.arange(H, dtype=jnp.float32).reshape(1, 1, 1, H, 1)
    ox = jnp.arange(W, dtype=jnp.float32).reshape(1, 1, 1, 1, W)
    kh = (jnp.arange(KK) // K).astype(jnp.float32).reshape(1, 1, KK, 1, 1)
    kw = (jnp.arange(KK) % K).astype(jnp.float32).reshape(1, 1, KK, 1, 1)
    py = oy + kh - PAD + offs[:, :, :, 0]
    px = ox + kw - PAD + offs[:, :, :, 1]
    ih = jnp.arange(H, dtype=jnp.float32).reshape(1, 1, 1, 1, 1, H)
    iw = jnp.arange(W, dtype=jnp.float32).reshape(1, 1, 1, 1, 1, W)
    wy = jnp.maximum(1.0 - jnp.abs(ih - py[..., None]), 0.0)   # (B,G,KK,H,W,Hin)
    wx = jnp.maximum(1.0 - jnp.abs(iw - px[..., None]), 0.0)   # (B,G,KK,H,W,Win)
    feat_up_g = feat_up.reshape(B, G, CG, H, W)
    sampled = jnp.einsum('bgkhwy,bgkhwx,bgcyx->bgkchw', wy, wx, feat_up_g)
    w_dcn_g = w_dcn.reshape(OUT_NC, G, CG, KK)
    dcn_out = jnp.einsum('ogck,bgkchw->bohw', w_dcn_g, sampled)
    return jnp.maximum(dcn_out, 0.0) + feat_arm


# ----------------------------------------------------------------------------
def xavier_uniform(key, shape, fan_in, fan_out):
    limit = math.sqrt(6.0 / (fan_in + fan_out))
    return jax.random.uniform(key, shape, jnp.float32, -limit, limit)


if __name__ == "__main__":
    key = jax.random.PRNGKey(0)
    k1, k2, k3, k4, k5, k6 = jax.random.split(key, 6)
    feat_l = jax.random.normal(k1, (B, IN_NC, H, W), jnp.float32)
    feat_s = jax.random.normal(k2, (B, OUT_NC, HS, WS), jnp.float32)

    # deterministic xavier-uniform parameters (conv biases are all False)
    w_atten = xavier_uniform(k3, (IN_NC, IN_NC), IN_NC, IN_NC)              # FSM conv_atten 1x1
    w_conv = xavier_uniform(k4, (OUT_NC, IN_NC), IN_NC, OUT_NC)             # FSM conv 1x1
    w_off = xavier_uniform(k5, (OUT_NC, 2 * OUT_NC), 2 * OUT_NC, OUT_NC)    # offset conv 1x1
    w_dcn = xavier_uniform(k6, (OUT_NC, OUT_NC, K, K), OUT_NC * KK, OUT_NC * KK)  # DeformConv2d

    out = jax.block_until_ready(
        feature_align_v2(feat_l, feat_s, w_atten, w_conv, w_off, w_dcn))
    assert out.shape == (B, OUT_NC, H, W)

    ref = reference(feat_l, feat_s, w_atten, w_conv, w_off, w_dcn)
    np.testing.assert_allclose(np.asarray(out), np.asarray(ref), rtol=5e-2, atol=5e-2)

    print("KERNEL_OK")
</pallas_src>

<mosaic_0001>
module attributes {stable_mosaic.version = 11 : i64} {
  func.func @feature_align_kernel(%arg0: i32, %arg1: memref<72x128xf32, #tpu.memory_space<vmem>>, %arg2: memref<48x64xf32, #tpu.memory_space<vmem>>, %arg3: memref<64x256xf32, #tpu.memory_space<vmem>>, %arg4: memref<128x128xf32, #tpu.memory_space<vmem>>, %arg5: memref<16x128xf32, #tpu.memory_space<vmem>>, %arg6: memref<8x128xf32, #tpu.memory_space<vmem>>, %arg7: memref<36x128xf32, #tpu.memory_space<vmem>>, %arg8: memref<72x72xf32, #tpu.memory_space<vmem>>, %arg9: memref<36x72xf32, #tpu.memory_space<vmem>>, %arg10: memref<36x36xf32, #tpu.memory_space<vmem>>, %arg11: memref<36x48xf32, #tpu.memory_space<vmem>>, %arg12: memref<36x432xbf16, #tpu.memory_space<vmem>>, %arg13: memref<36x128xf32, #tpu.memory_space<vmem>>, %arg14: memref<432x128xbf16, #tpu.memory_space<vmem>>) attributes {dimension_semantics = [#tpu.dimension_semantics<arbitrary>], iteration_bounds = array<i64: 1>, scalar_prefetch = 0 : i64, scratch_operands = 1 : i64, tpu.core_type = #tpu.core_type<tc>, window_params = [{pipeline_mode = #tpu.pipeline_mode<synchronous>, transform_indices = @transform_0, window_bounds = array<i64: 72, 128>}, {pipeline_mode = #tpu.pipeline_mode<synchronous>, transform_indices = @transform_1, window_bounds = array<i64: 48, 64>}, {pipeline_mode = #tpu.pipeline_mode<synchronous>, transform_indices = @transform_2, window_bounds = array<i64: 64, 256>}, {pipeline_mode = #tpu.pipeline_mode<synchronous>, transform_indices = @transform_3, window_bounds = array<i64: 128, 128>}, {pipeline_mode = #tpu.pipeline_mode<synchronous>, transform_indices = @transform_4, window_bounds = array<i64: 16, 128>}, {pipeline_mode = #tpu.pipeline_mode<synchronous>, transform_indices = @transform_5, window_bounds = array<i64: 8, 128>}, {pipeline_mode = #tpu.pipeline_mode<synchronous>, transform_indices = @transform_6, window_bounds = array<i64: 36, 128>}, {pipeline_mode = #tpu.pipeline_mode<synchronous>, transform_indices = @transform_7, window_bounds = array<i64: 72, 72>}, {pipeline_mode = #tpu.pipeline_mode<synchronous>, transform_indices = @transform_8, window_bounds = array<i64: 36, 72>}, {pipeline_mode = #tpu.pipeline_mode<synchronous>, transform_indices = @transform_9, window_bounds = array<i64: 36, 36>}, {pipeline_mode = #tpu.pipeline_mode<synchronous>, transform_indices = @transform_10, window_bounds = array<i64: 36, 48>}, {pipeline_mode = #tpu.pipeline_mode<synchronous>, transform_indices = @transform_11, window_bounds = array<i64: 36, 432>}, {pipeline_mode = #tpu.pipeline_mode<synchronous>, transform_indices = @transform_12, window_bounds = array<i64: 36, 128>}]} {
    %c0 = arith.constant 0 : index
    %c0_0 = arith.constant 0 : index
    %0 = vector.load %arg1[%c0, %c0_0] : memref<72x128xf32, #tpu.memory_space<vmem>>, vector<72x128xf32>
    %c0_1 = arith.constant 0 : index
    %c0_2 = arith.constant 0 : index
    %1 = vector.load %arg4[%c0_1, %c0_2] : memref<128x128xf32, #tpu.memory_space<vmem>>, vector<128x128xf32>
    %cst = arith.constant dense<0.000000e+00> : vector<72x128xf32>
    %2 = tpu.matmul %0, %1, %cst {dimension_numbers = #tpu.dot_dimension_numbers<[1], [0], [0], [1], [0, 0, 1, 1], [], []>} : vector<72x128xf32>, vector<128x128xf32>, vector<72x128xf32> -> vector<72x128xf32>
    %c0_3 = arith.constant 0 : index
    %c0_4 = arith.constant 0 : index
    %3 = vector.load %arg8[%c0_3, %c0_4] : memref<72x72xf32, #tpu.memory_space<vmem>>, vector<72x72xf32>
    %cst_5 = arith.constant dense<0.000000e+00> : vector<72x128xf32>
    %4 = tpu.matmul %3, %2, %cst_5 {dimension_numbers = #tpu.dot_dimension_numbers<[1], [0], [0], [1], [0, 0, 1, 1], [], []>} : vector<72x72xf32>, vector<72x128xf32>, vector<72x128xf32> -> vector<72x128xf32>
    %5 = arith.negf %4 : vector<72x128xf32>
    %6 = math.exp %5 : vector<72x128xf32>
    %cst_6 = arith.constant 1.000000e+00 : f32
    %7 = vector.broadcast %cst_6 : f32 to vector<72x128xf32>
    %8 = arith.addf %7, %6 : vector<72x128xf32>
    %9 = arith.divf %7, %8 : vector<72x128xf32>
    %10 = arith.mulf %0, %9 : vector<72x128xf32>
    %11 = arith.addf %0, %10 : vector<72x128xf32>
    %c0_7 = arith.constant 0 : index
    %c0_8 = arith.constant 0 : index
    %12 = vector.load %arg9[%c0_7, %c0_8] : memref<36x72xf32, #tpu.memory_space<vmem>>, vector<36x72xf32>
    %cst_9 = arith.constant dense<0.000000e+00> : vector<36x128xf32>
    %13 = tpu.matmul %12, %11, %cst_9 {dimension_numbers = #tpu.dot_dimension_numbers<[1], [0], [0], [1], [0, 0, 1, 1], [], []>} : vector<36x72xf32>, vector<72x128xf32>, vector<36x128xf32> -> vector<36x128xf32>
    %c0_10 = arith.constant 0 : index
    %c0_11 = arith.constant 0 : index
    %14 = vector.load %arg2[%c0_10, %c0_11] : memref<48x64xf32, #tpu.memory_space<vmem>>, vector<48x64xf32>
    %c0_12 = arith.constant 0 : index
    %c0_13 = arith.constant 0 : index
    %15 = vector.load %arg3[%c0_12, %c0_13] : memref<64x256xf32, #tpu.memory_space<vmem>>, vector<64x256xf32>
    %cst_14 = arith.constant dense<0.000000e+00> : vector<48x256xf32>
    %16 = tpu.matmul %14, %15, %cst_14 {dimension_numbers = #tpu.dot_dimension_numbers<[1], [0], [0], [1], [0, 0, 1, 1], [], []>} : vector<48x64xf32>, vector<64x256xf32>, vector<48x256xf32> -> vector<48x256xf32>
    %17 = vector.extract_strided_slice %16 {offsets = [0, 0], sizes = [48, 128], strides = [1, 1]} : vector<48x256xf32> to vector<48x128xf32>
    %18 = vector.extract_strided_slice %16 {offsets = [0, 128], sizes = [48, 128], strides = [1, 1]} : vector<48x256xf32> to vector<48x128xf32>
    %19 = arith.addf %17, %18 : vector<48x128xf32>
    %20 = arith.truncf %16 : vector<48x256xf32> to vector<48x256xbf16>
    %c0_15 = arith.constant 0 : index
    %c0_16 = arith.constant 0 : index
    %21 = vector.load %arg10[%c0_15, %c0_16] : memref<36x36xf32, #tpu.memory_space<vmem>>, vector<36x36xf32>
    %cst_17 = arith.constant dense<0.000000e+00> : vector<36x128xf32>
    %22 = tpu.matmul %21, %13, %cst_17 {dimension_numbers = #tpu.dot_dimension_numbers<[1], [0], [0], [1], [0, 0, 1, 1], [], []>} : vector<36x36xf32>, vector<36x128xf32>, vector<36x128xf32> -> vector<36x128xf32>
    %c0_18 = arith.constant 0 : index
    %c0_19 = arith.constant 0 : index
    %23 = vector.load %arg11[%c0_18, %c0_19] : memref<36x48xf32, #tpu.memory_space<vmem>>, vector<36x48xf32>
    %cst_20 = arith.constant dense<0.000000e+00> : vector<36x128xf32>
    %24 = tpu.matmul %23, %19, %cst_20 {dimension_numbers = #tpu.dot_dimension_numbers<[1], [0], [0], [1], [0, 0, 1, 1], [], []>} : vector<36x48xf32>, vector<48x128xf32>, vector<36x128xf32> -> vector<36x128xf32>
    %25 = arith.addf %22, %24 : vector<36x128xf32>
    %c0_21 = arith.constant 0 : index
    %c0_22 = arith.constant 0 : index
    %26 = vector.load %arg7[%c0_21, %c0_22] : memref<36x128xf32, #tpu.memory_space<vmem>>, vector<36x128xf32>
    %27 = arith.addf %25, %26 : vector<36x128xf32>
    %c0_23 = arith.constant 0 : index
    %c0_24 = arith.constant 0 : index
    %28 = vector.load %arg5[%c0_23, %c0_24] : memref<16x128xf32, #tpu.memory_space<vmem>>, vector<16x128xf32>
    %c0_25 = arith.constant 0 : index
    %c0_26 = arith.constant 0 : index
    %29 = vector.load %arg6[%c0_25, %c0_26] : memref<8x128xf32, #tpu.memory_space<vmem>>, vector<8x128xf32>
    %30 = vector.extract_strided_slice %27 {offsets = [0, 0], sizes = [2, 128], strides = [1, 1]} : vector<36x128xf32> to vector<2x128xf32>
    %31 = vector.extract_strided_slice %27 {offsets = [2, 0], sizes = [2, 128], strides = [1, 1]} : vector<36x128xf32> to vector<2x128xf32>
    %32 = vector.shape_cast %28 : vector<16x128xf32> to vector<1x16x128xf32>
    %33 = vector.shape_cast %30 : vector<2x128xf32> to vector<2x1x128xf32>
    %34 = vector.broadcast %32 : vector<1x16x128xf32> to vector<2x16x128xf32>
    %35 = vector.broadcast %33 : vector<2x1x128xf32> to vector<2x16x128xf32>
    %36 = arith.subf %34, %35 : vector<2x16x128xf32>
    %37 = math.absf %36 : vector<2x16x128xf32>
    %cst_27 = arith.constant 1.000000e+00 : f32
    %38 = vector.broadcast %cst_27 : f32 to vector<2x16x128xf32>
    %39 = arith.subf %38, %37 : vector<2x16x128xf32>
    %cst_28 = arith.constant 0.000000e+00 : f32
    %40 = vector.broadcast %cst_28 : f32 to vector<2x16x128xf32>
    %41 = arith.maximumf %39, %40 : vector<2x16x128xf32>
    %42 = vector.shape_cast %29 : vector<8x128xf32> to vector<1x8x128xf32>
    %43 = vector.shape_cast %31 : vector<2x128xf32> to vector<2x1x128xf32>
    %44 = vector.broadcast %42 : vector<1x8x128xf32> to vector<2x8x128xf32>
    %45 = vector.broadcast %43 : vector<2x1x128xf32> to vector<2x8x128xf32>
    %46 = arith.subf %44, %45 : vector<2x8x128xf32>
    %47 = math.absf %46 : vector<2x8x128xf32>
    %cst_29 = arith.constant 1.000000e+00 : f32
    %48 = vector.broadcast %cst_29 : f32 to vector<2x8x128xf32>
    %49 = arith.subf %48, %47 : vector<2x8x128xf32>
    %cst_30 = arith.constant 0.000000e+00 : f32
    %50 = vector.broadcast %cst_30 : f32 to vector<2x8x128xf32>
    %51 = arith.maximumf %49, %50 : vector<2x8x128xf32>
    %52 = vector.shape_cast %41 : vector<2x16x128xf32> to vector<2x16x1x128xf32>
    %53 = vector.shape_cast %51 : vector<2x8x128xf32> to vector<2x1x8x128xf32>
    %54 = vector.broadcast %52 : vector<2x16x1x128xf32> to vector<2x16x8x128xf32>
    %55 = vector.broadcast %53 : vector<2x1x8x128xf32> to vector<2x16x8x128xf32>
    %56 = arith.mulf %54, %55 : vector<2x16x8x128xf32>
    %57 = vector.shape_cast %56 : vector<2x16x8x128xf32> to vector<256x128xf32>
    %58 = arith.truncf %57 : vector<256x128xf32> to vector<256x128xbf16>
    %cst_31 = arith.constant dense<0.000000e+00> : vector<48x128xf32>
    %59 = tpu.matmul %20, %58, %cst_31 {dimension_numbers = #tpu.dot_dimension_numbers<[1], [0], [0], [1], [0, 0, 1, 1], [], []>} : vector<48x256xbf16>, vector<256x128xbf16>, vector<48x128xf32> -> vector<48x128xf32>
    %60 = arith.truncf %59 : vector<48x128xf32> to vector<48x128xbf16>
    %c0_32 = arith.constant 0 : index
    %c0_33 = arith.constant 0 : index
    %61 = vector.load %arg14[%c0_32, %c0_33] : memref<432x128xbf16, #tpu.memory_space<vmem>>, vector<48x128xbf16>
    tpu.vector_store %arg14[%c0_32, %c0_33], %60 {strides = array<i32>} : memref<432x128xbf16, #tpu.memory_space<vmem>>, vector<48x128xbf16>,
    %62 = vector.extract_strided_slice %27 {offsets = [4, 0], sizes = [2, 128], strides = [1, 1]} : vector<36x128xf32> to vector<2x128xf32>
    %63 = vector.extract_strided_slice %27 {offsets = [6, 0], sizes = [2, 128], strides = [1, 1]} : vector<36x128xf32> to vector<2x128xf32>
    %64 = vector.shape_cast %28 : vector<16x128xf32> to vector<1x16x128xf32>
    %65 = vector.shape_cast %62 : vector<2x128xf32> to vector<2x1x128xf32>
    %66 = vector.broadcast %64 : vector<1x16x128xf32> to vector<2x16x128xf32>
    %67 = vector.broadcast %65 : vector<2x1x128xf32> to vector<2x16x128xf32>
    %68 = arith.subf %66, %67 : vector<2x16x128xf32>
    %69 = math.absf %68 : vector<2x16x128xf32>
    %cst_34 = arith.constant 1.000000e+00 : f32
    %70 = vector.broadcast %cst_34 : f32 to vector<2x16x128xf32>
    %71 = arith.subf %70, %69 : vector<2x16x128xf32>
    %cst_35 = arith.constant 0.000000e+00 : f32
    %72 = vector.broadcast %cst_35 : f32 to vector<2x16x128xf32>
    %73 = arith.maximumf %71, %72 : vector<2x16x128xf32>
    %74 = vector.shape_cast %29 : vector<8x128xf32> to vector<1x8x128xf32>
    %75 = vector.shape_cast %63 : vector<2x128xf32> to vector<2x1x128xf32>
    %76 = vector.broadcast %74 : vector<1x8x128xf32> to vector<2x8x128xf32>
    %77 = vector.broadcast %75 : vector<2x1x128xf32> to vector<2x8x128xf32>
    %78 = arith.subf %76, %77 : vector<2x8x128xf32>
    %79 = math.absf %78 : vector<2x8x128xf32>
    %cst_36 = arith.constant 1.000000e+00 : f32
    %80 = vector.broadcast %cst_36 : f32 to vector<2x8x128xf32>
    %81 = arith.subf %80, %79 : vector<2x8x128xf32>
    %cst_37 = arith.constant 0.000000e+00 : f32
    %82 = vector.broadcast %cst_37 : f32 to vector<2x8x128xf32>
    %83 = arith.maximumf %81, %82 : vector<2x8x128xf32>
    %84 = vector.shape_cast %73 : vector<2x16x128xf32> to vector<2x16x1x128xf32>
    %85 = vector.shape_cast %83 : vector<2x8x128xf32> to vector<2x1x8x128xf32>
    %86 = vector.broadcast %84 : vector<2x16x1x128xf32> to vector<2x16x8x128xf32>
    %87 = vector.broadcast %85 : vector<2x1x8x128xf32> to vector<2x16x8x128xf32>
    %88 = arith.mulf %86, %87 : vector<2x16x8x128xf32>
    %89 = vector.shape_cast %88 : vector<2x16x8x128xf32> to vector<256x128xf32>
    %90 = arith.truncf %89 : vector<256x128xf32> to vector<256x128xbf16>
    %cst_38 = arith.constant dense<0.000000e+00> : vector<48x128xf32>
    %91 = tpu.matmul %20, %90, %cst_38 {dimension_numbers = #tpu.dot_dimension_numbers<[1], [0], [0], [1], [0, 0, 1, 1], [], []>} : vector<48x256xbf16>, vector<256x128xbf16>, vector<48x128xf32> -> vector<48x128xf32>
    %92 = arith.truncf %91 : vector<48x128xf32> to vector<48x128xbf16>
    %c48 = arith.constant 48 : index
    %c0_39 = arith.constant 0 : index
    %93 = vector.load %arg14[%c48, %c0_39] : memref<432x128xbf16, #tpu.memory_space<vmem>>, vector<48x128xbf16>
    tpu.vector_store %arg14[%c48, %c0_39], %92 {strides = array<i32>} : memref<432x128xbf16, #tpu.memory_space<vmem>>, vector<48x128xbf16>,
    %94 = vector.extract_strided_slice %27 {offsets = [8, 0], sizes = [2, 128], strides = [1, 1]} : vector<36x128xf32> to vector<2x128xf32>
    %95 = vector.extract_strided_slice %27 {offsets = [10, 0], sizes = [2, 128], strides = [1, 1]} : vector<36x128xf32> to vector<2x128xf32>
    %96 = vector.shape_cast %28 : vector<16x128xf32> to vector<1x16x128xf32>
    %97 = vector.shape_cast %94 : vector<2x128xf32> to vector<2x1x128xf32>
    %98 = vector.broadcast %96 : vector<1x16x128xf32> to vector<2x16x128xf32>
    %99 = vector.broadcast %97 : vector<2x1x128xf32> to vector<2x16x128xf32>
    %100 = arith.subf %98, %99 : vector<2x16x128xf32>
    %101 = math.absf %100 : vector<2x16x128xf32>
    %cst_40 = arith.constant 1.000000e+00 : f32
    %102 = vector.broadcast %cst_40 : f32 to vector<2x16x128xf32>
    %103 = arith.subf %102, %101 : vector<2x16x128xf32>
    %cst_41 = arith.constant 0.000000e+00 : f32
    %104 = vector.broadcast %cst_41 : f32 to vector<2x16x128xf32>
    %105 = arith.maximumf %103, %104 : vector<2x16x128xf32>
    %106 = vector.shape_cast %29 : vector<8x128xf32> to vector<1x8x128xf32>
    %107 = vector.shape_cast %95 : vector<2x128xf32> to vector<2x1x128xf32>
    %108 = vector.broadcast %106 : vector<1x8x128xf32> to vector<2x8x128xf32>
    %109 = vector.broadcast %107 : vector<2x1x128xf32> to vector<2x8x128xf32>
    %110 = arith.subf %108, %109 : vector<2x8x128xf32>
    %111 = math.absf %110 : vector<2x8x128xf32>
    %cst_42 = arith.constant 1.000000e+00 : f32
    %112 = vector.broadcast %cst_42 : f32 to vector<2x8x128xf32>
    %113 = arith.subf %112, %111 : vector<2x8x128xf32>
    %cst_43 = arith.constant 0.000000e+00 : f32
    %114 = vector.broadcast %cst_43 : f32 to vector<2x8x128xf32>
    %115 = arith.maximumf %113, %114 : vector<2x8x128xf32>
    %116 = vector.shape_cast %105 : vector<2x16x128xf32> to vector<2x16x1x128xf32>
    %117 = vector.shape_cast %115 : vector<2x8x128xf32> to vector<2x1x8x128xf32>
    %118 = vector.broadcast %116 : vector<2x16x1x128xf32> to vector<2x16x8x128xf32>
    %119 = vector.broadcast %117 : vector<2x1x8x128xf32> to vector<2x16x8x128xf32>
    %120 = arith.mulf %118, %119 : vector<2x16x8x128xf32>
    %121 = vector.shape_cast %120 : vector<2x16x8x128xf32> to vector<256x128xf32>
    %122 = arith.truncf %121 : vector<256x128xf32> to vector<256x128xbf16>
    %cst_44 = arith.constant dense<0.000000e+00> : vector<48x128xf32>
    %123 = tpu.matmul %20, %122, %cst_44 {dimension_numbers = #tpu.dot_dimension_numbers<[1], [0], [0], [1], [0, 0, 1, 1], [], []>} : vector<48x256xbf16>, vector<256x128xbf16>, vector<48x128xf32> -> vector<48x128xf32>
    %124 = arith.truncf %123 : vector<48x128xf32> to vector<48x128xbf16>
    %c96 = arith.constant 96 : index
    %c0_45 = arith.constant 0 : index
    %125 = vector.load %arg14[%c96, %c0_45] : memref<432x128xbf16, #tpu.memory_space<vmem>>, vector<48x128xbf16>
    tpu.vector_store %arg14[%c96, %c0_45], %124 {strides = array<i32>} : memref<432x128xbf16, #tpu.memory_space<vmem>>, vector<48x128xbf16>,
    %126 = vector.extract_strided_slice %27 {offsets = [12, 0], sizes = [2, 128], strides = [1, 1]} : vector<36x128xf32> to vector<2x128xf32>
    %127 = vector.extract_strided_slice %27 {offsets = [14, 0], sizes = [2, 128], strides = [1, 1]} : vector<36x128xf32> to vector<2x128xf32>
    %128 = vector.shape_cast %28 : vector<16x128xf32> to vector<1x16x128xf32>
    %129 = vector.shape_cast %126 : vector<2x128xf32> to vector<2x1x128xf32>
    %130 = vector.broadcast %128 : vector<1x16x128xf32> to vector<2x16x128xf32>
    %131 = vector.broadcast %129 : vector<2x1x128xf32> to vector<2x16x128xf32>
    %132 = arith.subf %130, %131 : vector<2x16x128xf32>
    %133 = math.absf %132 : vector<2x16x128xf32>
    %cst_46 = arith.constant 1.000000e+00 : f32
    %134 = vector.broadcast %cst_46 : f32 to vector<2x16x128xf32>
    %135 = arith.subf %134, %133 : vector<2x16x128xf32>
    %cst_47 = arith.constant 0.000000e+00 : f32
    %136 = vector.broadcast %cst_47 : f32 to vector<2x16x128xf32>
    %137 = arith.maximumf %135, %136 : vector<2x16x128xf32>
    %138 = vector.shape_cast %29 : vector<8x128xf32> to vector<1x8x128xf32>
    %139 = vector.shape_cast %127 : vector<2x128xf32> to vector<2x1x128xf32>
    %140 = vector.broadcast %138 : vector<1x8x128xf32> to vector<2x8x128xf32>
    %141 = vector.broadcast %139 : vector<2x1x128xf32> to vector<2x8x128xf32>
    %142 = arith.subf %140, %141 : vector<2x8x128xf32>
    %143 = math.absf %142 : vector<2x8x128xf32>
    %cst_48 = arith.constant 1.000000e+00 : f32
    %144 = vector.broadcast %cst_48 : f32 to vector<2x8x128xf32>
    %145 = arith.subf %144, %143 : vector<2x8x128xf32>
    %cst_49 = arith.constant 0.000000e+00 : f32
    %146 = vector.broadcast %cst_49 : f32 to vector<2x8x128xf32>
    %147 = arith.maximumf %145, %146 : vector<2x8x128xf32>
    %148 = vector.shape_cast %137 : vector<2x16x128xf32> to vector<2x16x1x128xf32>
    %149 = vector.shape_cast %147 : vector<2x8x128xf32> to vector<2x1x8x128xf32>
    %150 = vector.broadcast %148 : vector<2x16x1x128xf32> to vector<2x16x8x128xf32>
    %151 = vector.broadcast %149 : vector<2x1x8x128xf32> to vector<2x16x8x128xf32>
    %152 = arith.mulf %150, %151 : vector<2x16x8x128xf32>
    %153 = vector.shape_cast %152 : vector<2x16x8x128xf32> to vector<256x128xf32>
    %154 = arith.truncf %153 : vector<256x128xf32> to vector<256x128xbf16>
    %cst_50 = arith.constant dense<0.000000e+00> : vector<48x128xf32>
    %155 = tpu.matmul %20, %154, %cst_50 {dimension_numbers = #tpu.dot_dimension_numbers<[1], [0], [0], [1], [0, 0, 1, 1], [], []>} : vector<48x256xbf16>, vector<256x128xbf16>, vector<48x128xf32> -> vector<48x128xf32>
    %156 = arith.truncf %155 : vector<48x128xf32> to vector<48x128xbf16>
    %c144 = arith.constant 144 : index
    %c0_51 = arith.constant 0 : index
    %157 = vector.load %arg14[%c144, %c0_51] : memref<432x128xbf16, #tpu.memory_space<vmem>>, vector<48x128xbf16>
    tpu.vector_store %arg14[%c144, %c0_51], %156 {strides = array<i32>} : memref<432x128xbf16, #tpu.memory_space<vmem>>, vector<48x128xbf16>,
    %158 = vector.extract_strided_slice %27 {offsets = [16, 0], sizes = [2, 128], strides = [1, 1]} : vector<36x128xf32> to vector<2x128xf32>
    %159 = vector.extract_strided_slice %27 {offsets = [18, 0], sizes = [2, 128], strides = [1, 1]} : vector<36x128xf32> to vector<2x128xf32>
    %160 = vector.shape_cast %28 : vector<16x128xf32> to vector<1x16x128xf32>
    %161 = vector.shape_cast %158 : vector<2x128xf32> to vector<2x1x128xf32>
    %162 = vector.broadcast %160 : vector<1x16x128xf32> to vector<2x16x128xf32>
    %163 = vector.broadcast %161 : vector<2x1x128xf32> to vector<2x16x128xf32>
    %164 = arith.subf %162, %163 : vector<2x16x128xf32>
    %165 = math.absf %164 : vector<2x16x128xf32>
    %cst_52 = arith.constant 1.000000e+00 : f32
    %166 = vector.broadcast %cst_52 : f32 to vector<2x16x128xf32>
    %167 = arith.subf %166, %165 : vector<2x16x128xf32>
    %cst_53 = arith.constant 0.000000e+00 : f32
    %168 = vector.broadcast %cst_53 : f32 to vector<2x16x128xf32>
    %169 = arith.maximumf %167, %168 : vector<2x16x128xf32>
    %170 = vector.shape_cast %29 : vector<8x128xf32> to vector<1x8x128xf32>
    %171 = vector.shape_cast %159 : vector<2x128xf32> to vector<2x1x128xf32>
    %172 = vector.broadcast %170 : vector<1x8x128xf32> to vector<2x8x128xf32>
    %173 = vector.broadcast %171 : vector<2x1x128xf32> to vector<2x8x128xf32>
    %174 = arith.subf %172, %173 : vector<2x8x128xf32>
    %175 = math.absf %174 : vector<2x8x128xf32>
    %cst_54 = arith.constant 1.000000e+00 : f32
    %176 = vector.broadcast %cst_54 : f32 to vector<2x8x128xf32>
    %177 = arith.subf %176, %175 : vector<2x8x128xf32>
    %cst_55 = arith.constant 0.000000e+00 : f32
    %178 = vector.broadcast %cst_55 : f32 to vector<2x8x128xf32>
    %179 = arith.maximumf %177, %178 : vector<2x8x128xf32>
    %180 = vector.shape_cast %169 : vector<2x16x128xf32> to vector<2x16x1x128xf32>
    %181 = vector.shape_cast %179 : vector<2x8x128xf32> to vector<2x1x8x128xf32>
    %182 = vector.broadcast %180 : vector<2x16x1x128xf32> to vector<2x16x8x128xf32>
    %183 = vector.broadcast %181 : vector<2x1x8x128xf32> to vector<2x16x8x128xf32>
    %184 = arith.mulf %182, %183 : vector<2x16x8x128xf32>
    %185 = vector.shape_cast %184 : vector<2x16x8x128xf32> to vector<256x128xf32>
    %186 = arith.truncf %185 : vector<256x128xf32> to vector<256x128xbf16>
    %cst_56 = arith.constant dense<0.000000e+00> : vector<48x128xf32>
    %187 = tpu.matmul %20, %186, %cst_56 {dimension_numbers = #tpu.dot_dimension_numbers<[1], [0], [0], [1], [0, 0, 1, 1], [], []>} : vector<48x256xbf16>, vector<256x128xbf16>, vector<48x128xf32> -> vector<48x128xf32>
    %188 = arith.truncf %187 : vector<48x128xf32> to vector<48x128xbf16>
    %c192 = arith.constant 192 : index
    %c0_57 = arith.constant 0 : index
    %189 = vector.load %arg14[%c192, %c0_57] : memref<432x128xbf16, #tpu.memory_space<vmem>>, vector<48x128xbf16>
    tpu.vector_store %arg14[%c192, %c0_57], %188 {strides = array<i32>} : memref<432x128xbf16, #tpu.memory_space<vmem>>, vector<48x128xbf16>,
    %190 = vector.extract_strided_slice %27 {offsets = [20, 0], sizes = [2, 128], strides = [1, 1]} : vector<36x128xf32> to vector<2x128xf32>
    %191 = vector.extract_strided_slice %27 {offsets = [22, 0], sizes = [2, 128], strides = [1, 1]} : vector<36x128xf32> to vector<2x128xf32>
    %192 = vector.shape_cast %28 : vector<16x128xf32> to vector<1x16x128xf32>
    %193 = vector.shape_cast %190 : vector<2x128xf32> to vector<2x1x128xf32>
    %194 = vector.broadcast %192 : vector<1x16x128xf32> to vector<2x16x128xf32>
    %195 = vector.broadcast %193 : vector<2x1x128xf32> to vector<2x16x128xf32>
    %196 = arith.subf %194, %195 : vector<2x16x128xf32>
    %197 = math.absf %196 : vector<2x16x128xf32>
    %cst_58 = arith.constant 1.000000e+00 : f32
    %198 = vector.broadcast %cst_58 : f32 to vector<2x16x128xf32>
    %199 = arith.subf %198, %197 : vector<2x16x128xf32>
    %cst_59 = arith.constant 0.000000e+00 : f32
    %200 = vector.broadcast %cst_59 : f32 to vector<2x16x128xf32>
    %201 = arith.maximumf %199, %200 : vector<2x16x128xf32>
    %202 = vector.shape_cast %29 : vector<8x128xf32> to vector<1x8x128xf32>
    %203 = vector.shape_cast %191 : vector<2x128xf32> to vector<2x1x128xf32>
    %204 = vector.broadcast %202 : vector<1x8x128xf32> to vector<2x8x128xf32>
    %205 = vector.broadcast %203 : vector<2x1x128xf32> to vector<2x8x128xf32>
    %206 = arith.subf %204, %205 : vector<2x8x128xf32>
    %207 = math.absf %206 : vector<2x8x128xf32>
    %cst_60 = arith.constant 1.000000e+00 : f32
    %208 = vector.broadcast %cst_60 : f32 to vector<2x8x128xf32>
    %209 = arith.subf %208, %207 : vector<2x8x128xf32>
    %cst_61 = arith.constant 0.000000e+00 : f32
    %210 = vector.broadcast %cst_61 : f32 to vector<2x8x128xf32>
    %211 = arith.maximumf %209, %210 : vector<2x8x128xf32>
    %212 = vector.shape_cast %201 : vector<2x16x128xf32> to vector<2x16x1x128xf32>
    %213 = vector.shape_cast %211 : vector<2x8x128xf32> to vector<2x1x8x128xf32>
    %214 = vector.broadcast %212 : vector<2x16x1x128xf32> to vector<2x16x8x128xf32>
    %215 = vector.broadcast %213 : vector<2x1x8x128xf32> to vector<2x16x8x128xf32>
    %216 = arith.mulf %214, %215 : vector<2x16x8x128xf32>
    %217 = vector.shape_cast %216 : vector<2x16x8x128xf32> to vector<256x128xf32>
    %218 = arith.truncf %217 : vector<256x128xf32> to vector<256x128xbf16>
    %cst_62 = arith.constant dense<0.000000e+00> : vector<48x128xf32>
    %219 = tpu.matmul %20, %218, %cst_62 {dimension_numbers = #tpu.dot_dimension_numbers<[1], [0], [0], [1], [0, 0, 1, 1], [], []>} : vector<48x256xbf16>, vector<256x128xbf16>, vector<48x128xf32> -> vector<48x128xf32>
    %220 = arith.truncf %219 : vector<48x128xf32> to vector<48x128xbf16>
    %c240 = arith.constant 240 : index
    %c0_63 = arith.constant 0 : index
    %221 = vector.load %arg14[%c240, %c0_63] : memref<432x128xbf16, #tpu.memory_space<vmem>>, vector<48x128xbf16>
    tpu.vector_store %arg14[%c240, %c0_63], %220 {strides = array<i32>} : memref<432x128xbf16, #tpu.memory_space<vmem>>, vector<48x128xbf16>,
    %222 = vector.extract_strided_slice %27 {offsets = [24, 0], sizes = [2, 128], strides = [1, 1]} : vector<36x128xf32> to vector<2x128xf32>
    %223 = vector.extract_strided_slice %27 {offsets = [26, 0], sizes = [2, 128], strides = [1, 1]} : vector<36x128xf32> to vector<2x128xf32>
    %224 = vector.shape_cast %28 : vector<16x128xf32> to vector<1x16x128xf32>
    %225 = vector.shape_cast %222 : vector<2x128xf32> to vector<2x1x128xf32>
    %226 = vector.broadcast %224 : vector<1x16x128xf32> to vector<2x16x128xf32>
    %227 = vector.broadcast %225 : vector<2x1x128xf32> to vector<2x16x128xf32>
    %228 = arith.subf %226, %227 : vector<2x16x128xf32>
    %229 = math.absf %228 : vector<2x16x128xf32>
    %cst_64 = arith.constant 1.000000e+00 : f32
    %230 = vector.broadcast %cst_64 : f32 to vector<2x16x128xf32>
    %231 = arith.subf %230, %229 : vector<2x16x128xf32>
    %cst_65 = arith.constant 0.000000e+00 : f32
    %232 = vector.broadcast %cst_65 : f32 to vector<2x16x128xf32>
    %233 = arith.maximumf %231, %232 : vector<2x16x128xf32>
    %234 = vector.shape_cast %29 : vector<8x128xf32> to vector<1x8x128xf32>
    %235 = vector.shape_cast %223 : vector<2x128xf32> to vector<2x1x128xf32>
    %236 = vector.broadcast %234 : vector<1x8x128xf32> to vector<2x8x128xf32>
    %237 = vector.broadcast %235 : vector<2x1x128xf32> to vector<2x8x128xf32>
    %238 = arith.subf %236, %237 : vector<2x8x128xf32>
    %239 = math.absf %238 : vector<2x8x128xf32>
    %cst_66 = arith.constant 1.000000e+00 : f32
    %240 = vector.broadcast %cst_66 : f32 to vector<2x8x128xf32>
    %241 = arith.subf %240, %239 : vector<2x8x128xf32>
    %cst_67 = arith.constant 0.000000e+00 : f32
    %242 = vector.broadcast %cst_67 : f32 to vector<2x8x128xf32>
    %243 = arith.maximumf %241, %242 : vector<2x8x128xf32>
    %244 = vector.shape_cast %233 : vector<2x16x128xf32> to vector<2x16x1x128xf32>
    %245 = vector.shape_cast %243 : vector<2x8x128xf32> to vector<2x1x8x128xf32>
    %246 = vector.broadcast %244 : vector<2x16x1x128xf32> to vector<2x16x8x128xf32>
    %247 = vector.broadcast %245 : vector<2x1x8x128xf32> to vector<2x16x8x128xf32>
    %248 = arith.mulf %246, %247 : vector<2x16x8x128xf32>
    %249 = vector.shape_cast %248 : vector<2x16x8x128xf32> to vector<256x128xf32>
    %250 = arith.truncf %249 : vector<256x128xf32> to vector<256x128xbf16>
    %cst_68 = arith.constant dense<0.000000e+00> : vector<48x128xf32>
    %251 = tpu.matmul %20, %250, %cst_68 {dimension_numbers = #tpu.dot_dimension_numbers<[1], [0], [0], [1], [0, 0, 1, 1], [], []>} : vector<48x256xbf16>, vector<256x128xbf16>, vector<48x128xf32> -> vector<48x128xf32>
    %252 = arith.truncf %251 : vector<48x128xf32> to vector<48x128xbf16>
    %c288 = arith.constant 288 : index
    %c0_69 = arith.constant 0 : index
    %253 = vector.load %arg14[%c288, %c0_69] : memref<432x128xbf16, #tpu.memory_space<vmem>>, vector<48x128xbf16>
    tpu.vector_store %arg14[%c288, %c0_69], %252 {strides = array<i32>} : memref<432x128xbf16, #tpu.memory_space<vmem>>, vector<48x128xbf16>,
    %254 = vector.extract_strided_slice %27 {offsets = [28, 0], sizes = [2, 128], strides = [1, 1]} : vector<36x128xf32> to vector<2x128xf32>
    %255 = vector.extract_strided_slice %27 {offsets = [30, 0], sizes = [2, 128], strides = [1, 1]} : vector<36x128xf32> to vector<2x128xf32>
    %256 = vector.shape_cast %28 : vector<16x128xf32> to vector<1x16x128xf32>
    %257 = vector.shape_cast %254 : vector<2x128xf32> to vector<2x1x128xf32>
    %258 = vector.broadcast %256 : vector<1x16x128xf32> to vector<2x16x128xf32>
    %259 = vector.broadcast %257 : vector<2x1x128xf32> to vector<2x16x128xf32>
    %260 = arith.subf %258, %259 : vector<2x16x128xf32>
    %261 = math.absf %260 : vector<2x16x128xf32>
    %cst_70 = arith.constant 1.000000e+00 : f32
    %262 = vector.broadcast %cst_70 : f32 to vector<2x16x128xf32>
    %263 = arith.subf %262, %261 : vector<2x16x128xf32>
    %cst_71 = arith.constant 0.000000e+00 : f32
    %264 = vector.broadcast %cst_71 : f32 to vector<2x16x128xf32>
    %265 = arith.maximumf %263, %264 : vector<2x16x128xf32>
    %266 = vector.shape_cast %29 : vector<8x128xf32> to vector<1x8x128xf32>
    %267 = vector.shape_cast %255 : vector<2x128xf32> to vector<2x1x128xf32>
    %268 = vector.broadcast %266 : vector<1x8x128xf32> to vector<2x8x128xf32>
    %269 = vector.broadcast %267 : vector<2x1x128xf32> to vector<2x8x128xf32>
    %270 = arith.subf %268, %269 : vector<2x8x128xf32>
    %271 = math.absf %270 : vector<2x8x128xf32>
    %cst_72 = arith.constant 1.000000e+00 : f32
    %272 = vector.broadcast %cst_72 : f32 to vector<2x8x128xf32>
    %273 = arith.subf %272, %271 : vector<2x8x128xf32>
    %cst_73 = arith.constant 0.000000e+00 : f32
    %274 = vector.broadcast %cst_73 : f32 to vector<2x8x128xf32>
    %275 = arith.maximumf %273, %274 : vector<2x8x128xf32>
    %276 = vector.shape_cast %265 : vector<2x16x128xf32> to vector<2x16x1x128xf32>
    %277 = vector.shape_cast %275 : vector<2x8x128xf32> to vector<2x1x8x128xf32>
    %278 = vector.broadcast %276 : vector<2x16x1x128xf32> to vector<2x16x8x128xf32>
    %279 = vector.broadcast %277 : vector<2x1x8x128xf32> to vector<2x16x8x128xf32>
    %280 = arith.mulf %278, %279 : vector<2x16x8x128xf32>
    %281 = vector.shape_cast %280 : vector<2x16x8x128xf32> to vector<256x128xf32>
    %282 = arith.truncf %281 : vector<256x128xf32> to vector<256x128xbf16>
    %cst_74 = arith.constant dense<0.000000e+00> : vector<48x128xf32>
    %283 = tpu.matmul %20, %282, %cst_74 {dimension_numbers = #tpu.dot_dimension_numbers<[1], [0], [0], [1], [0, 0, 1, 1], [], []>} : vector<48x256xbf16>, vector<256x128xbf16>, vector<48x128xf32> -> vector<48x128xf32>
    %284 = arith.truncf %283 : vector<48x128xf32> to vector<48x128xbf16>
    %c336 = arith.constant 336 : index
    %c0_75 = arith.constant 0 : index
    %285 = vector.load %arg14[%c336, %c0_75] : memref<432x128xbf16, #tpu.memory_space<vmem>>, vector<48x128xbf16>
    tpu.vector_store %arg14[%c336, %c0_75], %284 {strides = array<i32>} : memref<432x128xbf16, #tpu.memory_space<vmem>>, vector<48x128xbf16>,
    %286 = vector.extract_strided_slice %27 {offsets = [32, 0], sizes = [2, 128], strides = [1, 1]} : vector<36x128xf32> to vector<2x128xf32>
    %287 = vector.extract_strided_slice %27 {offsets = [34, 0], sizes = [2, 128], strides = [1, 1]} : vector<36x128xf32> to vector<2x128xf32>
    %288 = vector.shape_cast %28 : vector<16x128xf32> to vector<1x16x128xf32>
    %289 = vector.shape_cast %286 : vector<2x128xf32> to vector<2x1x128xf32>
    %290 = vector.broadcast %288 : vector<1x16x128xf32> to vector<2x16x128xf32>
    %291 = vector.broadcast %289 : vector<2x1x128xf32> to vector<2x16x128xf32>
    %292 = arith.subf %290, %291 : vector<2x16x128xf32>
    %293 = math.absf %292 : vector<2x16x128xf32>
    %cst_76 = arith.constant 1.000000e+00 : f32
    %294 = vector.broadcast %cst_76 : f32 to vector<2x16x128xf32>
    %295 = arith.subf %294, %293 : vector<2x16x128xf32>
    %cst_77 = arith.constant 0.000000e+00 : f32
    %296 = vector.broadcast %cst_77 : f32 to vector<2x16x128xf32>
    %297 = arith.maximumf %295, %296 : vector<2x16x128xf32>
    %298 = vector.shape_cast %29 : vector<8x128xf32> to vector<1x8x128xf32>
    %299 = vector.shape_cast %287 : vector<2x128xf32> to vector<2x1x128xf32>
    %300 = vector.broadcast %298 : vector<1x8x128xf32> to vector<2x8x128xf32>
    %301 = vector.broadcast %299 : vector<2x1x128xf32> to vector<2x8x128xf32>
    %302 = arith.subf %300, %301 : vector<2x8x128xf32>
    %303 = math.absf %302 : vector<2x8x128xf32>
    %cst_78 = arith.constant 1.000000e+00 : f32
    %304 = vector.broadcast %cst_78 : f32 to vector<2x8x128xf32>
    %305 = arith.subf %304, %303 : vector<2x8x128xf32>
    %cst_79 = arith.constant 0.000000e+00 : f32
    %306 = vector.broadcast %cst_79 : f32 to vector<2x8x128xf32>
    %307 = arith.maximumf %305, %306 : vector<2x8x128xf32>
    %308 = vector.shape_cast %297 : vector<2x16x128xf32> to vector<2x16x1x128xf32>
    %309 = vector.shape_cast %307 : vector<2x8x128xf32> to vector<2x1x8x128xf32>
    %310 = vector.broadcast %308 : vector<2x16x1x128xf32> to vector<2x16x8x128xf32>
    %311 = vector.broadcast %309 : vector<2x1x8x128xf32> to vector<2x16x8x128xf32>
    %312 = arith.mulf %310, %311 : vector<2x16x8x128xf32>
    %313 = vector.shape_cast %312 : vector<2x16x8x128xf32> to vector<256x128xf32>
    %314 = arith.truncf %313 : vector<256x128xf32> to vector<256x128xbf16>
    %cst_80 = arith.constant dense<0.000000e+00> : vector<48x128xf32>
    %315 = tpu.matmul %20, %314, %cst_80 {dimension_numbers = #tpu.dot_dimension_numbers<[1], [0], [0], [1], [0, 0, 1, 1], [], []>} : vector<48x256xbf16>, vector<256x128xbf16>, vector<48x128xf32> -> vector<48x128xf32>
    %316 = arith.truncf %315 : vector<48x128xf32> to vector<48x128xbf16>
    %c384 = arith.constant 384 : index
    %c0_81 = arith.constant 0 : index
    %317 = vector.load %arg14[%c384, %c0_81] : memref<432x128xbf16, #tpu.memory_space<vmem>>, vector<48x128xbf16>
    tpu.vector_store %arg14[%c384, %c0_81], %316 {strides = array<i32>} : memref<432x128xbf16, #tpu.memory_space<vmem>>, vector<48x128xbf16>,
    %c0_82 = arith.constant 0 : index
    %c0_83 = arith.constant 0 : index
    %318 = vector.load %arg12[%c0_82, %c0_83] : memref<36x432xbf16, #tpu.memory_space<vmem>>, vector<36x432xbf16>
    %c0_84 = arith.constant 0 : index
    %c0_85 = arith.constant 0 : index
    %319 = vector.load %arg14[%c0_84, %c0_85] : memref<432x128xbf16, #tpu.memory_space<vmem>>, vector<432x128xbf16>
    %cst_86 = arith.constant dense<0.000000e+00> : vector<36x128xf32>
    %320 = tpu.matmul %318, %319, %cst_86 {dimension_numbers = #tpu.dot_dimension_numbers<[1], [0], [0], [1], [0, 0, 1, 1], [], []>} : vector<36x432xbf16>, vector<432x128xbf16>, vector<36x128xf32> -> vector<36x128xf32>
    %cst_87 = arith.constant 0.000000e+00 : f32
    %321 = vector.broadcast %cst_87 : f32 to vector<36x128xf32>
    %322 = arith.maximumf %320, %321 : vector<36x128xf32>
    %323 = arith.addf %322, %13 : vector<36x128xf32>
    %c0_88 = arith.constant 0 : index
    %c0_89 = arith.constant 0 : index
    %324 = vector.load %arg13[%c0_88, %c0_89] : memref<36x128xf32, #tpu.memory_space<vmem>>, vector<36x128xf32>
    tpu.vector_store %arg13[%c0_88, %c0_89], %323 {strides = array<i32>} : memref<36x128xf32, #tpu.memory_space<vmem>>, vector<36x128xf32>,
    return
  }
  func.func @transform_0(%arg0: i32) -> (i32, i32) {
    %c0_i32 = arith.constant 0 : i32
    %c0_i32_0 = arith.constant 0 : i32
    %c0_i32_1 = arith.constant 0 : i32
    return %c0_i32, %c0_i32_0 : i32, i32
  }
  func.func @transform_1(%arg0: i32) -> (i32, i32) {
    %c0_i32 = arith.constant 0 : i32
    %c0_i32_0 = arith.constant 0 : i32
    %c0_i32_1 = arith.constant 0 : i32
    return %c0_i32, %c0_i32_0 : i32, i32
  }
  func.func @transform_2(%arg0: i32) -> (i32, i32) {
    %c0_i32 = arith.constant 0 : i32
    %c0_i32_0 = arith.constant 0 : i32
    %c0_i32_1 = arith.constant 0 : i32
    return %c0_i32, %c0_i32_0 : i32, i32
  }
  func.func @transform_3(%arg0: i32) -> (i32, i32) {
    %c0_i32 = arith.constant 0 : i32
    %c0_i32_0 = arith.constant 0 : i32
    %c0_i32_1 = arith.constant 0 : i32
    return %c0_i32, %c0_i32_0 : i32, i32
  }
  func.func @transform_4(%arg0: i32) -> (i32, i32) {
    %c0_i32 = arith.constant 0 : i32
    %c0_i32_0 = arith.constant 0 : i32
    %c0_i32_1 = arith.constant 0 : i32
    return %c0_i32, %c0_i32_0 : i32, i32
  }
  func.func @transform_5(%arg0: i32) -> (i32, i32) {
    %c0_i32 = arith.constant 0 : i32
    %c0_i32_0 = arith.constant 0 : i32
    %c0_i32_1 = arith.constant 0 : i32
    return %c0_i32, %c0_i32_0 : i32, i32
  }
  func.func @transform_6(%arg0: i32) -> (i32, i32) {
    %c0_i32 = arith.constant 0 : i32
    %c0_i32_0 = arith.constant 0 : i32
    %c0_i32_1 = arith.constant 0 : i32
    return %c0_i32, %c0_i32_0 : i32, i32
  }
  func.func @transform_7(%arg0: i32) -> (i32, i32) {
    %c0_i32 = arith.constant 0 : i32
    %c0_i32_0 = arith.constant 0 : i32
    %c0_i32_1 = arith.constant 0 : i32
    return %c0_i32, %c0_i32_0 : i32, i32
  }
  func.func @transform_8(%arg0: i32) -> (i32, i32) {
    %c0_i32 = arith.constant 0 : i32
    %c0_i32_0 = arith.constant 0 : i32
    %c0_i32_1 = arith.constant 0 : i32
    return %c0_i32, %c0_i32_0 : i32, i32
  }
  func.func @transform_9(%arg0: i32) -> (i32, i32) {
    %c0_i32 = arith.constant 0 : i32
    %c0_i32_0 = arith.constant 0 : i32
    %c0_i32_1 = arith.constant 0 : i32
    return %c0_i32, %c0_i32_0 : i32, i32
  }
  func.func @transform_10(%arg0: i32) -> (i32, i32) {
    %c0_i32 = arith.constant 0 : i32
    %c0_i32_0 = arith.constant 0 : i32
    %c0_i32_1 = arith.constant 0 : i32
    return %c0_i32, %c0_i32_0 : i32, i32
  }
  func.func @transform_11(%arg0: i32) -> (i32, i32) {
    %c0_i32 = arith.constant 0 : i32
    %c0_i32_0 = arith.constant 0 : i32
    %c0_i32_1 = arith.constant 0 : i32
    return %c0_i32, %c0_i32_0 : i32, i32
  }
  func.func @transform_12(%arg0: i32) -> (i32, i32) {
    %c0_i32 = arith.constant 0 : i32
    %c0_i32_0 = arith.constant 0 : i32
    %c0_i32_1 = arith.constant 0 : i32
    return %c0_i32, %c0_i32_0 : i32, i32
  }
}

</mosaic_0001>

<bundles_post_ra>
// kernel: tpu_custom_call.1
= control target key start
LH: loop header
LB: loop body
LE: loop exit
PB: predicated region body
PF: predicated region fallthrough
CT: control target
= control target key end

     0   :  { %17 = vsyncpa [#allocation4], 0  ;;  %s9856_s0 = inlined_call_operand.hbm [shape: f32[72,128], index: 0, kind: input, shape index: {}]   ;;  %s9857_s1 = inlined_call_operand.hbm [shape: f32[48,64], index: 1, kind: input, shape index: {}]   ;;  %s9858_s2 = inlined_call_operand.hbm [shape: f32[64,256], index: 2, kind: input, shape index: {}]   ;;  %s9859_s3 = inlined_call_operand.hbm [shape: f32[128,128], index: 3, kind: input, shape index: {}]   ;;  %s9860_s4 = inlined_call_operand.hbm [shape: f32[16,128], index: 4, kind: input, shape index: {}]   ;;  %s9861_s5 = inlined_call_operand.vmem [shape: f32[8,128], index: 5, kind: input, shape index: {}]   ;;  %s9862_s6 = inlined_call_operand.hbm [shape: f32[36,128], index: 6, kind: input, shape index: {}]   ;;  %s9863_s7 = inlined_call_operand.hbm [shape: f32[72,72], index: 7, kind: input, shape index: {}]   ;;  %s9864_s8 = inlined_call_operand.hbm [shape: f32[36,72], index: 8, kind: input, shape index: {}]   ;;  %s9865_s9 = inlined_call_operand.hbm [shape: f32[36,36], index: 9, kind: input, shape index: {}]   ;;  %s9866_s10 = inlined_call_operand.hbm [shape: f32[36,48], index: 10, kind: input, shape index: {}]   ;;  %s9867_s11 = inlined_call_operand.hbm [shape: bf16[36,432], index: 11, kind: input, shape index: {}]   ;;  %s9868_s12 = inlined_call_operand.hbm [shape: f32[36,128], index: 12, kind: output, shape index: {}]  }
   0x1   :  { %18 = vsyncpa [#allocation7], 0 }
   0x2   :  { %19 = vsyncpa [#allocation10], 0 }
   0x3   :  { %20 = vsyncpa [#allocation13], 0 }
   0x4   :  { %21 = vsyncpa [#allocation16], 0 }
   0x5   :  { %22 = vsyncpa [#allocation19], 0 }
   0x6   :  { %23 = vsyncpa [#allocation5], 0  ;;  %s7892_s21 = smov [#allocation6]   ;;  %s7893_s23 = smov [#allocation9]  }
   0x7   :  { %s41_s22 = sshll.u32 %s7892_s21, 4  ;;  %s65_s24 = sshll.u32 %s7893_s23, 4  ;;  %s42_s22 = int_to_ptr.vmem [resolvable:$true] %s41_s22  ;;  %s66_s24 = int_to_ptr.vmem [resolvable:$true] %s65_s24 }
   0x8   :  { %s7646_s25 = scalar_lea.vmem %s42_s22, 768  ;;  %p7651_p1 = scmp.lt.s32.totalorder %s42_s22, %s42_s22 }
   0x9   :  { %p7647_p0 = scmp.ne.s32.totalorder %s42_s22, %s7646_s25  ;;  %p7652_p2 = scmp.lt.s32.totalorder %s7646_s25, %s7646_s25 }
   0xb   :  { %p7653_p3 = por %p7652_p2, %p7651_p1 }
   0xd   :  { %p7654_p4 = pnand %p7653_p3, %p7647_p0 }
   0xf   :  { %7657 = shalt.err (!%p7654_p4)
}
  0x10   :  { %s7894_s26 = smov 128   ;;  %s7895_s27 = smov 8  }
  0x11   :  { %47 = dma.hbm_to_vmem [thread:$0]  %s9857_s1, 768, %s42_s22, [#allocation7], %s7894_s26, %s7894_s26, %s7895_s27  }
  0x12   :  { %s7666_s30 = scalar_lea.vmem %s66_s24, 2048  ;;  %p7671_p6 = scmp.lt.s32.totalorder %s66_s24, %s66_s24 }
  0x13   :  { %p7667_p5 = scmp.ne.s32.totalorder %s66_s24, %s7666_s30  ;;  %p7672_p7 = scmp.lt.s32.totalorder %s7666_s30, %s7666_s30 }
  0x15   :  { %p7673_p8 = por %p7672_p7, %p7671_p6 }
  0x17   :  { %p7674_p9 = pnand %p7673_p8, %p7667_p5 }
  0x19   :  { %7677 = shalt.err (!%p7674_p9)
}
  0x1a   :  { %71 = dma.hbm_to_vmem [thread:$0]  %s9859_s3, 2048, %s66_s24, [#allocation10], %s7894_s26, %s7894_s26, %s7895_s27  }
  0x1b   :  { %s7896_s15 = smov [#allocation12]   ;;  %s7897_s17 = smov [#allocation15]  }
  0x1c   :  { %s91_s16 = sshll.u32 %s7896_s15, 4  ;;  %s115_s18 = sshll.u32 %s7897_s17, 4  ;;  %s92_s16 = int_to_ptr.vmem [resolvable:$true] %s91_s16  ;;  %s116_s18 = int_to_ptr.vmem [resolvable:$true] %s115_s18 }
  0x1d   :  { %s7686_s1 = scalar_lea.vmem %s92_s16, 640  ;;  %p7691_p11 = scmp.lt.s32.totalorder %s92_s16, %s92_s16 }
  0x1e   :  { %p7687_p10 = scmp.ne.s32.totalorder %s92_s16, %s7686_s1  ;;  %p7692_p12 = scmp.lt.s32.totalorder %s7686_s1, %s7686_s1 }
  0x20   :  { %p7693_p13 = por %p7692_p12, %p7691_p11 }
  0x22   :  { %p7694_p0 = pnand %p7693_p13, %p7687_p10 }
  0x24   :  { %7697 = shalt.err (!%p7694_p0)
}
  0x25   :  { %97 = dma.hbm_to_vmem [thread:$0]  %s9862_s6, 640, %s92_s16, [#allocation13], %s7894_s26, %s7894_s26, %s7895_s27  }
  0x26   :  { %s7706_s3 = scalar_lea.vmem %s116_s18, 640  ;;  %p7711_p2 = scmp.lt.s32.totalorder %s116_s18, %s116_s18 }
  0x27   :  { %p7707_p1 = scmp.ne.s32.totalorder %s116_s18, %s7706_s3  ;;  %p7712_p3 = scmp.lt.s32.totalorder %s7706_s3, %s7706_s3 }
  0x29   :  { %p7713_p4 = por %p7712_p3, %p7711_p2 }
  0x2b   :  { %p7714_p5 = pnand %p7713_p4, %p7707_p1 }
  0x2d   :  { %7717 = shalt.err (!%p7714_p5)
}
  0x2e   :  { %121 = dma.hbm_to_vmem [thread:$0]  %s9864_s8, 640, %s116_s18, [#allocation16], %s7894_s26, %s7894_s26, %s7895_s27  }
  0x2f   :  { %s7898_s23 = smov [#allocation18]   ;;  %s7899_s25 = smov [#allocation3]  }
  0x30   :  { %s139_s24 = sshll.u32 %s7898_s23, 4  ;;  %s29_s28 = sshll.u32 %s7899_s25, 4  ;;  %s140_s24 = int_to_ptr.vmem [resolvable:$true] %s139_s24  ;;  %s30_s28 = int_to_ptr.vmem [resolvable:$true] %s29_s28 }
  0x31   :  { %s7726_s6 = scalar_lea.vmem %s140_s24, 640  ;;  %p7731_p7 = scmp.lt.s32.totalorder %s140_s24, %s140_s24 }
  0x32   :  { %p7727_p6 = scmp.ne.s32.totalorder %s140_s24, %s7726_s6  ;;  %p7732_p8 = scmp.lt.s32.totalorder %s7726_s6, %s7726_s6 }
  0x34   :  { %p7733_p9 = por %p7732_p8, %p7731_p7 }
  0x36   :  { %p7734_p10 = pnand %p7733_p9, %p7727_p6 }
  0x38   :  { %7737 = shalt.err (!%p7734_p10)
}
  0x39   :  { %145 = dma.hbm_to_vmem [thread:$0]  %s9866_s10, 640, %s140_s24, [#allocation19], %s7894_s26, %s7894_s26, %s7895_s27  }
  0x3a   :  { %s7746_s8 = scalar_lea.vmem %s30_s28, 1152  ;;  %p7751_p12 = scmp.lt.s32.totalorder %s30_s28, %s30_s28 }
  0x3b   :  { %p7747_p11 = scmp.ne.s32.totalorder %s30_s28, %s7746_s8  ;;  %p7752_p13 = scmp.lt.s32.totalorder %s7746_s8, %s7746_s8 }
  0x3d   :  { %p7753_p0 = por %p7752_p13, %p7751_p12 }
  0x3f   :  { %p7754_p1 = pnand %p7753_p0, %p7747_p11 }
  0x41   :  { %7757 = shalt.err (!%p7754_p1)
}
  0x42   :  { %35 = dma.hbm_to_vmem [thread:$0]  %s9856_s0, 1152, %s30_s28, [#allocation4], %s7894_s26, %s7894_s26, %s7895_s27  }
  0x43   :  { %s7900_s15 = smov [#allocation8]  }
  0x44   :  { %s53_s16 = sshll.u32 %s7900_s15, 4  ;;  %s54_s16 = int_to_ptr.vmem [resolvable:$true] %s53_s16 }
  0x45   :  { %s7766_s17 = scalar_lea.vmem %s54_s16, 2048  ;;  %p7771_p3 = scmp.lt.s32.totalorder %s54_s16, %s54_s16 }
  0x46   :  { %p7767_p2 = scmp.ne.s32.totalorder %s54_s16, %s7766_s17  ;;  %p7772_p4 = scmp.lt.s32.totalorder %s7766_s17, %s7766_s17 }
  0x48   :  { %p7773_p5 = por %p7772_p4, %p7771_p3 }
  0x4a   :  { %p7774_p6 = pnand %p7773_p5, %p7767_p2 }
  0x4c   :  { %7777 = shalt.err (!%p7774_p6)
}
  0x4d   :  { %s7901_s10 = smov 256   ;;  %s7902_s18 = smov 16  }
  0x4e   :  { %59 = dma.hbm_to_vmem [thread:$0]  %s9858_s2, 2048, %s54_s16, [#allocation7], %s7901_s10, %s7901_s10, %s7902_s18  }
  0x4f   :  { %s7903_s0 = smov [#allocation11]   ;;  %s7904_s3 = smov [#allocation14]  }
  0x50   :  { %s77_s20 = sshll.u32 %s7903_s0, 4  ;;  %s103_s21 = sshll.u32 %s7904_s3, 4  ;;  %s78_s20 = int_to_ptr.vmem [resolvable:$true] %s77_s20  ;;  %s104_s21 = int_to_ptr.vmem [resolvable:$true] %s103_s21 }
  0x51   :  { %s7786_s22 = scalar_lea.vmem %s78_s20, 256  ;;  %p7791_p8 = scmp.lt.s32.totalorder %s78_s20, %s78_s20 }
  0x52   :  { %p7787_p7 = scmp.ne.s32.totalorder %s78_s20, %s7786_s22  ;;  %p7792_p9 = scmp.lt.s32.totalorder %s7786_s22, %s7786_s22 }
  0x54   :  { %p7793_p10 = por %p7792_p9, %p7791_p8 }
  0x56   :  { %p7794_p11 = pnand %p7793_p10, %p7787_p7 }
  0x58   :  { %7797 = shalt.err (!%p7794_p11)
}
  0x59   :  { %83 = dma.hbm_to_vmem [thread:$0]  %s9860_s4, 256, %s78_s20, [#allocation10], %s7894_s26, %s7894_s26, %s7895_s27  }
  0x5a   :  { %s7806_s2 = scalar_lea.vmem %s104_s21, 1152  ;;  %p7811_p13 = scmp.lt.s32.totalorder %s104_s21, %s104_s21 }
  0x5b   :  { %p7807_p12 = scmp.ne.s32.totalorder %s104_s21, %s7806_s2  ;;  %p7812_p0 = scmp.lt.s32.totalorder %s7806_s2, %s7806_s2 }
  0x5d   :  { %p7813_p1 = por %p7812_p0, %p7811_p13 }
  0x5f   :  { %p7814_p2 = pnand %p7813_p1, %p7807_p12 }
  0x61   :  { %7817 = shalt.err (!%p7814_p2)
}
  0x62   :  { %109 = dma.hbm_to_vmem [thread:$0]  %s9863_s7, 1152, %s104_s21, [#allocation13], %s7894_s26, %s7894_s26, %s7895_s27  }
  0x63   :  { %s7905_s6 = smov [#allocation17]   ;;  %s7906_s30 = smov [#allocation20]  }
  0x64   :  { %s127_s29 = sshll.u32 %s7905_s6, 4  ;;  %s151_s4 = sshll.u32 %s7906_s30, 4  ;;  %s128_s29 = int_to_ptr.vmem [resolvable:$true] %s127_s29  ;;  %s152_s4 = int_to_ptr.vmem [resolvable:$true] %s151_s4 }
  0x65   :  { %s7826_s8 = scalar_lea.vmem %s128_s29, 640  ;;  %p7831_p4 = scmp.lt.s32.totalorder %s128_s29, %s128_s29 }
  0x66   :  { %p7827_p3 = scmp.ne.s32.totalorder %s128_s29, %s7826_s8  ;;  %p7832_p5 = scmp.lt.s32.totalorder %s7826_s8, %s7826_s8 }
  0x68   :  { %p7833_p6 = por %p7832_p5, %p7831_p4 }
  0x6a   :  { %p7834_p7 = pnand %p7833_p6, %p7827_p3 }
  0x6c   :  { %7837 = shalt.err (!%p7834_p7)
}
  0x6d   :  { %133 = dma.hbm_to_vmem [thread:$0]  %s9865_s9, 640, %s128_s29, [#allocation16], %s7894_s26, %s7894_s26, %s7895_s27  }
  0x6e   :  { %s7846_s7 = scalar_lea.vmem %s152_s4, 1280  ;;  %p7851_p9 = scmp.lt.s32.totalorder %s152_s4, %s152_s4 }
  0x6f   :  { %p7847_p8 = scmp.ne.s32.totalorder %s152_s4, %s7846_s7  ;;  %p7852_p10 = scmp.lt.s32.totalorder %s7846_s7, %s7846_s7 }
  0x71   :  { %p7853_p11 = por %p7852_p10, %p7851_p9 }
  0x73   :  { %p7854_p12 = pnand %p7853_p11, %p7847_p8 }
  0x75   :  { %7857 = shalt.err (!%p7854_p12)
}
  0x76   :  { %157 = dma.hbm_to_vmem [thread:$0]  %s9867_s11, 1280, %s152_s4, [#allocation19], %s7901_s10, %s7901_s10, %s7902_s18  }
  0x77   :  { %7878 = dma.done.wait [#allocation4], 1152  }
  0x78   :  { %7879 = vsyncadd [#allocation4], 4294966144 }
  0x79   :  { %7880 = dma.done.wait [#allocation7], 2816  }
  0x7a   :  { %7881 = vsyncadd [#allocation7], 4294964480 }
  0x7b   :  { %7882 = dma.done.wait [#allocation10], 2304  }
  0x7c   :  { %7883 = vsyncadd [#allocation10], 4294964992 }
  0x7d   :  { %7884 = dma.done.wait [#allocation13], 1792  }
  0x7e   :  { %7885 = vsyncadd [#allocation13], 4294965504 }
  0x7f   :  { %7886 = dma.done.wait [#allocation16], 1280  }
  0x80   :  { %7887 = vsyncadd [#allocation16], 4294966016 }
  0x81   :  { %7888 = dma.done.wait [#allocation19], 1920  }
  0x82   :  { %7889 = vsyncadd [#allocation19], 4294965376  ;;  %v7907_v0 = vmov 0.0   ;;  %vm7908_vm0 = vmmov 0   ;;  %v216_v1 = vld [vmem:[#allocation9 + $0x78] sm:$0xff]  ;;  %v215_v2 = vld [vmem:[#allocation9 + $0x70] sm:$0xff] }
  0x83   :  { %7329 = vmatprep.subr.mxu0 %v7907_v0  ;;  %7361 = vmatprep.mubr.msk.f32.mxu0 %vm7908_vm0, %v7907_v0  ;;  %v214_v3 = vld [vmem:[#allocation9 + $0x68] sm:$0xff]  ;;  %v213_v4 = vld [vmem:[#allocation9 + $0x60] sm:$0xff]  ;;  %v212_v5 = vld [vmem:[#allocation9 + $0x58] sm:$0xff]  ;;  %vm336_vm1 = vcmask 588800   ;;  %vm678_vm2 = vcmask 523264   ;;  %vm820_vm3 = vcmask 392192  }
  0x84   :  { %7518 = vmatprep.subr.mxu1 %v7907_v0  ;;  %7418 = vmatprep.mubr.msk.f32.mxu1 %vm7908_vm0, %v7907_v0  ;;  %v211_v6 = vld [vmem:[#allocation9 + $0x50] sm:$0xff]  ;;  %v210_v7 = vld [vmem:[#allocation9 + $0x48] sm:$0xff]  ;;  %v209_v8 = vld [vmem:[#allocation9 + $0x40] sm:$0xff]  ;;  %vm942_vm4 = vcmask 1043456   ;;  %vm926_vm5 = vcmask 293888  }
  0x85   :  { %7330 = vmatpush3.msra.mxu0 %v216_v1  ;;  %v208_v9 = vld [vmem:[#allocation9 + $0x38] sm:$0xff]  ;;  %v207_v10 = vld [vmem:[#allocation9 + $0x30] sm:$0xff]  ;;  %v206_v11 = vld [vmem:[#allocation9 + $0x28] sm:$0xff] }
  0x86   :  { %7331 = vmatprep.subr.mxu0 %v7907_v0  ;;  %v205_v12 = vld [vmem:[#allocation9 + $0x20] sm:$0xff]  ;;  %v204_v13 = vld [vmem:[#allocation9 + $0x18] sm:$0xff]  ;;  %v203_v14 = vld [vmem:[#allocation9 + $0x10] sm:$0xff] }
  0x87   :  { %7332 = vmatpush3.msra.mxu0 %v215_v2  ;;  %v202_v15 = vld [vmem:[#allocation9 + $0x8] sm:$0xff]  ;;  %v201_v16 = vld [vmem:[#allocation9] sm:$0xff]  ;;  %v8070_v18 = vld [vmem:[#allocation3 + $0x8] sm:$0xff] }
  0x88   :  { %7333 = vmatprep.subr.mxu0 %v7907_v0  ;;  %v8063_v17 = vld [vmem:[#allocation3] sm:$0xff]  ;;  %v8075_v19 = vld [vmem:[#allocation3 + $0x10] sm:$0xff]  ;;  %v8080_v20 = vld [vmem:[#allocation3 + $0x18] sm:$0xff] }
  0x89   :  { %7334 = vmatpush3.msra.mxu0 %v214_v3  ;;  %v8085_v21 = vld [vmem:[#allocation3 + $0x20] sm:$0xff]  ;;  %v8090_v22 = vld [vmem:[#allocation3 + $0x28] sm:$0xff]  ;;  %v8095_v23 = vld [vmem:[#allocation3 + $0x30] sm:$0xff] }
  0x8a   :  { %7335 = vmatprep.subr.mxu0 %v7907_v0  ;;  %v8100_v24 = vld [vmem:[#allocation3 + $0x38] sm:$0xff]  ;;  %v8105_v25 = vld [vmem:[#allocation3 + $0x40] sm:$0xff]  ;;  %v331_v44 = vld [vmem:[#allocation14 + $0x20] sm:$0xff] }
  0x8b   :  { %7336 = vmatpush3.msra.mxu0 %v213_v4  ;;  %v327_v45 = vld [vmem:[#allocation14] sm:$0xff]  ;;  %v332_v46 = vld [vmem:[#allocation14 + $0x28] sm:$0xff]  ;;  %v333_v48 = vld [vmem:[#allocation14 + $0x30] sm:$0xff] }
  0x8c   :  { %7337 = vmatprep.subr.mxu0 %v7907_v0  ;;  %v328_v47 = vld [vmem:[#allocation14 + $0x8] sm:$0xff]  ;;  %v329_v49 = vld [vmem:[#allocation14 + $0x10] sm:$0xff]  ;;  %v334_v50 = vld [vmem:[#allocation14 + $0x38] sm:$0xff] }
  0x8d   :  { %7338 = vmatpush3.msra.mxu0 %v212_v5  ;;  %v330_v51 = vld [vmem:[#allocation14 + $0x18] sm:$0xff]  ;;  %v335_v52 = vld [vmem:[#allocation14 + $0x40] sm:$0xff]  ;;  %v675_v55 = vld [vmem:[#allocation8 + $0x68] sm:$0xff] }
  0x8e   :  { %7339 = vmatprep.subr.mxu0 %v7907_v0  ;;  %v677_v53 = vld [vmem:[#allocation8 + $0x78] sm:$0xff]  ;;  %v676_v54 = vld [vmem:[#allocation8 + $0x70] sm:$0xff]  ;;  %v674_v56 = vld [vmem:[#allocation8 + $0x60] sm:$0xff] }
  0x8f   :  { %7340 = vmatpush3.msra.mxu0 %v211_v6  ;;  %v673_v57 = vld [vmem:[#allocation8 + $0x58] sm:$0xff]  ;;  %v672_v58 = vld [vmem:[#allocation8 + $0x50] sm:$0xff]  ;;  %v671_v59 = vld [vmem:[#allocation8 + $0x48] sm:$0xff] }
  0x90   :  { %7341 = vmatprep.subr.mxu0 %v7907_v0  ;;  %v670_v60 = vld [vmem:[#allocation8 + $0x40] sm:$0xff]  ;;  %v669_v61 = vld [vmem:[#allocation8 + $0x38] sm:$0xff]  ;;  %v668_v62 = vld [vmem:[#allocation8 + $0x30] sm:$0xff] }
  0x91   :  { %7342 = vmatpush3.msra.mxu0 %v210_v7  ;;  %v667_v63 = vld [vmem:[#allocation8 + $0x28] sm:$0xff]  ;;  %v666_v1 = vld [vmem:[#allocation8 + $0x20] sm:$0xff]  ;;  %v665_v2 = vld [vmem:[#allocation8 + $0x18] sm:$0xff] }
  0x92   :  { %7343 = vmatprep.subr.mxu0 %v7907_v0  ;;  %v664_v3 = vld [vmem:[#allocation8 + $0x10] sm:$0xff]  ;;  %v663_v4 = vld [vmem:[#allocation8 + $0x8] sm:$0xff]  ;;  %v662_v5 = vld [vmem:[#allocation8] sm:$0xff] }
  0x93   :  { %7344 = vmatpush3.msra.mxu0 %v209_v8  ;;  %v656_v6 = vld [vmem:[#allocation6] sm:$0xff]  ;;  %v657_v7 = vld [vmem:[#allocation6 + $0x8] sm:$0xff]  ;;  %v658_v8 = vld [vmem:[#allocation6 + $0x10] sm:$0xff] }
  0x94   :  { %7345 = vmatprep.subr.mxu0 %v7907_v0 }
  0x95   :  { %7346 = vmatpush3.msra.mxu0 %v208_v9  ;;  %v659_v9 = vld [vmem:[#allocation6 + $0x18] sm:$0xff] }
  0x96   :  { %7347 = vmatprep.subr.mxu0 %v7907_v0 }
  0x97   :  { %7348 = vmatpush3.msra.mxu0 %v207_v10  ;;  %v660_v10 = vld [vmem:[#allocation6 + $0x20] sm:$0xff] }
  0x98   :  { %7349 = vmatprep.subr.mxu0 %v7907_v0 }
  0x99   :  { %7350 = vmatpush3.msra.mxu0 %v206_v11  ;;  %v661_v11 = vld [vmem:[#allocation6 + $0x28] sm:$0xff] }
  0x9a   :  { %7351 = vmatprep.subr.mxu0 %v7907_v0 }
  0x9b   :  { %7352 = vmatpush3.msra.mxu0 %v205_v12 }
  0x9c   :  { %7353 = vmatprep.subr.mxu0 %v7907_v0 }
  0x9d   :  { %7354 = vmatpush3.msra.mxu0 %v204_v13 }
  0x9e   :  { %7355 = vmatprep.subr.mxu0 %v7907_v0 }
  0x9f   :  { %7356 = vmatpush3.msra.mxu0 %v203_v14 }
  0xa0   :  { %7357 = vmatprep.subr.mxu0 %v7907_v0 }
  0xa1   :  { %7358 = vmatpush3.msra.mxu0 %v202_v15 }
  0xa2   :  { %7359 = vmatprep.subr.mxu0 %v7907_v0 }
  0xa3   :  { %7360 = vmatpush3.msra.mxu0 %v201_v16 }
  0xa4   :  { %7362 = vmatmul.mubr.f32.vlgmr.msra.gmra.mxu0 %v8063_v17  ;;  %7388 = vmatprep.subr.mxu0 %v7907_v0 }
  0xa5   :  { %7364 = vmatprep.mubr.msk.f32.mxu0 %vm7908_vm0, %v7907_v0 }
  0xa8   :  { %7365 = vmatmul.mubr.f32.gmra.mxu0 %v8070_v18 }
  0xa9   :  { %7367 = vmatprep.mubr.msk.f32.mxu0 %vm7908_vm0, %v7907_v0 }
  0xac   :  { %7368 = vmatmul.mubr.f32.gmra.mxu0 %v8075_v19 }
  0xad   :  { %7370 = vmatprep.mubr.msk.f32.mxu0 %vm7908_vm0, %v7907_v0 }
  0xb0   :  { %7371 = vmatmul.mubr.f32.gmra.mxu0 %v8080_v20 }
  0xb1   :  { %7373 = vmatprep.mubr.msk.f32.mxu0 %vm7908_vm0, %v7907_v0 }
  0xb4   :  { %7374 = vmatmul.mubr.f32.gmra.mxu0 %v8085_v21 }
  0xb5   :  { %7376 = vmatprep.mubr.msk.f32.mxu0 %vm7908_vm0, %v7907_v0 }
  0xb8   :  { %7377 = vmatmul.mubr.f32.gmra.mxu0 %v8090_v22 }
  0xb9   :  { %7379 = vmatprep.mubr.msk.f32.mxu0 %vm7908_vm0, %v7907_v0 }
  0xbc   :  { %7380 = vmatmul.mubr.f32.gmra.mxu0 %v8095_v23 }
  0xbd   :  { %7382 = vmatprep.mubr.msk.f32.mxu0 %vm7908_vm0, %v7907_v0 }
  0xc0   :  { %7383 = vmatmul.mubr.f32.gmra.mxu0 %v8100_v24 }
  0xc1   :  { %7385 = vmatprep.mubr.msk.f32.mxu0 %vm7908_vm0, %v7907_v0 }
  0xc4   :  { %7386 = vmatmul.mubr.f32.gmra.mxu0 %v8105_v25 }
  0xc5   :  { %7406 = vmatprep.mubr.msk.f32.mxu0 %vm7908_vm0, %v7907_v0 }
 0x164   :  { %v283_v26 = vpop.f32.mrf.mxu0 }
 0x166   :  { %v7363_v27 = vpop.f32.mrf.mxu0 }
 0x168   :  { %v288_v28 = vpop.f32.mrf.mxu0 }
 0x16a   :  { %v7366_v29 = vpop.f32.mrf.mxu0 }
 0x16c   :  { %v293_v30 = vpop.f32.mrf.mxu0 }
 0x16e   :  { %v7369_v31 = vpop.f32.mrf.mxu0 }
 0x170   :  { %v298_v32 = vpop.f32.mrf.mxu0 }
 0x172   :  { %v7372_v33 = vpop.f32.mrf.mxu0 }
 0x174   :  { %v303_v34 = vpop.f32.mrf.mxu0 }
 0x176   :  { %v7375_v35 = vpop.f32.mrf.mxu0 }
 0x178   :  { %v308_v36 = vpop.f32.mrf.mxu0 }
 0x17a   :  { %v7378_v37 = vpop.f32.mrf.mxu0 }
 0x17c   :  { %v313_v38 = vpop.f32.mrf.mxu0 }
 0x17e   :  { %v7381_v39 = vpop.f32.mrf.mxu0 }
 0x180   :  { %v318_v40 = vpop.f32.mrf.mxu0 }
 0x182   :  { %v7384_v41 = vpop.f32.mrf.mxu0 }
 0x184   :  { %v323_v42 = vpop.f32.mrf.mxu0 }
 0x185   :  { %7389 = vmatpush3.msra.mxu0 %v323_v42  ;;  %7527 = vmatpush3.msra.mxu1 %v323_v42 }
 0x186   :  { %v7387_v43 = vpop.f32.mrf.mxu0  ;;  %7390 = vmatprep.subr.mxu0 %v7907_v0  ;;  %7519 = vmatprep.subr.mxu1 %v7907_v0 }
 0x187   :  { %7391 = vmatpush3.msra.mxu0 %v318_v40  ;;  %7528 = vmatpush3.msra.mxu1 %v318_v40 }
 0x188   :  { %7392 = vmatprep.subr.mxu0 %v7907_v0  ;;  %7520 = vmatprep.subr.mxu1 %v7907_v0 }
 0x189   :  { %7393 = vmatpush3.msra.mxu0 %v313_v38  ;;  %7529 = vmatpush3.msra.mxu1 %v313_v38 }
 0x18a   :  { %7394 = vmatprep.subr.mxu0 %v7907_v0  ;;  %7521 = vmatprep.subr.mxu1 %v7907_v0 }
 0x18b   :  { %7395 = vmatpush3.msra.mxu0 %v308_v36  ;;  %7530 = vmatpush3.msra.mxu1 %v308_v36 }
 0x18c   :  { %7396 = vmatprep.subr.mxu0 %v7907_v0  ;;  %7522 = vmatprep.subr.mxu1 %v7907_v0 }
 0x18d   :  { %7397 = vmatpush3.msra.mxu0 %v303_v34  ;;  %7531 = vmatpush3.msra.mxu1 %v303_v34 }
 0x18e   :  { %7398 = vmatprep.subr.mxu0 %v7907_v0  ;;  %7523 = vmatprep.subr.mxu1 %v7907_v0 }
 0x18f   :  { %7399 = vmatpush3.msra.mxu0 %v298_v32  ;;  %7532 = vmatpush3.msra.mxu1 %v298_v32 }
 0x190   :  { %7400 = vmatprep.subr.mxu0 %v7907_v0  ;;  %7524 = vmatprep.subr.mxu1 %v7907_v0 }
 0x191   :  { %7401 = vmatpush3.msra.mxu0 %v293_v30  ;;  %7533 = vmatpush3.msra.mxu1 %v293_v30 }
 0x192   :  { %7402 = vmatprep.subr.mxu0 %v7907_v0  ;;  %7525 = vmatprep.subr.mxu1 %v7907_v0 }
 0x193   :  { %7403 = vmatpush3.msra.mxu0 %v288_v28  ;;  %7534 = vmatpush3.msra.mxu1 %v288_v28 }
 0x194   :  { %7404 = vmatprep.subr.mxu0 %v7907_v0  ;;  %7526 = vmatprep.subr.mxu1 %v7907_v0 }
 0x195   :  { %7405 = vmatpush3.msra.mxu0 %v283_v26  ;;  %7535 = vmatpush3.msra.mxu1 %v283_v26 }
 0x196   :  { %7419 = vmatmul.mubr.msk.f32.vlgmr.msra.gmra.mxu1 %vm336_vm1, %v331_v44  ;;  %7407 = vmatmul.mubr.msk.f32.vlgmr.msra.gmra.mxu0 %vm336_vm1, %v327_v45 }
 0x197   :  { %7421 = vmatprep.mubr.msk.f32.mxu1 %vm7908_vm0, %v7907_v0  ;;  %7409 = vmatprep.mubr.msk.f32.mxu0 %vm7908_vm0, %v7907_v0 }
 0x198   :  { %7433 = vmatprep.subr.mxu1 %v7907_v0  ;;  %713 = vmatprep.subr.mxu0 %v677_v53 }
 0x199   :  { %714 = vmatpush1.msra.mxu0 %v676_v54 }
 0x19a   :  { %7422 = vmatmul.mubr.msk.f32.gmra.mxu1 %vm336_vm1, %v332_v46  ;;  %7410 = vmatmul.mubr.msk.f32.gmra.mxu0 %vm336_vm1, %v328_v47 }
 0x19b   :  { %7424 = vmatprep.mubr.msk.f32.mxu1 %vm7908_vm0, %v7907_v0  ;;  %7412 = vmatprep.mubr.msk.f32.mxu0 %vm7908_vm0, %v7907_v0 }
 0x19c   :  { %715 = vmatprep.subr.mxu0 %v675_v55 }
 0x19d   :  { %716 = vmatpush1.msra.mxu0 %v674_v56 }
 0x19e   :  { %7425 = vmatmul.mubr.msk.f32.gmra.mxu1 %vm336_vm1, %v333_v48  ;;  %7413 = vmatmul.mubr.msk.f32.gmra.mxu0 %vm336_vm1, %v329_v49 }
 0x19f   :  { %7427 = vmatprep.mubr.msk.f32.mxu1 %vm7908_vm0, %v7907_v0  ;;  %7415 = vmatprep.mubr.msk.f32.mxu0 %vm7908_vm0, %v7907_v0 }
 0x1a0   :  { %717 = vmatprep.subr.mxu0 %v673_v57 }
 0x1a1   :  { %718 = vmatpush1.msra.mxu0 %v672_v58 }
 0x1a2   :  { %7428 = vmatmul.mubr.msk.f32.gmra.mxu1 %vm336_vm1, %v334_v50  ;;  %7416 = vmatmul.mubr.msk.f32.gmra.mxu0 %vm336_vm1, %v330_v51 }
 0x1a3   :  { %7430 = vmatprep.mubr.msk.f32.mxu1 %vm7908_vm0, %v7907_v0  ;;  %761 = vmatprep.mubr.f32.mxu0 %v7907_v0 }
 0x1a4   :  { %719 = vmatprep.subr.mxu0 %v671_v59 }
 0x1a5   :  { %720 = vmatpush1.msra.mxu0 %v670_v60 }
 0x1a6   :  { %7431 = vmatmul.mubr.msk.f32.gmra.mxu1 %vm336_vm1, %v335_v52  ;;  %721 = vmatprep.subr.mxu0 %v669_v61 }
 0x1a7   :  { %7451 = vmatprep.mubr.msk.f32.mxu1 %vm7908_vm0, %v7907_v0  ;;  %722 = vmatpush1.msra.mxu0 %v668_v62 }
 0x1a8   :  { %723 = vmatprep.subr.mxu0 %v667_v63 }
 0x1a9   :  { %724 = vmatpush1.msra.mxu0 %v666_v1 }
 0x1aa   :  { %725 = vmatprep.subr.mxu0 %v665_v2 }
 0x1ab   :  { %726 = vmatpush1.msra.mxu0 %v664_v3 }
 0x1ac   :  { %727 = vmatprep.subr.mxu0 %v663_v4 }
 0x1ad   :  { %728 = vmatpush1.msra.mxu0 %v662_v5 }
 0x1ae   :  { %7493 = vmatprep.subr.mxu0 %v7907_v0  ;;  %6583 = vmatmul.mubr.msk.f32.vlgmr.msra.gmra.mxu0 %vm678_vm2, %v656_v6 }
 0x1af   :  { %767 = vmatprep.mubr.f32.mxu0 %v7907_v0 }
 0x1b2   :  { %6584 = vmatmul.mubr.msk.f32.gmra.mxu0 %vm678_vm2, %v657_v7 }
 0x1b3   :  { %773 = vmatprep.mubr.f32.mxu0 %v7907_v0 }
 0x1b6   :  { %6585 = vmatmul.mubr.msk.f32.gmra.mxu0 %vm678_vm2, %v658_v8 }
 0x1b7   :  { %779 = vmatprep.mubr.f32.mxu0 %v7907_v0 }
 0x1ba   :  { %6586 = vmatmul.mubr.msk.f32.gmra.mxu0 %vm678_vm2, %v659_v9 }
 0x1bb   :  { %785 = vmatprep.mubr.f32.mxu0 %v7907_v0 }
 0x1be   :  { %6587 = vmatmul.mubr.msk.f32.gmra.mxu0 %vm678_vm2, %v660_v10 }
 0x1bf   :  { %791 = vmatprep.mubr.f32.mxu0 %v7907_v0 }
 0x1c2   :  { %6588 = vmatmul.mubr.msk.f32.gmra.mxu0 %vm678_vm2, %v661_v11 }
 0x1c3   :  { %7503 = vmatprep.mubr.msk.f32.mxu0 %vm7908_vm0, %v7907_v0 }
 0x256   :  { %v450_v12 = vpop.f32.mrf.mxu1  ;;  %v430_v13 = vpop.f32.mrf.mxu0 }
 0x257   :  { %v6573_v37 = vmul.f32 -1.442695, %v450_v12  ;;  %v6569_v47 = vmul.f32 -1.442695, %v430_v13 }
 0x258   :  { %v7420_v14 = vpop.f32.mrf.mxu1  ;;  %v7408_v15 = vpop.f32.mrf.mxu0 }
 0x25a   :  { %v455_v16 = vpop.f32.mrf.mxu1  ;;  %v435_v26 = vpop.f32.mrf.mxu0 }
 0x25b   :  { %v6574_v40 = vmul.f32 -1.442695, %v455_v16  ;;  %v6570_v46 = vmul.f32 -1.442695, %v435_v26 }
 0x25c   :  { %v7423_v27 = vpop.f32.mrf.mxu1  ;;  %v7411_v28 = vpop.f32.mrf.mxu0 }
 0x25e   :  { %v460_v29 = vpop.f32.mrf.mxu1  ;;  %v440_v30 = vpop.f32.mrf.mxu0 }
 0x25f   :  { %v6575_v33 = vmul.f32 -1.442695, %v460_v29  ;;  %v6571_v45 = vmul.f32 -1.442695, %v440_v30 }
 0x260   :  { %v7426_v31 = vpop.f32.mrf.mxu1  ;;  %v7414_v32 = vpop.f32.mrf.mxu0 }
 0x262   :  { %v465_v34 = vpop.f32.mrf.mxu1  ;;  %v445_v35 = vpop.f32.mrf.mxu0 }
 0x263   :  { %v6576_v36 = vmul.f32 -1.442695, %v465_v34  ;;  %v6572_v42 = vmul.f32 -1.442695, %v445_v35  ;;  %v548_v34 = vld [vmem:[#allocation15 + $0x10] sm:$0xff] }
 0x264   :  { %v7429_v38 = vpop.f32.mrf.mxu1  ;;  %v7417_v39 = vpop.f32.mrf.mxu0 }
 0x265   :  { %7599 = vpow2.f32 %v6576_v36  ;;  %v549_v36 = vld [vmem:[#allocation15 + $0x18] sm:$0xff] }
 0x266   :  { %7601 = vpow2.f32 %v6575_v33  ;;  %v470_v41 = vpop.f32.mrf.mxu1  ;;  %v546_v33 = vld [vmem:[#allocation15] sm:$0xff] }
 0x267   :  { %v6577_v43 = vmul.f32 -1.442695, %v470_v41  ;;  %7603 = vpow2.f32 %v6573_v37 }
 0x268   :  { %v7432_v44 = vpop.f32.mrf.mxu1  ;;  %7605 = vpow2.f32 %v6574_v40  ;;  %v550_v40 = vld [vmem:[#allocation15 + $0x20] sm:$0xf] }
 0x269   :  { %7607 = vpow2.f32 %v6572_v42 }
 0x26a   :  { %7609 = vpow2.f32 %v6577_v43 }
 0x26b   :  { %7611 = vpow2.f32 %v6571_v45 }
 0x26c   :  { %7613 = vpow2.f32 %v6570_v46 }
 0x26d   :  { %7615 = vpow2.f32 %v6569_v47 }
 0x272   :  { %v7600_v48 = vpop.eup %7599 }
 0x273   :  { %v7602_v49 = vpop.eup %7601  ;;  %v508_v51 = vadd.f32 1.0, %v7600_v48 }
 0x274   :  { %v7604_v50 = vpop.eup %7603  ;;  %v507_v53 = vadd.f32 1.0, %v7602_v49 }
 0x275   :  { %v7606_v52 = vpop.eup %7605  ;;  %7617 = vrcp.f32 %v508_v51  ;;  %v505_v58 = vadd.f32 1.0, %v7604_v50 }
 0x276   :  { %v7608_v54 = vpop.eup %7607  ;;  %v506_v56 = vadd.f32 1.0, %v7606_v52  ;;  %7619 = vrcp.f32 %v507_v53 }
 0x277   :  { %v7610_v55 = vpop.eup %7609  ;;  %v504_v59 = vadd.f32 1.0, %v7608_v54 }
 0x278   :  { %v509_v57 = vadd.f32 1.0, %v7610_v55  ;;  %v7612_v60 = vpop.eup %7611 }
 0x279   :  { %v7614_v61 = vpop.eup %7613  ;;  %v503_v62 = vadd.f32 1.0, %v7612_v60  ;;  %v818_v60 = vld [vmem:[#allocation18 + $0x18] sm:$0xff] }
 0x27a   :  { %7621 = vrcp.f32 %v509_v57  ;;  %v7616_v63 = vpop.eup %7615  ;;  %v502_v1 = vadd.f32 1.0, %v7614_v61  ;;  %v815_v57 = vld [vmem:[#allocation18] sm:$0xff] }
 0x27b   :  { %7623 = vrcp.f32 %v506_v56  ;;  %v501_v2 = vadd.f32 1.0, %v7616_v63 }
 0x27c   :  { %7625 = vrcp.f32 %v505_v58  ;;  %v816_v58 = vld [vmem:[#allocation18 + $0x8] sm:$0xff] }
 0x27d   :  { %7627 = vrcp.f32 %v504_v59  ;;  %v817_v59 = vld [vmem:[#allocation18 + $0x10] sm:$0xff] }
 0x27e   :  { %7629 = vrcp.f32 %v503_v62  ;;  %v819_v62 = vld [vmem:[#allocation18 + $0x20] sm:$0xf] }
 0x27f   :  { %7631 = vrcp.f32 %v502_v1 }
 0x280   :  { %7633 = vrcp.f32 %v501_v2 }
 0x282   :  { %v7618_v3 = vpop.eup %7617 }
 0x283   :  { %v7620_v4 = vpop.eup %7619  ;;  %v535_v7 = vmul.f32 %v7618_v3, %v8100_v24 }
 0x284   :  { %v534_v11 = vmul.f32 %v7620_v4, %v8095_v23 }
 0x285   :  { %v544_v13 = vadd.f32 %v535_v7, %v8100_v24 }
 0x286   :  { %v543_v15 = vadd.f32 %v534_v11, %v8095_v23  ;;  %v811_v11 = vld [vmem:[#allocation17 + $0x8] sm:$0xff] }
 0x287   :  { %v7622_v5 = vpop.eup %7621 }
 0x288   :  { %v536_v6 = vmul.f32 %v7622_v5, %v8105_v25  ;;  %v7624_v8 = vpop.eup %7623 }
 0x289   :  { %v7626_v9 = vpop.eup %7625  ;;  %v533_v14 = vmul.f32 %v7624_v8, %v8090_v22 }
 0x28a   :  { %v545_v10 = vadd.f32 %v536_v6, %v8105_v25  ;;  %v7628_v12 = vpop.eup %7627  ;;  %v532_v16 = vmul.f32 %v7626_v9, %v8085_v21 }
 0x28b   :  { %v531_v26 = vmul.f32 %v7628_v12, %v8080_v20  ;;  %v7630_v27 = vpop.eup %7629  ;;  %v542_v25 = vadd.f32 %v533_v14, %v8090_v22  ;;  %v812_v12 = vld [vmem:[#allocation17 + $0x10] sm:$0xff]  ;;  %v814_v14 = vld [vmem:[#allocation17 + $0x20] sm:$0xf] }
 0x28c   :  { %7434 = vmatpush3.msra.mxu1 %v545_v10  ;;  %v7632_v28 = vpop.eup %7631  ;;  %v541_v24 = vadd.f32 %v532_v16, %v8085_v21  ;;  %v530_v23 = vmul.f32 %v7630_v27, %v8075_v19  ;;  %v810_v10 = vld [vmem:[#allocation17] sm:$0xff] }
 0x28d   :  { %7435 = vmatprep.subr.mxu1 %v7907_v0  ;;  %v540_v29 = vadd.f32 %v531_v26, %v8080_v20  ;;  %v7634_v30 = vpop.eup %7633  ;;  %v529_v31 = vmul.f32 %v7632_v28, %v8070_v18 }
 0x28e   :  { %7436 = vmatpush3.msra.mxu1 %v544_v13  ;;  %v539_v22 = vadd.f32 %v530_v23, %v8075_v19  ;;  %v528_v32 = vmul.f32 %v7634_v30, %v8063_v17  ;;  %v547_v19 = vld [vmem:[#allocation15 + $0x8] sm:$0xff]  ;;  %v813_v13 = vld [vmem:[#allocation17 + $0x18] sm:$0xff]  ;;  %v1053_v23 = vlaneseq }
 0x28f   :  { %7437 = vmatprep.subr.mxu1 %v7907_v0  ;;  %v538_v20 = vadd.f32 %v529_v31, %v8070_v18  ;;  %v763_v18 = vpop.f32.mrf.mxu0 }
 0x290   :  { %7438 = vmatpush3.msra.mxu1 %v543_v15  ;;  %v537_v21 = vadd.f32 %v528_v32, %v8063_v17  ;;  %v1054_v31 = vshrl.u32 %v1053_v23, 7  ;;  %v1036_v32 = vld [vmem:[#allocation12] sm:$0xff] }
 0x291   :  { %7439 = vmatprep.subr.mxu1 %v7907_v0  ;;  %v765_v17 = vpop.f32.mrf.mxu0 }
 0x292   :  { %7440 = vmatpush3.msra.mxu1 %v542_v25  ;;  %v798_v56 = vadd.f32 %v765_v17, %v763_v18 }
 0x293   :  { %7441 = vmatprep.subr.mxu1 %v7907_v0  ;;  %v769_v35 = vpop.f32.mrf.mxu0 }
 0x294   :  { %7442 = vmatpush3.msra.mxu1 %v541_v24  ;;  %v8203_v37 = vpack.c.bf16 %v769_v35, %v763_v18  ;;  %v7909_v24 = vmov 1966171168  }
 0x295   :  { %7443 = vmatprep.subr.mxu1 %v7907_v0  ;;  %v771_v38 = vpop.f32.mrf.mxu0 }
 0x296   :  { %7444 = vmatpush3.msra.mxu1 %v540_v29  ;;  %v799_v55 = vadd.f32 %v771_v38, %v769_v35  ;;  %v8238_v61 = vpack.c.bf16 %v771_v38, %v765_v17  ;;  %v1051_v29 = vunpack.c.l.s4 %v7909_v24 }
 0x297   :  { %7445 = vmatprep.subr.mxu1 %v7907_v0  ;;  %v775_v39 = vpop.f32.mrf.mxu0 }
 0x298   :  { %7446 = vmatpush3.msra.mxu1 %v539_v22  ;;  %v1052_v30 = vunpack.c.0.s8 %v1051_v29 }
 0x299   :  { %7447 = vmatprep.subr.mxu1 %v7907_v0  ;;  %v777_v41 = vpop.f32.mrf.mxu0 }
 0x29a   :  { %7448 = vmatpush3.msra.mxu1 %v538_v20  ;;  %v800_v54 = vadd.f32 %v777_v41, %v775_v39 }
 0x29b   :  { %7449 = vmatprep.subr.mxu1 %v7907_v0  ;;  %v781_v42 = vpop.f32.mrf.mxu0 }
 0x29c   :  { %7450 = vmatpush3.msra.mxu1 %v537_v21  ;;  %v8209_v43 = vpack.c.bf16 %v781_v42, %v775_v39 }
 0x29d   :  { %7452 = vmatmul.mubr.msk.f32.vlgmr.msra.gmra.mxu1 %vm336_vm1, %v546_v33  ;;  %7466 = vmatprep.subr.mxu1 %v7907_v0  ;;  %v783_v44 = vpop.f32.mrf.mxu0 }
 0x29e   :  { %7454 = vmatprep.mubr.msk.f32.mxu1 %vm7908_vm0, %v7907_v0  ;;  %v8213_v45 = vpack.c.bf16 %v783_v44, %v777_v41  ;;  %v801_v53 = vadd.f32 %v783_v44, %v781_v42  ;;  %v8286_v41 = vld [vmem:[#allocation11 + $0x8] sm:$0xff] }
 0x29f   :  { %v787_v46 = vpop.f32.mrf.mxu0 }
 0x2a1   :  { %7455 = vmatmul.mubr.msk.f32.gmra.mxu1 %vm336_vm1, %v547_v19  ;;  %v8215_v47 = vpop.f32.mrf.mxu0 }
 0x2a2   :  { %7457 = vmatprep.mubr.msk.f32.mxu1 %vm7908_vm0, %v7907_v0  ;;  %v802_v51 = vadd.f32 %v8215_v47, %v787_v46 }
 0x2a3   :  { %v793_v48 = vpop.f32.mrf.mxu0 }
 0x2a4   :  { %v8217_v49 = vpack.c.bf16 %v793_v48, %v787_v46 }
 0x2a5   :  { %7458 = vmatmul.mubr.msk.f32.gmra.mxu1 %vm336_vm1, %v548_v34  ;;  %v8219_v50 = vpop.f32.mrf.mxu0  ;;  %v8280_v34 = vsub.s32 0, %v1054_v31 }
 0x2a6   :  { %7460 = vmatprep.mubr.msk.f32.mxu1 %vm7908_vm0, %v7907_v0  ;;  %v803_v52 = vadd.f32 %v8219_v50, %v793_v48 }
 0x2a8   :  { %7467 = vmatpush3.msra.mxu1 %v803_v52 }
 0x2a9   :  { %7461 = vmatmul.mubr.msk.f32.gmra.mxu1 %vm336_vm1, %v549_v36  ;;  %7468 = vmatprep.subr.mxu1 %v7907_v0 }
 0x2aa   :  { %7463 = vmatprep.mubr.msk.f32.mxu1 %vm7908_vm0, %v7907_v0  ;;  %7469 = vmatpush3.msra.mxu1 %v802_v51 }
 0x2ab   :  { %7470 = vmatprep.subr.mxu1 %v7907_v0 }
 0x2ac   :  { %7471 = vmatpush3.msra.mxu1 %v801_v53 }
 0x2ad   :  { %7464 = vmatmul.mubr.msk.f32.gmra.mxu1 %vm336_vm1, %v550_v40  ;;  %7472 = vmatprep.subr.mxu1 %v7907_v0  ;;  %v8284_v40 = vld [vmem:[#allocation11] sm:$0xff] }
 0x2ae   :  { %7478 = vmatprep.mubr.msk.f32.mxu1 %vm7908_vm0, %v7907_v0  ;;  %7473 = vmatpush3.msra.mxu1 %v800_v54 }
 0x2af   :  { %7474 = vmatprep.subr.mxu1 %v7907_v0 }
 0x2b0   :  { %7475 = vmatpush3.msra.mxu1 %v799_v55  ;;  %v8296_v55 = vld [vmem:[%s9861_s5] sm:$0xff] }
 0x2b1   :  { %7476 = vmatprep.subr.mxu1 %v7907_v0 }
 0x2b2   :  { %7477 = vmatpush3.msra.mxu1 %v798_v56 }
 0x2b3   :  { %7479 = vmatmul.mubr.msk.f32.vlgmr.msra.gmra.mxu1 %vm820_vm3, %v815_v57 }
 0x2b4   :  { %7481 = vmatprep.mubr.msk.f32.mxu1 %vm7908_vm0, %v7907_v0 }
 0x2b7   :  { %7482 = vmatmul.mubr.msk.f32.gmra.mxu1 %vm820_vm3, %v816_v58 }
 0x2b8   :  { %7484 = vmatprep.mubr.msk.f32.mxu1 %vm7908_vm0, %v7907_v0 }
 0x2bb   :  { %7485 = vmatmul.mubr.msk.f32.gmra.mxu1 %vm820_vm3, %v817_v59 }
 0x2bc   :  { %7487 = vmatprep.mubr.msk.f32.mxu1 %vm7908_vm0, %v7907_v0 }
 0x2bf   :  { %7488 = vmatmul.mubr.msk.f32.gmra.mxu1 %vm820_vm3, %v818_v60 }
 0x2c0   :  { %7490 = vmatprep.mubr.msk.f32.mxu1 %vm7908_vm0, %v7907_v0 }
 0x2c3   :  { %7491 = vmatmul.mubr.msk.f32.gmra.mxu1 %vm820_vm3, %v819_v62 }
 0x2c4   :  { %1558 = vmatprep.mubr.bf16.mxu1 %v8238_v61 }
 0x35d   :  { %v8244_v63 = vpop.f32.mrf.mxu1 }
 0x35e   :  { %9882 = vst [vmem:[#allocation29_spill] sm:$0xff] %v8244_v63 }
 0x35f   :  { %v7453_v1 = vpop.f32.mrf.mxu1 }
 0x361   :  { %v8246_v2 = vpop.f32.mrf.mxu1 }
 0x362   :  { %9883 = vst [vmem:[#allocation30_spill] sm:$0xff] %v8246_v2 }
 0x363   :  { %v7456_v3 = vpop.f32.mrf.mxu1 }
 0x365   :  { %v8248_v4 = vpop.f32.mrf.mxu1 }
 0x366   :  { %9884 = vst [vmem:[#allocation31_spill] sm:$0xff] %v8248_v4 }
 0x367   :  { %v7459_v5 = vpop.f32.mrf.mxu1 }
 0x369   :  { %v8250_v6 = vpop.f32.mrf.mxu1 }
 0x36a   :  { %9885 = vst [vmem:[#allocation32_spill] sm:$0xff] %v8250_v6 }
 0x36b   :  { %v7462_v7 = vpop.f32.mrf.mxu1 }
 0x36d   :  { %v8252_v8 = vpop.f32.mrf.mxu1 }
 0x36e   :  { %9886 = vst [vmem:[#allocation33_spill] sm:$0xff] %v8252_v8  ;;  %7494 = vmatpush3.msk.msra.mxu0 %vm942_vm4, %v8252_v8 }
 0x36f   :  { %v7465_v9 = vpop.f32.mrf.mxu1  ;;  %7495 = vmatprep.subr.mxu0 %v7907_v0 }
 0x370   :  { %7496 = vmatpush3.msra.mxu0 %v8250_v6 }
 0x371   :  { %7497 = vmatprep.subr.mxu0 %v7907_v0 }
 0x372   :  { %7498 = vmatpush3.msra.mxu0 %v8248_v4 }
 0x373   :  { %7499 = vmatprep.subr.mxu0 %v7907_v0  ;;  %v902_v15 = vpop.f32.mrf.mxu1 }
 0x374   :  { %7500 = vmatpush3.msra.mxu0 %v8246_v2 }
 0x375   :  { %7501 = vmatprep.subr.mxu0 %v7907_v0  ;;  %v7480_v16 = vpop.f32.mrf.mxu1 }
 0x376   :  { %7502 = vmatpush3.msra.mxu0 %v8244_v63 }
 0x377   :  { %7504 = vmatmul.mubr.msk.f32.vlgmr.msra.gmra.mxu0 %vm926_vm5, %v810_v10  ;;  %v907_v26 = vpop.f32.mrf.mxu1 }
 0x378   :  { %7506 = vmatprep.mubr.msk.f32.mxu0 %vm7908_vm0, %v7907_v0 }
 0x379   :  { %v7483_v27 = vpop.f32.mrf.mxu1 }
 0x37b   :  { %7507 = vmatmul.mubr.msk.f32.gmra.mxu0 %vm926_vm5, %v811_v11  ;;  %v912_v25 = vpop.f32.mrf.mxu1  ;;  %v1037_v11 = vld [vmem:[#allocation12 + $0x8] sm:$0xff] }
 0x37c   :  { %7509 = vmatprep.mubr.msk.f32.mxu0 %vm7908_vm0, %v7907_v0 }
 0x37d   :  { %v7486_v28 = vpop.f32.mrf.mxu1 }
 0x37f   :  { %7510 = vmatmul.mubr.msk.f32.gmra.mxu0 %vm926_vm5, %v812_v12 }
 0x380   :  { %7512 = vmatprep.mubr.msk.f32.mxu0 %vm7908_vm0, %v7907_v0 }
 0x383   :  { %7513 = vmatmul.mubr.msk.f32.gmra.mxu0 %vm926_vm5, %v813_v13 }
 0x384   :  { %7515 = vmatprep.mubr.msk.f32.mxu0 %vm7908_vm0, %v7907_v0  ;;  %v8277_v0 = vsub.s32 %v1052_v30, %v1054_v31 }
 0x387   :  { %7516 = vmatmul.mubr.msk.f32.gmra.mxu0 %vm926_vm5, %v814_v14 }
 0x388   :  { %2122 = vmatprep.mubr.bf16.mxu0 %v8238_v61 }
 0x437   :  { %v1012_v22 = vpop.f32.mrf.mxu0 }
 0x438   :  { %v1013_v20 = vadd.f32 %v1012_v22, %v902_v15 }
 0x439   :  { %v7505_v21 = vpop.f32.mrf.mxu0 }
 0x43a   :  { %v1041_v33 = vadd.f32 %v1036_v32, %v1013_v20  ;;  %v8315_v21 = vpack.c.bf16 %v8219_v50, %v8215_v47 }
 0x43b   :  { %v1017_v19 = vpop.f32.mrf.mxu0 }
 0x43c   :  { %v1056_v18 = vrot.slane %v1041_v33, %v8277_v0  ;;  %v1613_v17 = vcombine.high %v1041_v33, %v1041_v33  ;;  %v1018_v3 = vadd.f32 %v1017_v19, %v907_v26 }
 0x43d   :  { %v7508_v35 = vpop.f32.mrf.mxu0 }
 0x43e   :  { %v1057_v36 = vcombine.high %v1056_v18, %v1056_v18  ;;  %v1064_v38 = vrot.slane %v1056_v18, %v8277_v0  ;;  %v1620_v39 = vrot.slane %v1613_v17, %v8277_v0  ;;  %v8311_v29 = vadd.f32 %v1037_v11, %v1018_v3 }
 0x43f   :  { %v1022_v42 = vpop.f32.mrf.mxu0 }
 0x440   :  { %v1071_v44 = vrot.slane %v1057_v36, %v8277_v0  ;;  %v1075_v46 = vrot.slane %v1064_v38, %v8280_v34  ;;  %v1098_v48 = vcombine.high %v1064_v38, %v1064_v38  ;;  %v1621_v51 = vcombine.high %v1620_v39, %v1620_v39 }
 0x441   :  { %v1628_v52 = vrot.slane %v1620_v39, %v8277_v0  ;;  %v8291_v53 = vadd.f32 %v1022_v42, %v912_v25  ;;  %v7511_v54 = vpop.f32.mrf.mxu0  ;;  %v2184_v36 = vrot.slane %v8311_v29, %v8277_v0  ;;  %v2741_v38 = vcombine.high %v8311_v29, %v8311_v29 }
 0x442   :  { %v1079_v56 = vrot.slane %v1071_v44, %v8280_v34  ;;  %v1082_v57 = vsub.f32 %v8284_v40, %v1075_v46  ;;  %v1083_v58 = vsub.f32 %v8286_v41, %v1075_v46  ;;  %v1099_v59 = vcombine.high %v1071_v44, %v1071_v44 }
 0x443   :  { %v1103_v60 = vrot.slane %v1098_v48, %v8280_v34  ;;  %v1635_v62 = vrot.slane %v1621_v51, %v8277_v0  ;;  %v1639_v1 = vrot.slane %v1628_v52, %v8280_v34  ;;  %v1662_v35 = vcombine.high %v1628_v52, %v1628_v52 }
 0x444   :  { %v1084_v5 = vsub.f32 %v8284_v40, %v1079_v56  ;;  %v1085_v7 = vsub.f32 %v8286_v41, %v1079_v56  ;;  %v1086_v9 = vand.u32 2147483647, %v1082_v57  ;;  %v1087_v10 = vand.u32 2147483647, %v1083_v58 }
 0x445   :  { %v1107_v12 = vrot.slane %v1099_v59, %v8280_v34  ;;  %v1110_v13 = vsub.f32 %v8296_v55, %v1103_v60  ;;  %v1643_v14 = vrot.slane %v1635_v62, %v8280_v34  ;;  %v1646_v24 = vsub.f32 %v8284_v40, %v1639_v1 }
 0x446   :  { %v1088_v15 = vand.u32 2147483647, %v1084_v5  ;;  %v1089_v16 = vand.u32 2147483647, %v1085_v7  ;;  %v1090_v27 = vsub.f32 1.0, %v1086_v9  ;;  %v1091_v25 = vsub.f32 1.0, %v1087_v10 }
 0x447   :  { %v1111_v28 = vsub.f32 %v8296_v55, %v1107_v12  ;;  %v1112_v26 = vand.u32 2147483647, %v1110_v13  ;;  %v1647_v33 = vsub.f32 %v8286_v41, %v1639_v1  ;;  %v1648_v19 = vsub.f32 %v8284_v40, %v1643_v14 }
 0x448   :  { %v1092_v23 = vsub.f32 1.0, %v1088_v15  ;;  %v1094_v30 = vmax.f32 %v1090_v27, 0.0  ;;  %v1093_v31 = vsub.f32 1.0, %v1089_v16  ;;  %v1095_v22 = vmax.f32 %v1091_v25, 0.0 }
 0x449   :  { %v1113_v32 = vand.u32 2147483647, %v1111_v28  ;;  %v1114_v20 = vsub.f32 1.0, %v1112_v26  ;;  %v1649_v18 = vsub.f32 %v8286_v41, %v1643_v14  ;;  %v1650_v17 = vand.u32 2147483647, %v1646_v24 }
 0x44a   :  { %v8324_v39 = vmax.f32 %v1092_v23, 0.0  ;;  %v1122_v44 = vcombine.high %v1094_v30, %v1094_v30  ;;  %v8327_v47 = vrot.slane %v1094_v30, %v8277_v0  ;;  %v8329_v50 = vmax.f32 %v1093_v31, 0.0 }
 0x44b   :  { %v1115_v42 = vsub.f32 1.0, %v1113_v32  ;;  %v8331_v46 = vmax.f32 %v1114_v20, 0.0  ;;  %v1171_v48 = vcombine.high %v1095_v22, %v1095_v22  ;;  %v8334_v51 = vrot.slane %v1095_v22, %v8277_v0 }
 0x44c   :  { %v1651_v52 = vand.u32 2147483647, %v1647_v33  ;;  %v1652_v54 = vand.u32 2147483647, %v1648_v19  ;;  %v1653_v56 = vand.u32 2147483647, %v1649_v18  ;;  %v1663_v57 = vcombine.high %v1635_v62, %v1635_v62 }
 0x44d   :  { %v1654_v58 = vsub.f32 1.0, %v1650_v17  ;;  %v1667_v59 = vrot.slane %v1662_v35, %v8280_v34  ;;  %v2185_v60 = vcombine.high %v2184_v36, %v2184_v36  ;;  %v2192_v1 = vrot.slane %v2184_v36, %v8277_v0 }
 0x44e   :  { %v8338_v3 = vmax.f32 %v1115_v42, 0.0  ;;  %v8341_v5 = vrot.slane %v1122_v44, %v8277_v0  ;;  %v1671_v9 = vrot.slane %v1663_v57, %v8280_v34  ;;  %v8347_v10 = vrot.slane %v1171_v48, %v8277_v0 }
 0x44f   :  { %v1674_v62 = vsub.f32 %v8296_v55, %v1667_v59  ;;  %v2199_v11 = vrot.slane %v2185_v60, %v8277_v0  ;;  %v2203_v12 = vrot.slane %v2192_v1, %v8280_v34  ;;  %v1655_v14 = vsub.f32 1.0, %v1651_v52 }
 0x450   :  { %v1656_v15 = vsub.f32 1.0, %v1652_v54  ;;  %v1675_v16 = vsub.f32 %v8296_v55, %v1671_v9  ;;  %v1657_v27 = vsub.f32 1.0, %v1653_v56  ;;  %v8355_v25 = vmax.f32 %v1654_v58, 0.0 }
 0x451   :  { %v2207_v28 = vrot.slane %v2199_v11, %v8280_v34  ;;  %v2210_v26 = vsub.f32 %v8284_v40, %v2203_v12  ;;  %v1676_v24 = vand.u32 2147483647, %v1674_v62  ;;  %v2211_v29 = vsub.f32 %v8286_v41, %v2203_v12 }
 0x452   :  { %v2226_v23 = vcombine.high %v2192_v1, %v2192_v1  ;;  %v2227_v30 = vcombine.high %v2199_v11, %v2199_v11  ;;  %v1677_v31 = vand.u32 2147483647, %v1675_v16  ;;  %v8362_v33 = vmax.f32 %v1655_v14, 0.0 }
 0x453   :  { %v2212_v22 = vsub.f32 %v8284_v40, %v2207_v28  ;;  %v2213_v32 = vsub.f32 %v8286_v41, %v2207_v28  ;;  %v2214_v20 = vand.u32 2147483647, %v2210_v26  ;;  %v2215_v19 = vand.u32 2147483647, %v2211_v29 }
 0x454   :  { %v2231_v18 = vrot.slane %v2226_v23, %v8280_v34  ;;  %v2235_v17 = vrot.slane %v2227_v30, %v8280_v34  ;;  %v8366_v35 = vmax.f32 %v1656_v15, 0.0  ;;  %v8368_v48 = vmax.f32 %v1657_v27, 0.0 }
 0x455   :  { %v2216_v36 = vand.u32 2147483647, %v2212_v22  ;;  %v2217_v42 = vand.u32 2147483647, %v2213_v32  ;;  %v2218_v44 = vsub.f32 1.0, %v2214_v20  ;;  %v2219_v52 = vsub.f32 1.0, %v2215_v19 }
 0x456   :  { %v2238_v54 = vsub.f32 %v8296_v55, %v2231_v18  ;;  %v2239_v56 = vsub.f32 %v8296_v55, %v2235_v17  ;;  %v1678_v57 = vsub.f32 1.0, %v1676_v24  ;;  %v1679_v58 = vsub.f32 1.0, %v1677_v31 }
 0x457   :  { %v2222_v59 = vmax.f32 %v2218_v44, 0.0  ;;  %v2748_v60 = vrot.slane %v2741_v38, %v8277_v0  ;;  %v2220_v1 = vsub.f32 1.0, %v2216_v36  ;;  %v2221_v9 = vsub.f32 1.0, %v2217_v42 }
 0x458   :  { %v2240_v62 = vand.u32 2147483647, %v2238_v54  ;;  %v2241_v11 = vand.u32 2147483647, %v2239_v56  ;;  %v8377_v14 = vrot.slane %v8355_v25, %v8277_v0  ;;  %v1735_v15 = vcombine.high %v8362_v33, %v8362_v33 }
 0x459   :  { %v1269_v16 = vcombine.high %v8329_v50, %v8329_v50  ;;  %v8385_v38 = vrot.slane %v8362_v33, %v8277_v0  ;;  %v2223_v27 = vmax.f32 %v2219_v52, 0.0  ;;  %v2250_v28 = vcombine.high %v2222_v59, %v2222_v59 }
 0x45a   :  { %v8388_v26 = vrot.slane %v2222_v59, %v8277_v0  ;;  %v8390_v24 = vmax.f32 %v1678_v57, 0.0  ;;  %v8392_v29 = vmax.f32 %v1679_v58, 0.0  ;;  %v2749_v23 = vcombine.high %v2748_v60, %v2748_v60 }
 0x45b   :  { %v2756_v30 = vrot.slane %v2748_v60, %v8277_v0  ;;  %v8395_v31 = vmax.f32 %v2220_v1, 0.0  ;;  %v8397_v22 = vmax.f32 %v2221_v9, 0.0  ;;  %v2242_v32 = vsub.f32 1.0, %v2240_v62 }
 0x45c   :  { %v2243_v20 = vsub.f32 1.0, %v2241_v11  ;;  %v2763_v33 = vrot.slane %v2749_v23, %v8277_v0  ;;  %v1283_v17 = vrot.slane %v1269_v16, %v8277_v0  ;;  %v8403_v36 = vrot.slane %v2250_v28, %v8277_v0 }
 0x45d   :  { %v2767_v19 = vrot.slane %v2756_v30, %v8280_v34  ;;  %v2790_v18 = vcombine.high %v2756_v30, %v2756_v30  ;;  %v2299_v44 = vcombine.high %v2223_v27, %v2223_v27  ;;  %v8408_v52 = vrot.slane %v2223_v27, %v8277_v0 }
 0x45e   :  { %v2771_v54 = vrot.slane %v2763_v33, %v8280_v34  ;;  %v2791_v58 = vcombine.high %v2763_v33, %v2763_v33  ;;  %v1285_v60 = vcombine.high %v1283_v17, %v1283_v17  ;;  %v1299_v1 = vrot.slane %v1283_v17, %v8277_v0 }
 0x45f   :  { %v2774_v56 = vsub.f32 %v8284_v40, %v2767_v19  ;;  %v2775_v57 = vsub.f32 %v8286_v41, %v2767_v19  ;;  %v2795_v59 = vrot.slane %v2790_v18, %v8280_v34  ;;  %v1187_v9 = vcombine.high %v8347_v10, %v8347_v10 }
 0x460   :  { %v2776_v62 = vsub.f32 %v8284_v40, %v2771_v54  ;;  %v2777_v11 = vsub.f32 %v8286_v41, %v2771_v54  ;;  %v2799_v28 = vrot.slane %v2791_v58, %v8280_v34  ;;  %v1313_v30 = vrot.slane %v1285_v60, %v8277_v0 }
 0x461   :  { %v2778_v16 = vand.u32 2147483647, %v2774_v56  ;;  %v2779_v27 = vand.u32 2147483647, %v2775_v57  ;;  %v2802_v23 = vsub.f32 %v8296_v55, %v2795_v59  ;;  %v1315_v33 = vcombine.high %v1299_v1, %v1299_v1 }
 0x462   :  { %v2780_v19 = vand.u32 2147483647, %v2776_v62  ;;  %v8422_v18 = vand.u32 2147483647, %v2777_v11  ;;  %v2803_v7 = vsub.f32 %v8296_v55, %v2799_v28  ;;  %v1317_v13 = vcombine.high %v1313_v30, %v1313_v30 }
 0x463   :  { %v2782_v17 = vsub.f32 1.0, %v2778_v16  ;;  %v2783_v42 = vsub.f32 1.0, %v2779_v27  ;;  %v8425_v12 = vand.u32 2147483647, %v2802_v23  ;;  %v1441_v54 = vrot.slane %v1315_v33, %v8280_v34 }
 0x464   :  { %v8428_v56 = vmax.f32 %v2242_v32, 0.0  ;;  %v1201_v57 = vrot.slane %v8347_v10, %v8277_v0  ;;  %v1215_v58 = vrot.slane %v1187_v9, %v8277_v0  ;;  %v1833_v59 = vcombine.high %v8368_v48, %v8368_v48 }
 0x465   :  { %v8435_v60 = vmax.f32 %v2243_v20, 0.0  ;;  %v2784_v62 = vsub.f32 1.0, %v2780_v19  ;;  %v1445_v11 = vrot.slane %v1317_v13, %v8280_v34  ;;  %v1749_v16 = vrot.slane %v1735_v15, %v8277_v0 }
 0x466   :  { %v8440_v27 = vrot.slane %v2299_v44, %v8277_v0  ;;  %v8445_v28 = vmax.f32 %v2782_v17, 0.0  ;;  %v8447_v9 = vmax.f32 %v2783_v42, 0.0  ;;  %v8449_v23 = vand.u32 2147483647, %v2803_v7 }
 0x467   :  { %v1508_v13 = vmul.f32 %v1441_v54, %v8338_v3  ;;  %v1509_v15 = vmul.f32 %v1445_v11, %v8338_v3  ;;  %v1217_v33 = vcombine.high %v1201_v57, %v1201_v57  ;;  %v1219_v44 = vcombine.high %v1215_v58, %v1215_v58 }
 0x468   :  { %v1847_v19 = vrot.slane %v1833_v59, %v8277_v0  ;;  %v8455_v8 = vmax.f32 %v2784_v62, 0.0  ;;  %v1751_v32 = vcombine.high %v1749_v16, %v1749_v16  ;;  %v1765_v17 = vrot.slane %v1749_v16, %v8277_v0 }
 0x469   :  { %v1433_v42 = vrot.slane %v1299_v1, %v8280_v34  ;;  %v1525_v10 = vpack.c.bf16 %v1509_v15, %v1508_v13  ;;  %v1377_v7 = vrot.slane %v1217_v33, %v8280_v34  ;;  %v1381_v20 = vrot.slane %v1219_v44, %v8280_v34 }
 0x46a   :  { %v1849_v6 = vcombine.high %v1847_v19, %v1847_v19  ;;  %v1863_v54 = vrot.slane %v1847_v19, %v8277_v0  ;;  %v1779_v11 = vrot.slane %v1751_v32, %v8277_v0  ;;  %v1781_v4 = vcombine.high %v1765_v17, %v1765_v17 }
 0x46b   :  { %v1437_v59 = vrot.slane %v1313_v30, %v8280_v34  ;;  %6989 = vmatprep.subr.bf16.mxu1 %v1525_v10  ;;  %v1492_v62 = vmul.f32 %v1377_v7, %v8331_v46  ;;  %v1493_v16 = vmul.f32 %v1381_v20, %v8331_v46  ;;  %v1506_v13 = vmul.f32 %v1433_v42, %v8338_v3 }
 0x46c   :  { %v1877_v1 = vrot.slane %v1849_v6, %v8277_v0  ;;  %v1879_v15 = vcombine.high %v1863_v54, %v1863_v54  ;;  %v1783_v33 = vcombine.high %v1779_v11, %v1779_v11  ;;  %v1941_v44 = vrot.slane %v1781_v4, %v8280_v34 }
 0x46d   :  { %v1507_v19 = vmul.f32 %v1437_v59, %v8338_v3  ;;  %v1517_v2 = vpack.c.bf16 %v1493_v16, %v1492_v62  ;;  %v1369_v63 = vrot.slane %v1201_v57, %v8280_v34  ;;  %v1373_v30 = vrot.slane %v1215_v58, %v8280_v34 }
 0x46e   :  { %v1881_v32 = vcombine.high %v1877_v1, %v1877_v1  ;;  %v2005_v10 = vrot.slane %v1879_v15, %v8280_v34  ;;  %v1945_v20 = vrot.slane %v1783_v33, %v8280_v34  ;;  %v2056_v6 = vmul.f32 %v1941_v44, %v8390_v24 }
 0x46f   :  { %v1524_v7 = vpack.c.bf16 %v1507_v19, %v1506_v13  ;;  %6990 = vmatpush3.bf16.msra.mxu1 %v1517_v2  ;;  %v1490_v4 = vmul.f32 %v1369_v63, %v8331_v46  ;;  %v1491_v59 = vmul.f32 %v1373_v30, %v8331_v46  ;;  %v1276_v62 = vrot.slane %v8329_v50, %v8277_v0 }
 0x470   :  { %v2009_v42 = vrot.slane %v1881_v32, %v8280_v34  ;;  %v2072_v57 = vmul.f32 %v2005_v10, %v8392_v29  ;;  %v2057_v58 = vmul.f32 %v1945_v20, %v8390_v24  ;;  %v1997_v16 = vrot.slane %v1863_v54, %v8280_v34 }
 0x471   :  { %6991 = vmatprep.subr.bf16.mxu1 %v1524_v7  ;;  %v2001_v15 = vrot.slane %v1877_v1, %v8280_v34  ;;  %v1516_v13 = vpack.c.bf16 %v1491_v59, %v1490_v4  ;;  %v1284_v33 = vcombine.high %v1276_v62, %v1276_v62  ;;  %v1292_v63 = vrot.slane %v1276_v62, %v8277_v0 }
 0x472   :  { %v2073_v2 = vmul.f32 %v2009_v42, %v8392_v29  ;;  %v2081_v44 = vpack.c.bf16 %v2057_v58, %v2056_v6  ;;  %v2070_v19 = vmul.f32 %v1997_v16, %v8392_v29  ;;  %v1933_v32 = vrot.slane %v1765_v17, %v8280_v34  ;;  %v8504_v58 = vpop.f32.mrf.mxu0 }
 0x473   :  { %v2071_v50 = vmul.f32 %v2001_v15, %v8392_v29  ;;  %6992 = vmatpush3.bf16.msra.mxu1 %v1516_v13  ;;  %v1306_v10 = vrot.slane %v1284_v33, %v8277_v0  ;;  %v1314_v54 = vcombine.high %v1292_v63, %v1292_v63  ;;  %v1937_v1 = vrot.slane %v1779_v11, %v8280_v34 }
 0x474   :  { %v2089_v30 = vpack.c.bf16 %v2073_v2, %v2072_v57  ;;  %v2054_v7 = vmul.f32 %v1933_v32, %v8390_v24  ;;  %v1840_v42 = vrot.slane %v8368_v48, %v8277_v0  ;;  %v1194_v6 = vrot.slane %v8334_v51, %v8277_v0  ;;  %v8502_v57 = vpop.f32.mrf.mxu1  ;;  %v7514_v32 = vpop.f32.mrf.mxu0 }
 0x475   :  { %v2088_v20 = vpack.c.bf16 %v2071_v50, %v2070_v19  ;;  %v1316_v4 = vcombine.high %v1306_v10, %v1306_v10  ;;  %v1425_v17 = vrot.slane %v1314_v54, %v8280_v34  ;;  %v2055_v59 = vmul.f32 %v1937_v1, %v8390_v24 }
 0x476   :  { %7023 = vmatprep.subr.bf16.mxu0 %v2089_v30  ;;  %v9887_v62 = vcombine.high %v8334_v51, %v8334_v51  ;;  %v1848_v48 = vcombine.high %v1840_v42, %v1840_v42  ;;  %v1856_v16 = vrot.slane %v1840_v42, %v8277_v0  ;;  %v1216_v15 = vcombine.high %v1194_v6, %v1194_v6  ;;  %v7489_v51 = vpop.f32.mrf.mxu1 }
 0x477   :  { %7024 = vmatpush3.bf16.msra.mxu0 %v2081_v44  ;;  %v1417_v2 = vrot.slane %v1292_v63, %v8280_v34  ;;  %v1429_v13 = vrot.slane %v1316_v4, %v8280_v34  ;;  %v1504_v33 = vmul.f32 %v1425_v17, %v8338_v3  ;;  %v2080_v19 = vpack.c.bf16 %v2055_v59, %v2054_v7 }
 0x478   :  { %v1208_v11 = vrot.slane %v9887_v62, %v8277_v0  ;;  %7025 = vmatprep.subr.bf16.mxu0 %v2088_v20  ;;  %v1870_v30 = vrot.slane %v1848_v48, %v8277_v0  ;;  %v1878_v54 = vcombine.high %v1856_v16, %v1856_v16  ;;  %v1361_v44 = vrot.slane %v1216_v15, %v8280_v34 }
 0x479   :  { %v1421_v1 = vrot.slane %v1306_v10, %v8280_v34  ;;  %v1505_v42 = vmul.f32 %v1429_v13, %v8338_v3  ;;  %v1502_v4 = vmul.f32 %v1417_v2, %v8338_v3  ;;  %v1750_v20 = vcombine.high %v8385_v38, %v8385_v38 }
 0x47a   :  { %v1218_v50 = vcombine.high %v1208_v11, %v1208_v11  ;;  %v1880_v7 = vcombine.high %v1870_v30, %v1870_v30  ;;  %v1989_v17 = vrot.slane %v1878_v54, %v8280_v34  ;;  %v1488_v59 = vmul.f32 %v1361_v44, %v8331_v46 }
 0x47b   :  { %7026 = vmatpush3.bf16.msra.mxu0 %v2080_v19  ;;  %v1503_v62 = vmul.f32 %v1421_v1, %v8338_v3  ;;  %v1523_v48 = vpack.c.bf16 %v1505_v42, %v1504_v33  ;;  %v1758_v15 = vrot.slane %v8385_v38, %v8277_v0  ;;  %v1772_v13 = vrot.slane %v1750_v20, %v8277_v0 }
 0x47c   :  { %v1365_v63 = vrot.slane %v1218_v50, %v8280_v34  ;;  %v1993_v2 = vrot.slane %v1880_v7, %v8280_v34  ;;  %v2068_v50 = vmul.f32 %v1989_v17, %v8392_v29  ;;  %v1981_v51 = vrot.slane %v1856_v16, %v8280_v34 }
 0x47d   :  { %v1522_v19 = vpack.c.bf16 %v1503_v62, %v1502_v4  ;;  %6993 = vmatprep.subr.bf16.mxu1 %v1523_v48  ;;  %v1780_v54 = vcombine.high %v1758_v15, %v1758_v15  ;;  %v1782_v44 = vcombine.high %v1772_v13, %v1772_v13  ;;  %v1985_v33 = vrot.slane %v1870_v30, %v8280_v34 }
 0x47e   :  { %v1489_v10 = vmul.f32 %v1365_v63, %v8331_v46  ;;  %v2069_v1 = vmul.f32 %v1993_v2, %v8392_v29  ;;  %v2066_v42 = vmul.f32 %v1981_v51, %v8392_v29  ;;  %v1353_v38 = vrot.slane %v1194_v6, %v8280_v34 }
 0x47f   :  { %v1357_v63 = vrot.slane %v1208_v11, %v8280_v34  ;;  %v1925_v20 = vrot.slane %v1780_v54, %v8280_v34  ;;  %v1929_v4 = vrot.slane %v1782_v44, %v8280_v34  ;;  %v2067_v16 = vmul.f32 %v1985_v33, %v8392_v29 }
 0x480   :  { %v1515_v32 = vpack.c.bf16 %v1489_v10, %v1488_v59  ;;  %v1220_v7 = vcombine.high %v8324_v39, %v8324_v39  ;;  %v2087_v17 = vpack.c.bf16 %v2069_v1, %v2068_v50  ;;  %v1486_v30 = vmul.f32 %v1353_v38, %v8331_v46 }
 0x481   :  { %v1487_v59 = vmul.f32 %v1357_v63, %v8331_v46  ;;  %v1917_v6 = vrot.slane %v1758_v15, %v8280_v34  ;;  %v2052_v11 = vmul.f32 %v1925_v20, %v8390_v24  ;;  %v2053_v62 = vmul.f32 %v1929_v4, %v8390_v24 }
 0x482   :  { %6994 = vmatpush3.bf16.msra.mxu1 %v1515_v32  ;;  %v2086_v48 = vpack.c.bf16 %v2067_v16, %v2066_v42  ;;  %v1234_v10 = vrot.slane %v1220_v7, %v8277_v0  ;;  %7027 = vmatprep.subr.bf16.mxu0 %v2087_v17  ;;  %v1921_v51 = vrot.slane %v1772_v13, %v8280_v34 }
 0x483   :  { %6995 = vmatprep.subr.bf16.mxu1 %v1522_v19  ;;  %v1514_v2 = vpack.c.bf16 %v1487_v59, %v1486_v30  ;;  %v2050_v50 = vmul.f32 %v1917_v6, %v8390_v24  ;;  %v1784_v19 = vcombine.high %v8366_v35, %v8366_v35  ;;  %v2079_v32 = vpack.c.bf16 %v2053_v62, %v2052_v11 }
 0x484   :  { %v1236_v54 = vcombine.high %v1234_v10, %v1234_v10  ;;  %v1250_v15 = vrot.slane %v1234_v10, %v8277_v0  ;;  %v1138_v44 = vcombine.high %v8341_v5, %v8341_v5  ;;  %v2051_v33 = vmul.f32 %v1921_v51, %v8390_v24 }
 0x485   :  { %v1798_v1 = vrot.slane %v1784_v19, %v8277_v0  ;;  %v1152_v13 = vrot.slane %v8341_v5, %v8277_v0  ;;  %v9888_v42 = vcombine.high %v8355_v25, %v8355_v25  ;;  %7028 = vmatpush3.bf16.msra.mxu0 %v2079_v32  ;;  %v9889_v62 = vsub.f32 1.0, %v8422_v18 }
 0x486   :  { %6996 = vmatpush3.bf16.msra.mxu1 %v1514_v2  ;;  %v1264_v63 = vrot.slane %v1236_v54, %v8277_v0  ;;  %v1266_v20 = vcombine.high %v1250_v15, %v1250_v15  ;;  %v1166_v4 = vrot.slane %v1138_v44, %v8277_v0  ;;  %v1401_v16 = vrot.slane %v1250_v15, %v8280_v34 }
 0x487   :  { %v1700_v38 = vrot.slane %v9888_v42, %v8277_v0  ;;  %7029 = vmatprep.subr.bf16.mxu0 %v2086_v48  ;;  %v2078_v7 = vpack.c.bf16 %v2051_v33, %v2050_v50  ;;  %v1800_v17 = vcombine.high %v1798_v1, %v1798_v1  ;;  %v1814_v30 = vrot.slane %v1798_v1, %v8277_v0 }
 0x488   :  { %v1168_v59 = vcombine.high %v1152_v13, %v1152_v13  ;;  %v1268_v5 = vcombine.high %v1264_v63, %v1264_v63  ;;  %v1409_v6 = vrot.slane %v1266_v20, %v8280_v34  ;;  %v1170_v11 = vcombine.high %v1166_v4, %v1166_v4 }
 0x489   :  { %v1405_v25 = vrot.slane %v1264_v63, %v8280_v34  ;;  %v8567_v10 = vmax.f32 %v9889_v62, 0.0  ;;  %v1828_v2 = vrot.slane %v1800_v17, %v8277_v0  ;;  %v1830_v51 = vcombine.high %v1814_v30, %v1814_v30  ;;  %7030 = vmatpush3.bf16.msra.mxu0 %v2078_v7 }
 0x48a   :  { %v1345_v48 = vrot.slane %v1168_v59, %v8280_v34  ;;  %v1413_v50 = vrot.slane %v1268_v5, %v8280_v34  ;;  %v1349_v19 = vrot.slane %v1170_v11, %v8280_v34  ;;  %v1498_v32 = vmul.f32 %v1401_v16, %v8338_v3 }
 0x48b   :  { %v1499_v54 = vmul.f32 %v1405_v25, %v8338_v3  ;;  %v1500_v15 = vmul.f32 %v1409_v6, %v8338_v3  ;;  %v1832_v44 = vcombine.high %v1828_v2, %v1828_v2  ;;  %v1973_v18 = vrot.slane %v1830_v51, %v8280_v34 }
 0x48c   :  { %v1702_v33 = vcombine.high %v1700_v38, %v1700_v38  ;;  %v1501_v1 = vmul.f32 %v1413_v50, %v8338_v3  ;;  %v1484_v42 = vmul.f32 %v1345_v48, %v8331_v46  ;;  %v1485_v63 = vmul.f32 %v1349_v19, %v8331_v46 }
 0x48d   :  { %v1716_v20 = vrot.slane %v1700_v38, %v8277_v0  ;;  %v1977_v7 = vrot.slane %v1832_v44, %v8280_v34  ;;  %v1520_v17 = vpack.c.bf16 %v1499_v54, %v1498_v32  ;;  %v1965_v59 = vrot.slane %v1814_v30, %v8280_v34 }
 0x48e   :  { %v1730_v16 = vrot.slane %v1702_v33, %v8277_v0  ;;  %v1521_v5 = vpack.c.bf16 %v1501_v1, %v1500_v15  ;;  %v2064_v6 = vmul.f32 %v1973_v18, %v8392_v29  ;;  %v1969_v25 = vrot.slane %v1828_v2, %v8280_v34 }
 0x48f   :  { %v1732_v11 = vcombine.high %v1716_v20, %v1716_v20  ;;  %v2065_v62 = vmul.f32 %v1977_v7, %v8392_v29  ;;  %v1513_v51 = vpack.c.bf16 %v1485_v63, %v1484_v42  ;;  %v1337_v50 = vrot.slane %v1152_v13, %v8280_v34 }
 0x490   :  { %v1734_v48 = vcombine.high %v1730_v16, %v1730_v16  ;;  %6997 = vmatprep.subr.bf16.mxu1 %v1521_v5  ;;  %v2063_v19 = vmul.f32 %v1969_v25, %v8392_v29  ;;  %v1341_v32 = vrot.slane %v1166_v4, %v8280_v34  ;;  %v1227_v30 = vrot.slane %v8324_v39, %v8277_v0 }
 0x491   :  { %v1909_v38 = vrot.slane %v1732_v11, %v8280_v34  ;;  %v2085_v54 = vpack.c.bf16 %v2065_v62, %v2064_v6  ;;  %6998 = vmatpush3.bf16.msra.mxu1 %v1513_v51  ;;  %v2062_v15 = vmul.f32 %v1965_v59, %v8392_v29  ;;  %v1482_v44 = vmul.f32 %v1337_v50, %v8331_v46 }
 0x492   :  { %v1913_v2 = vrot.slane %v1734_v48, %v8280_v34  ;;  %6999 = vmatprep.subr.bf16.mxu1 %v1520_v17  ;;  %v1483_v18 = vmul.f32 %v1341_v32, %v8331_v46  ;;  %v1235_v33 = vcombine.high %v1227_v30, %v1227_v30  ;;  %v1901_v1 = vrot.slane %v1716_v20, %v8280_v34 }
 0x493   :  { %v2048_v13 = vmul.f32 %v1909_v38, %v8390_v24  ;;  %7031 = vmatprep.subr.bf16.mxu0 %v2085_v54  ;;  %v2084_v39 = vpack.c.bf16 %v2063_v19, %v2062_v15  ;;  %v1243_v42 = vrot.slane %v1227_v30, %v8277_v0  ;;  %v1905_v63 = vrot.slane %v1730_v16, %v8280_v34  ;;  %v1038_v15 = vld [vmem:[#allocation12 + $0x10] sm:$0xff] }
 0x494   :  { %v2049_v4 = vmul.f32 %v1913_v2, %v8390_v24  ;;  %v1512_v7 = vpack.c.bf16 %v1483_v18, %v1482_v44  ;;  %v1257_v59 = vrot.slane %v1235_v33, %v8277_v0  ;;  %v1791_v17 = vrot.slane %v8366_v35, %v8277_v0 }
 0x495   :  { %v8607_v5 = vrot.slane %v8327_v47, %v8277_v0  ;;  %v1265_v20 = vcombine.high %v1243_v42, %v1243_v42  ;;  %v2047_v11 = vmul.f32 %v1905_v63, %v8390_v24  ;;  %v9890_v25 = vcombine.high %v8327_v47, %v8327_v47 }
 0x496   :  { %v2077_v6 = vpack.c.bf16 %v2049_v4, %v2048_v13  ;;  %7000 = vmatpush3.bf16.msra.mxu1 %v1512_v7  ;;  %v1267_v16 = vcombine.high %v1257_v59, %v1257_v59  ;;  %v1799_v51 = vcombine.high %v1791_v17, %v1791_v17  ;;  %v8617_v48 = vrot.slane %v1791_v17, %v8277_v0 }
 0x497   :  { %v8614_v62 = vrot.slane %v9890_v25, %v8277_v0  ;;  %v1167_v35 = vcombine.high %v8607_v5, %v8607_v5  ;;  %v1393_v50 = vrot.slane %v1265_v20, %v8280_v34  ;;  %v2046_v38 = vmul.f32 %v1901_v1, %v8390_v24 }
 0x498   :  { %7032 = vmatpush3.bf16.msra.mxu0 %v2077_v6  ;;  %v1385_v47 = vrot.slane %v1243_v42, %v8280_v34  ;;  %v1397_v32 = vrot.slane %v1267_v16, %v8280_v34  ;;  %v8628_v30 = vrot.slane %v1799_v51, %v8277_v0  ;;  %v1829_v54 = vcombine.high %v8617_v48, %v8617_v48 }
 0x499   :  { %v1169_v19 = vcombine.high %v8614_v62, %v8614_v62  ;;  %7033 = vmatprep.subr.bf16.mxu0 %v2084_v39  ;;  %v1329_v2 = vrot.slane %v1167_v35, %v8280_v34  ;;  %v2076_v13 = vpack.c.bf16 %v2047_v11, %v2046_v38  ;;  %v1389_v33 = vrot.slane %v1257_v59, %v8280_v34 }
 0x49a   :  { %v1496_v1 = vmul.f32 %v1393_v50, %v8338_v3  ;;  %v1497_v4 = vmul.f32 %v1397_v32, %v8338_v3  ;;  %v1831_v39 = vcombine.high %v8628_v30, %v8628_v30  ;;  %v1957_v42 = vrot.slane %v1829_v54, %v8280_v34 }
 0x49b   :  { %v1333_v18 = vrot.slane %v1169_v19, %v8280_v34  ;;  %v1480_v63 = vmul.f32 %v1329_v2, %v8331_v46  ;;  %v1495_v17 = vmul.f32 %v1389_v33, %v8338_v3  ;;  %v1043_v6 = vadd.f32 %v1038_v15, %v8291_v53 }
 0x49c   :  { %7034 = vmatpush3.bf16.msra.mxu0 %v2076_v13  ;;  %v1519_v20 = vpack.c.bf16 %v1497_v4, %v1496_v1  ;;  %v1961_v59 = vrot.slane %v1831_v39, %v8280_v34  ;;  %v1494_v11 = vmul.f32 %v1385_v47, %v8338_v3  ;;  %v1701_v25 = vcombine.high %v8377_v14, %v8377_v14 }
 0x49d   :  { %v1481_v7 = vmul.f32 %v1333_v18, %v8331_v46  ;;  %v8652_v16 = vrot.slane %v8445_v28, %v8277_v0  ;;  %v3312_v35 = vrot.slane %v1043_v6, %v8277_v0  ;;  %v3869_v50 = vcombine.high %v1043_v6, %v1043_v6 }
 0x49e   :  { %7001 = vmatprep.subr.bf16.mxu1 %v1519_v20  ;;  %v2060_v38 = vmul.f32 %v1957_v42, %v8392_v29  ;;  %v2061_v53 = vmul.f32 %v1961_v59, %v8392_v29  ;;  %v1518_v19 = vpack.c.bf16 %v1495_v17, %v1494_v11  ;;  %v8659_v3 = vrot.slane %v8377_v14, %v8277_v0 }
 0x49f   :  { %9891 = vst [vmem:[#allocation34_spill] sm:$0xff] %v8652_v16  ;;  %v1511_v51 = vpack.c.bf16 %v1481_v7, %v1480_v63  ;;  %v2807_v47 = vsub.f32 1.0, %v8449_v23  ;;  %v3313_v32 = vcombine.high %v3312_v35, %v3312_v35  ;;  %v3320_v54 = vrot.slane %v3312_v35, %v8277_v0 }
 0x4a0   :  { %v3876_v2 = vrot.slane %v3869_v50, %v8277_v0  ;;  %v9892_v15 = vsub.f32 1.0, %v8425_v12  ;;  %v2083_v33 = vpack.c.bf16 %v2061_v53, %v2060_v38  ;;  %v8671_v14 = vrot.slane %v1701_v25, %v8277_v0 }
 0x4a1   :  { %7002 = vmatpush3.bf16.msra.mxu1 %v1511_v51  ;;  %v3327_v23 = vrot.slane %v3313_v32, %v8277_v0  ;;  %v3331_v1 = vrot.slane %v3320_v54, %v8280_v34  ;;  %v3354_v4 = vcombine.high %v3320_v54, %v3320_v54  ;;  %v8677_v42 = vrot.slane %v8447_v9, %v8277_v0 }
 0x4a2   :  { %v8666_v13 = vmax.f32 %v9892_v15, 0.0  ;;  %7003 = vmatprep.subr.bf16.mxu1 %v1518_v19  ;;  %v3877_v39 = vcombine.high %v3876_v2, %v3876_v2  ;;  %7035 = vmatprep.subr.bf16.mxu0 %v2083_v33  ;;  %v3884_v12 = vrot.slane %v3876_v2, %v8277_v0  ;;  %v1731_v63 = vcombine.high %v8659_v3, %v8659_v3 }
 0x4a3   :  { %v1949_v7 = vrot.slane %v8617_v48, %v8280_v34  ;;  %v3335_v17 = vrot.slane %v3327_v23, %v8280_v34  ;;  %v3338_v6 = vsub.f32 %v8284_v40, %v3331_v1  ;;  %v3339_v20 = vsub.f32 %v8286_v41, %v3331_v1 }
 0x4a4   :  { %v3355_v59 = vcombine.high %v3327_v23, %v3327_v23  ;;  %v3359_v11 = vrot.slane %v3354_v4, %v8280_v34  ;;  %v3891_v25 = vrot.slane %v3877_v39, %v8277_v0  ;;  %v3895_v51 = vrot.slane %v3884_v12, %v8280_v34 }
 0x4a5   :  { %v1733_v35 = vcombine.high %v8671_v14, %v8671_v14  ;;  %v3340_v50 = vsub.f32 %v8284_v40, %v3335_v17  ;;  %v3341_v48 = vsub.f32 %v8286_v41, %v3335_v17  ;;  %v3342_v38 = vand.u32 2147483647, %v3338_v6 }
 0x4a6   :  { %v3343_v53 = vand.u32 2147483647, %v3339_v20  ;;  %v3363_v19 = vrot.slane %v3355_v59, %v8280_v34  ;;  %v3366_v32 = vsub.f32 %v8296_v55, %v3359_v11  ;;  %v3899_v54 = vrot.slane %v3891_v25, %v8280_v34 }
 0x4a7   :  { %v3902_v2 = vsub.f32 %v8284_v40, %v3895_v51  ;;  %v3344_v15 = vand.u32 2147483647, %v3340_v50  ;;  %v3345_v33 = vand.u32 2147483647, %v3341_v48  ;;  %v3346_v23 = vsub.f32 1.0, %v3342_v38 }
 0x4a8   :  { %v3347_v1 = vsub.f32 1.0, %v3343_v53  ;;  %v3367_v4 = vsub.f32 %v8296_v55, %v3363_v19  ;;  %v3368_v39 = vand.u32 2147483647, %v3366_v32  ;;  %v1893_v44 = vrot.slane %v1731_v63, %v8280_v34 }
 0x4a9   :  { %v1953_v17 = vrot.slane %v8628_v30, %v8280_v34  ;;  %v8702_v6 = vmax.f32 %v2807_v47, 0.0  ;;  %v3350_v20 = vmax.f32 %v3346_v23, 0.0  ;;  %v3903_v59 = vsub.f32 %v8286_v41, %v3895_v51 }
 0x4aa   :  { %v3904_v11 = vsub.f32 %v8284_v40, %v3899_v54  ;;  %v3348_v18 = vsub.f32 1.0, %v3344_v15  ;;  %v3349_v50 = vsub.f32 1.0, %v3345_v33  ;;  %v3351_v48 = vmax.f32 %v3347_v1, 0.0 }
 0x4ab   :  { %v3369_v38 = vand.u32 2147483647, %v3367_v4  ;;  %v3905_v53 = vsub.f32 %v8286_v41, %v3899_v54  ;;  %v3906_v19 = vand.u32 2147483647, %v3902_v2  ;;  %v1897_v32 = vrot.slane %v1733_v35, %v8280_v34 }
 0x4ac   :  { %v2058_v63 = vmul.f32 %v1949_v7, %v8392_v29  ;;  %v3370_v16 = vsub.f32 1.0, %v3368_v39  ;;  %v3918_v30 = vcombine.high %v3884_v12, %v3884_v12  ;;  %v2044_v47 = vmul.f32 %v1893_v44, %v8390_v24 }
 0x4ad   :  { %v2059_v23 = vmul.f32 %v1953_v17, %v8392_v29  ;;  %v3378_v51 = vcombine.high %v3350_v20, %v3350_v20  ;;  %v8712_v40 = vrot.slane %v3350_v20, %v8277_v0  ;;  %v3907_v15 = vand.u32 2147483647, %v3903_v59 }
 0x4ae   :  { %v3908_v33 = vand.u32 2147483647, %v3904_v11  ;;  %v8714_v1 = vmax.f32 %v3348_v18, 0.0  ;;  %v8716_v41 = vmax.f32 %v3349_v50, 0.0  ;;  %v3371_v54 = vsub.f32 1.0, %v3369_v38 }
 0x4af   :  { %v3427_v35 = vcombine.high %v3351_v48, %v3351_v48  ;;  %v8719_v7 = vrot.slane %v3351_v48, %v8277_v0  ;;  %v8721_v12 = vand.u32 2147483647, %v3905_v53  ;;  %v3910_v44 = vsub.f32 1.0, %v3906_v19 }
 0x4b0   :  { %v3919_v2 = vcombine.high %v3891_v25, %v3891_v25  ;;  %v3911_v29 = vsub.f32 1.0, %v3907_v15  ;;  %v3912_v4 = vsub.f32 1.0, %v3908_v33  ;;  %v8724_v39 = vrot.slane %v3918_v30, %v8280_v34 }
 0x4b1   :  { %v2045_v17 = vmul.f32 %v1897_v32, %v8390_v24  ;;  %v8727_v18 = vmax.f32 %v3370_v16, 0.0  ;;  %v8730_v20 = vrot.slane %v3378_v51, %v8277_v0  ;;  %v8737_v50 = vmax.f32 %v3371_v54, 0.0 }
 0x4b2   :  { %v8735_v11 = vrot.slane %v3919_v2, %v8280_v34  ;;  %v8740_v25 = vrot.slane %v3427_v35, %v8277_v0  ;;  %v1321_v38 = vrot.slane %v8607_v5, %v8280_v34  ;;  %v3913_v53 = vsub.f32 1.0, %v8721_v12 }
 0x4b3   :  { %v2075_v48 = vpack.c.bf16 %v2045_v17, %v2044_v47  ;;  %v8747_v19 = vmax.f32 %v3910_v44, 0.0  ;;  %v2082_v32 = vpack.c.bf16 %v2059_v23, %v2058_v63  ;;  %v8749_v30 = vmax.f32 %v3911_v29, 0.0 }
 0x4b4   :  { %v8751_v51 = vmax.f32 %v3912_v4, 0.0  ;;  %v1325_v47 = vrot.slane %v8614_v62, %v8280_v34  ;;  %v1885_v33 = vrot.slane %v8659_v3, %v8280_v34  ;;  %v1889_v63 = vrot.slane %v8671_v14, %v8280_v34 }
 0x4b5   :  { %7036 = vmatpush3.bf16.msra.mxu0 %v2075_v48  ;;  %v2397_v23 = vcombine.high %v8397_v22, %v8397_v22  ;;  %v1478_v54 = vmul.f32 %v1321_v38, %v8331_v46  ;;  %v2315_v62 = vcombine.high %v8440_v27, %v8440_v27  ;;  %v2329_v12 = vrot.slane %v8440_v27, %v8277_v0 }
 0x4b6   :  { %7037 = vmatprep.subr.bf16.mxu0 %v2082_v32  ;;  %v1479_v35 = vmul.f32 %v1325_v47, %v8331_v46  ;;  %v2042_v3 = vmul.f32 %v1885_v33, %v8390_v24  ;;  %v2043_v14 = vmul.f32 %v1889_v63, %v8390_v24  ;;  %v8778_v29 = vrot.slane %v8747_v19, %v8277_v0 }
 0x4b7   :  { %v2411_v2 = vrot.slane %v2397_v23, %v8277_v0  ;;  %v2343_v4 = vrot.slane %v2315_v62, %v8277_v0  ;;  %v2345_v17 = vcombine.high %v2329_v12, %v2329_v12  ;;  %v2961_v33 = vcombine.high %v8567_v10, %v8567_v10 }
 0x4b8   :  { %9893 = vst [vmem:[#allocation35_spill] sm:$0xff] %v8778_v29  ;;  %v1510_v46 = vpack.c.bf16 %v1479_v35, %v1478_v54  ;;  %v2074_v48 = vpack.c.bf16 %v2043_v14, %v2042_v3  ;;  %v9894_v63 = vcombine.high %v8447_v9, %v8447_v9  ;;  %v2497_v3 = vrot.slane %v2329_v12, %v8280_v34 }
 0x4b9   :  { %v2413_v38 = vcombine.high %v2411_v2, %v2411_v2  ;;  %v2427_v32 = vrot.slane %v2411_v2, %v8277_v0  ;;  %v2347_v47 = vcombine.high %v2343_v4, %v2343_v4  ;;  %v2505_v24 = vrot.slane %v2345_v17, %v8280_v34 }
 0x4ba   :  { %7004 = vmatpush3.bf16.msra.mxu1 %v1510_v46  ;;  %v2877_v23 = vrot.slane %v9894_v63, %v8277_v0  ;;  %7038 = vmatpush3.bf16.msra.mxu0 %v2074_v48  ;;  %v2975_v46 = vrot.slane %v2961_v33, %v8277_v0  ;;  %v8801_v63 = vmax.f32 %v3913_v53, 0.0  ;;  %v2501_v15 = vrot.slane %v2343_v4, %v8280_v34 }
 0x4bb   :  { %v2441_v54 = vrot.slane %v2413_v38, %v8277_v0  ;;  %v2443_v35 = vcombine.high %v2427_v32, %v2427_v32  ;;  %v2561_v62 = vrot.slane %v2427_v32, %v8280_v34  ;;  %v2509_v14 = vrot.slane %v2347_v47, %v8280_v34 }
 0x4bc   :  { %v2620_v2 = vmul.f32 %v2505_v24, %v8428_v56  ;;  %v2879_v17 = vcombine.high %v2877_v23, %v2877_v23  ;;  %v2893_v48 = vrot.slane %v2877_v23, %v8277_v0  ;;  %v2977_v32 = vcombine.high %v2975_v46, %v2975_v46 }
 0x4bd   :  { %1559 = vmatmul.mubr.bf16.vlgmr.msra.gmra.mxu1 %v8203_v37  ;;  %v2445_v59 = vcombine.high %v2441_v54, %v2441_v54  ;;  %v2569_v9 = vrot.slane %v2443_v35, %v8280_v34  ;;  %v2565_v38 = vrot.slane %v2441_v54, %v8280_v34  ;;  %v2621_v12 = vmul.f32 %v2509_v14, %v8428_v56 }
 0x4be   :  { %1566 = vmatprep.mubr.bf16.mxu1 %v8213_v45  ;;  %2123 = vmatmul.mubr.bf16.vlgmr.msra.gmra.mxu0 %v8203_v37  ;;  %v2991_v47 = vrot.slane %v2975_v46, %v8277_v0  ;;  %v2907_v23 = vrot.slane %v2879_v17, %v8277_v0  ;;  %v2909_v54 = vcombine.high %v2893_v48, %v2893_v48 }
 0x4bf   :  { %v2573_v24 = vrot.slane %v2445_v59, %v8280_v34  ;;  %v2636_v33 = vmul.f32 %v2569_v9, %v8435_v60  ;;  %2130 = vmatprep.mubr.bf16.mxu0 %v8213_v45  ;;  %v2645_v53 = vpack.c.bf16 %v2621_v12, %v2620_v2  ;;  %v3005_v35 = vrot.slane %v2977_v32, %v8277_v0 }
 0x4c0   :  { %v3007_v44 = vcombine.high %v2991_v47, %v2991_v47  ;;  %v2634_v14 = vmul.f32 %v2561_v62, %v8435_v60  ;;  %v2911_v27 = vcombine.high %v2907_v23, %v2907_v23  ;;  %v3069_v46 = vrot.slane %v2909_v54, %v8280_v34 }
 0x4c1   :  { %v2637_v16 = vmul.f32 %v2573_v24, %v8435_v60  ;;  %v2635_v59 = vmul.f32 %v2565_v38, %v8435_v60  ;;  %v3009_v5 = vcombine.high %v3005_v35, %v3005_v35  ;;  %v2618_v17 = vmul.f32 %v2497_v3, %v8428_v56 }
 0x4c2   :  { %v3133_v9 = vrot.slane %v3007_v44, %v8280_v34  ;;  %v3073_v12 = vrot.slane %v2911_v27, %v8280_v34  ;;  %v3184_v32 = vmul.f32 %v3069_v46, %v8666_v13  ;;  %v2619_v54 = vmul.f32 %v2501_v15, %v8428_v56 }
 0x4c3   :  { %v2653_v2 = vpack.c.bf16 %v2637_v16, %v2636_v33  ;;  %v2652_v62 = vpack.c.bf16 %v2635_v59, %v2634_v14  ;;  %v3137_v24 = vrot.slane %v3009_v5, %v8280_v34  ;;  %v2404_v38 = vrot.slane %v8397_v22, %v8277_v0 }
 0x4c4   :  { %v3200_v29 = vmul.f32 %v3133_v9, %v8702_v6  ;;  %v3185_v44 = vmul.f32 %v3073_v12, %v8666_v13  ;;  %v3125_v4 = vrot.slane %v2991_v47, %v8280_v34  ;;  %v3129_v16 = vrot.slane %v3005_v35, %v8280_v34 }
 0x4c5   :  { %7057 = vmatprep.subr.bf16.mxu1 %v2653_v2  ;;  %v3061_v27 = vrot.slane %v2893_v48, %v8280_v34  ;;  %v3201_v3 = vmul.f32 %v3137_v24, %v8702_v6  ;;  %v2644_v5 = vpack.c.bf16 %v2619_v54, %v2618_v17  ;;  %v2412_v33 = vcombine.high %v2404_v38, %v2404_v38  ;;  %v8856_v54 = vpop.f32.mrf.mxu1 }
 0x4c6   :  { %7058 = vmatpush3.bf16.msra.mxu1 %v2645_v53  ;;  %v2420_v14 = vrot.slane %v2404_v38, %v8277_v0  ;;  %v3209_v15 = vpack.c.bf16 %v3185_v44, %v3184_v32  ;;  %v3198_v22 = vmul.f32 %v3125_v4, %v8702_v6  ;;  %v3199_v46 = vmul.f32 %v3129_v16, %v8702_v6  ;;  %v8858_v38 = vpop.f32.mrf.mxu0 }
 0x4c7   :  { %7059 = vmatprep.subr.bf16.mxu1 %v2652_v62  ;;  %v3065_v59 = vrot.slane %v2907_v23, %v8280_v34  ;;  %v3217_v47 = vpack.c.bf16 %v3201_v3, %v3200_v29  ;;  %v2434_v35 = vrot.slane %v2412_v33, %v8277_v0  ;;  %v3182_v48 = vmul.f32 %v3061_v27, %v8666_v13 }
 0x4c8   :  { %v2442_v9 = vcombine.high %v2420_v14, %v2420_v14  ;;  %1567 = vmatmul.mubr.bf16.gmra.mxu1 %v8209_v43  ;;  %v3216_v53 = vpack.c.bf16 %v3199_v46, %v3198_v22  ;;  %v2968_v2 = vrot.slane %v8567_v10, %v8277_v0  ;;  %v8844_v12 = vrot.slane %v8408_v52, %v8277_v0  ;;  %v7517_v22 = vpop.f32.mrf.mxu0 }
 0x4c9   :  { %v3183_v17 = vmul.f32 %v3065_v59, %v8666_v13  ;;  %1574 = vmatprep.mubr.bf16.mxu1 %v8315_v21  ;;  %v9895_v29 = vsub.f32 %v8296_v55, %v8724_v39  ;;  %7091 = vmatprep.subr.bf16.mxu0 %v3217_v47  ;;  %v2444_v32 = vcombine.high %v2434_v35, %v2434_v35 }
 0x4ca   :  { %7060 = vmatpush3.bf16.msra.mxu1 %v2644_v5  ;;  %v2553_v62 = vrot.slane %v2442_v9, %v8280_v34  ;;  %v9896_v10 = vcombine.high %v8408_v52, %v8408_v52  ;;  %7092 = vmatpush3.bf16.msra.mxu0 %v3209_v15  ;;  %v2976_v4 = vcombine.high %v2968_v2, %v2968_v2  ;;  %v7492_v15 = vpop.f32.mrf.mxu1 }
 0x4cb   :  { %v8849_v23 = vand.u32 2147483647, %v9895_v29  ;;  %v3208_v44 = vpack.c.bf16 %v3183_v17, %v3182_v48  ;;  %v2984_v39 = vrot.slane %v2968_v2, %v8277_v0  ;;  %v2344_v16 = vcombine.high %v8844_v12, %v8844_v12  ;;  %7093 = vmatprep.subr.bf16.mxu0 %v3216_v53  ;;  %2131 = vmatmul.mubr.bf16.gmra.mxu0 %v8209_v43 }
 0x4cc   :  { %v2336_v24 = vrot.slane %v9896_v10, %v8277_v0  ;;  %v9897_v27 = vsub.f32 %v8296_v55, %v8735_v11  ;;  %v2557_v52 = vrot.slane %v2444_v32, %v8280_v34  ;;  %v2632_v5 = vmul.f32 %v2553_v62, %v8435_v60  ;;  %2138 = vmatprep.mubr.bf16.mxu0 %v8315_v21 }
 0x4cd   :  { %v2998_v46 = vrot.slane %v2976_v4, %v8277_v0  ;;  %v3006_v59 = vcombine.high %v2984_v39, %v2984_v39  ;;  %v2489_v47 = vrot.slane %v2344_v16, %v8280_v34  ;;  %v2545_v9 = vrot.slane %v2420_v14, %v8280_v34 }
 0x4ce   :  { %v8866_v3 = vand.u32 2147483647, %v9897_v27  ;;  %v2346_v33 = vcombine.high %v2336_v24, %v2336_v24  ;;  %v2633_v55 = vmul.f32 %v2557_v52, %v8435_v60  ;;  %v2549_v48 = vrot.slane %v2434_v35, %v8280_v34  ;;  %7094 = vmatpush3.bf16.msra.mxu0 %v3208_v44 }
 0x4cf   :  { %v2878_v53 = vcombine.high %v8677_v42, %v8677_v42  ;;  %v3008_v17 = vcombine.high %v2998_v46, %v2998_v46  ;;  %v3117_v2 = vrot.slane %v3006_v59, %v8280_v34  ;;  %v2616_v29 = vmul.f32 %v2489_v47, %v8428_v56 }
 0x4d0   :  { %v2493_v11 = vrot.slane %v2346_v33, %v8280_v34  ;;  %v2630_v32 = vmul.f32 %v2545_v9, %v8435_v60  ;;  %v2651_v14 = vpack.c.bf16 %v2633_v55, %v2632_v5  ;;  %v2631_v10 = vmul.f32 %v2549_v48, %v8435_v60  ;;  %1575 = vmatmul.mubr.bf16.gmra.mxu1 %v8217_v49 }
 0x4d1   :  { %v2886_v4 = vrot.slane %v8677_v42, %v8277_v0  ;;  %v3121_v35 = vrot.slane %v3008_v17, %v8280_v34  ;;  %v3196_v44 = vmul.f32 %v3117_v2, %v8702_v6  ;;  %v2900_v16 = vrot.slane %v2878_v53, %v8277_v0  ;;  %2686 = vmatprep.mubr.bf16.mxu1 %v8238_v61 }
 0x4d2   :  { %v2617_v62 = vmul.f32 %v2493_v11, %v8428_v56  ;;  %v3109_v27 = vrot.slane %v2984_v39, %v8280_v34  ;;  %7061 = vmatprep.subr.bf16.mxu1 %v2651_v14  ;;  %v2650_v5 = vpack.c.bf16 %v2631_v10, %v2630_v32  ;;  %v3113_v15 = vrot.slane %v2998_v46, %v8280_v34 }
 0x4d3   :  { %v2908_v33 = vcombine.high %v2886_v4, %v2886_v4  ;;  %v3197_v42 = vmul.f32 %v3121_v35, %v8702_v6  ;;  %v2910_v22 = vcombine.high %v2900_v16, %v2900_v16  ;;  %v2481_v47 = vrot.slane %v8844_v12, %v8280_v34  ;;  %2139 = vmatmul.mubr.bf16.gmra.mxu0 %v8217_v49 }
 0x4d4   :  { %v2643_v52 = vpack.c.bf16 %v2617_v62, %v2616_v29  ;;  %v3194_v59 = vmul.f32 %v3109_v27, %v8702_v6  ;;  %v3195_v39 = vmul.f32 %v3113_v15, %v8702_v6  ;;  %v2485_v55 = vrot.slane %v2336_v24, %v8280_v34  ;;  %3250 = vmatprep.mubr.bf16.mxu0 %v8238_v61 }
 0x4d5   :  { %v3053_v9 = vrot.slane %v2908_v33, %v8280_v34  ;;  %v2348_v11 = vcombine.high %v8395_v31, %v8395_v31  ;;  %v3215_v48 = vpack.c.bf16 %v3197_v42, %v3196_v44  ;;  %v3057_v46 = vrot.slane %v2910_v22, %v8280_v34 }
 0x4d6   :  { %7062 = vmatpush3.bf16.msra.mxu1 %v2643_v52  ;;  %v2614_v53 = vmul.f32 %v2481_v47, %v8428_v56  ;;  %v3045_v17 = vrot.slane %v2886_v4, %v8280_v34  ;;  %v3214_v2 = vpack.c.bf16 %v3195_v39, %v3194_v59  ;;  %v2615_v29 = vmul.f32 %v2485_v55, %v8428_v56 }
 0x4d7   :  { %7063 = vmatprep.subr.bf16.mxu1 %v2650_v5  ;;  %v3180_v12 = vmul.f32 %v3053_v9, %v8666_v13  ;;  %v2362_v32 = vrot.slane %v2348_v11, %v8277_v0  ;;  %7095 = vmatprep.subr.bf16.mxu0 %v3215_v48  ;;  %v3181_v24 = vmul.f32 %v3057_v46, %v8666_v13 }
 0x4d8   :  { %v3049_v14 = vrot.slane %v2900_v16, %v8280_v34  ;;  %v3178_v62 = vmul.f32 %v3045_v17, %v8666_v13  ;;  %v2912_v10 = vcombine.high %v8455_v8, %v8455_v8  ;;  %v2642_v4 = vpack.c.bf16 %v2615_v29, %v2614_v53 }
 0x4d9   :  { %v2364_v35 = vcombine.high %v2362_v32, %v2362_v32  ;;  %v2378_v44 = vrot.slane %v2362_v32, %v8277_v0  ;;  %v2266_v27 = vcombine.high %v8403_v36, %v8403_v36  ;;  %v3207_v52 = vpack.c.bf16 %v3181_v24, %v3180_v12 }
 0x4da   :  { %v3179_v5 = vmul.f32 %v3049_v14, %v8666_v13  ;;  %v2926_v33 = vrot.slane %v2912_v10, %v8277_v0  ;;  %v2280_v16 = vrot.slane %v8403_v36, %v8277_v0  ;;  %7064 = vmatpush3.bf16.msra.mxu1 %v2642_v4 }
 0x4db   :  { %v2392_v15 = vrot.slane %v2364_v35, %v8277_v0  ;;  %v2394_v42 = vcombine.high %v2378_v44, %v2378_v44  ;;  %v2294_v22 = vrot.slane %v2266_v27, %v8277_v0  ;;  %v2529_v59 = vrot.slane %v2378_v44, %v8280_v34  ;;  %7096 = vmatpush3.bf16.msra.mxu0 %v3207_v52 }
 0x4dc   :  { %v3206_v47 = vpack.c.bf16 %v3179_v5, %v3178_v62  ;;  %v2928_v9 = vcombine.high %v2926_v33, %v2926_v33  ;;  %v2942_v39 = vrot.slane %v2926_v33, %v8277_v0  ;;  %v2296_v55 = vcombine.high %v2280_v16, %v2280_v16  ;;  %7097 = vmatprep.subr.bf16.mxu0 %v3214_v2 }
 0x4dd   :  { %v2396_v11 = vcombine.high %v2392_v15, %v2392_v15  ;;  %v2537_v48 = vrot.slane %v2394_v42, %v8280_v34  ;;  %v2298_v46 = vcombine.high %v2294_v22, %v2294_v22  ;;  %v2533_v36 = vrot.slane %v2392_v15, %v8280_v34 }
 0x4de   :  { %v2956_v53 = vrot.slane %v2928_v9, %v8277_v0  ;;  %v2958_v17 = vcombine.high %v2942_v39, %v2942_v39  ;;  %v2473_v12 = vrot.slane %v2296_v55, %v8280_v34  ;;  %v2626_v29 = vmul.f32 %v2529_v59, %v8435_v60 }
 0x4df   :  { %v2541_v32 = vrot.slane %v2396_v11, %v8280_v34  ;;  %v2628_v24 = vmul.f32 %v2537_v48, %v8435_v60  ;;  %v2477_v14 = vrot.slane %v2298_v46, %v8280_v34  ;;  %v2627_v2 = vmul.f32 %v2533_v36, %v8435_v60  ;;  %7098 = vmatpush3.bf16.msra.mxu0 %v3206_v47 }
 0x4e0   :  { %v2960_v62 = vcombine.high %v2956_v53, %v2956_v53  ;;  %v3101_v10 = vrot.slane %v2958_v17, %v8280_v34  ;;  %v2612_v4 = vmul.f32 %v2473_v12, %v8428_v56  ;;  %v9898_v35 = vcombine.high %v8445_v28, %v8445_v28 }
 0x4e1   :  { %v2629_v27 = vmul.f32 %v2541_v32, %v8435_v60  ;;  %v2613_v52 = vmul.f32 %v2477_v14, %v8428_v56  ;;  %v2648_v5 = vpack.c.bf16 %v2627_v2, %v2626_v29  ;;  %v3093_v33 = vrot.slane %v2942_v39, %v8280_v34 }
 0x4e2   :  { %v2828_v44 = vrot.slane %v9898_v35, %v8277_v0  ;;  %v3105_v15 = vrot.slane %v2960_v62, %v8280_v34  ;;  %v3192_v42 = vmul.f32 %v3101_v10, %v8702_v6  ;;  %v3097_v11 = vrot.slane %v2956_v53, %v8280_v34 }
 0x4e3   :  { %v2649_v9 = vpack.c.bf16 %v2629_v27, %v2628_v24  ;;  %v2641_v55 = vpack.c.bf16 %v2613_v52, %v2612_v4  ;;  %v3190_v28 = vmul.f32 %v3093_v33, %v8702_v6  ;;  %v2465_v39 = vrot.slane %v2280_v16, %v8280_v34 }
 0x4e4   :  { %v2830_v59 = vcombine.high %v2828_v44, %v2828_v44  ;;  %v2844_v47 = vrot.slane %v2828_v44, %v8277_v0  ;;  %v3193_v48 = vmul.f32 %v3105_v15, %v8702_v6  ;;  %v3191_v17 = vmul.f32 %v3097_v11, %v8702_v6 }
 0x4e5   :  { %7065 = vmatprep.subr.bf16.mxu1 %v2649_v9  ;;  %v2469_v12 = vrot.slane %v2294_v22, %v8280_v34  ;;  %v2355_v29 = vrot.slane %v8395_v31, %v8277_v0  ;;  %v2610_v2 = vmul.f32 %v2465_v39, %v8428_v56 }
 0x4e6   :  { %v2858_v46 = vrot.slane %v2830_v59, %v8277_v0  ;;  %v2860_v36 = vcombine.high %v2844_v47, %v2844_v47  ;;  %v3029_v32 = vrot.slane %v2844_v47, %v8280_v34  ;;  %v3213_v53 = vpack.c.bf16 %v3193_v48, %v3192_v42  ;;  %7066 = vmatpush3.bf16.msra.mxu1 %v2641_v55 }
 0x4e7   :  { %7067 = vmatprep.subr.bf16.mxu1 %v2648_v5  ;;  %v3212_v62 = vpack.c.bf16 %v3191_v17, %v3190_v28  ;;  %v2611_v16 = vmul.f32 %v2469_v12, %v8428_v56  ;;  %v2363_v10 = vcombine.high %v2355_v29, %v2355_v29  ;;  %v2371_v4 = vrot.slane %v2355_v29, %v8277_v0 }
 0x4e8   :  { %v2862_v24 = vcombine.high %v2858_v46, %v2858_v46  ;;  %v3037_v14 = vrot.slane %v2860_v36, %v8280_v34  ;;  %7099 = vmatprep.subr.bf16.mxu0 %v3213_v53  ;;  %v3033_v35 = vrot.slane %v2858_v46, %v8280_v34  ;;  %v3174_v44 = vmul.f32 %v3029_v32, %v8666_v13 }
 0x4e9   :  { %v2640_v27 = vpack.c.bf16 %v2611_v16, %v2610_v2  ;;  %v2385_v52 = vrot.slane %v2363_v10, %v8277_v0  ;;  %v2393_v33 = vcombine.high %v2371_v4, %v2371_v4  ;;  %v2919_v5 = vrot.slane %v8455_v8, %v8277_v0  ;;  %v1039_v2 = vld [vmem:[#allocation12 + $0x18] sm:$0xff] }
 0x4ea   :  { %v3041_v22 = vrot.slane %v2862_v24, %v8280_v34  ;;  %v3176_v31 = vmul.f32 %v3037_v14, %v8666_v13  ;;  %v3175_v42 = vmul.f32 %v3033_v35, %v8666_v13  ;;  %v8973_v59 = vrot.slane %v8388_v26, %v8277_v0 }
 0x4eb   :  { %v9899_v47 = vcombine.high %v8388_v26, %v8388_v26  ;;  %7068 = vmatpush3.bf16.msra.mxu1 %v2640_v27  ;;  %v2395_v55 = vcombine.high %v2385_v52, %v2385_v52  ;;  %v2521_v11 = vrot.slane %v2393_v33, %v8280_v34  ;;  %v2927_v28 = vcombine.high %v2919_v5, %v2919_v5 }
 0x4ec   :  { %v3177_v15 = vmul.f32 %v3041_v22, %v8666_v13  ;;  %v2935_v8 = vrot.slane %v2919_v5, %v8277_v0  ;;  %v3204_v46 = vpack.c.bf16 %v3175_v42, %v3174_v44  ;;  %v2295_v36 = vcombine.high %v8973_v59, %v8973_v59 }
 0x4ed   :  { %v8979_v9 = vrot.slane %v9899_v47, %v8277_v0  ;;  %v2525_v17 = vrot.slane %v2395_v55, %v8280_v34  ;;  %v2624_v26 = vmul.f32 %v2521_v11, %v8435_v60  ;;  %v2949_v12 = vrot.slane %v2927_v28, %v8277_v0  ;;  %v9900_v47 = vld [vmem:[#allocation34_spill] sm:$0xff] }
 0x4ee   :  { %v3205_v48 = vpack.c.bf16 %v3177_v15, %v3176_v31  ;;  %v2957_v29 = vcombine.high %v2935_v8, %v2935_v8  ;;  %v2457_v32 = vrot.slane %v2295_v36, %v8280_v34  ;;  %v2513_v24 = vrot.slane %v2371_v4, %v8280_v34 }
 0x4ef   :  { %v2297_v39 = vcombine.high %v8979_v9, %v8979_v9  ;;  %v2517_v14 = vrot.slane %v2385_v52, %v8280_v34  ;;  %v2625_v16 = vmul.f32 %v2525_v17, %v8435_v60  ;;  %v2959_v10 = vcombine.high %v2949_v12, %v2949_v12 }
 0x4f0   :  { %7100 = vmatpush3.bf16.msra.mxu0 %v3205_v48  ;;  %v3085_v22 = vrot.slane %v2957_v29, %v8280_v34  ;;  %v1028_v31 = vadd.f32 %v8504_v58, %v8502_v57  ;;  %v2608_v35 = vmul.f32 %v2457_v32, %v8428_v56  ;;  %v2622_v27 = vmul.f32 %v2513_v24, %v8435_v60 }
 0x4f1   :  { %v2461_v53 = vrot.slane %v2297_v39, %v8280_v34  ;;  %7101 = vmatprep.subr.bf16.mxu0 %v3212_v62  ;;  %v2623_v4 = vmul.f32 %v2517_v14, %v8435_v60  ;;  %v2647_v33 = vpack.c.bf16 %v2625_v16, %v2624_v26  ;;  %v3089_v52 = vrot.slane %v2959_v10, %v8280_v34 }
 0x4f2   :  { %v3188_v62 = vmul.f32 %v3085_v22, %v8702_v6  ;;  %v1044_v5 = vadd.f32 %v1039_v2, %v1028_v31  ;;  %v2829_v57 = vcombine.high %v9900_v47, %v9900_v47  ;;  %v9008_v58 = vrot.slane %v9900_v47, %v8277_v0 }
 0x4f3   :  { %v2609_v44 = vmul.f32 %v2461_v53, %v8428_v56  ;;  %v2646_v42 = vpack.c.bf16 %v2623_v4, %v2622_v27  ;;  %7069 = vmatprep.subr.bf16.mxu1 %v2647_v33  ;;  %v3189_v55 = vmul.f32 %v3089_v52, %v8702_v6  ;;  %v3077_v28 = vrot.slane %v2935_v8, %v8280_v34  ;;  %v9046_v27 = vld [vmem:[#allocation11 + $0x8] sm:$0xff] }
 0x4f4   :  { %7102 = vmatpush3.bf16.msra.mxu0 %v3204_v46  ;;  %v4440_v60 = vrot.slane %v1044_v5, %v8277_v0  ;;  %v4997_v11 = vcombine.high %v1044_v5, %v1044_v5  ;;  %v3934_v48 = vsub.f32 1.0, %v8849_v23  ;;  %v9016_v46 = vrot.slane %v8749_v30, %v8277_v0 }
 0x4f5   :  { %v2639_v15 = vpack.c.bf16 %v2609_v44, %v2608_v35  ;;  %v9019_v36 = vrot.slane %v2829_v57, %v8277_v0  ;;  %v3081_v39 = vrot.slane %v2949_v12, %v8280_v34  ;;  %v3211_v17 = vpack.c.bf16 %v3189_v55, %v3188_v62  ;;  %v9043_v35 = vld [vmem:[#allocation11] sm:$0xff] }
 0x4f6   :  { %v4441_v26 = vcombine.high %v4440_v60, %v4440_v60  ;;  %v4448_v29 = vrot.slane %v4440_v60, %v8277_v0  ;;  %v5004_v32 = vrot.slane %v4997_v11, %v8277_v0  ;;  %v3935_v8 = vsub.f32 1.0, %v8866_v3  ;;  %v9059_v11 = vld [vmem:[%s9861_s5] sm:$0xff]  ;;  %s7911_s5 = smov [#allocation21]  }
 0x4f7   :  { %7070 = vmatpush3.bf16.msra.mxu1 %v2639_v15  ;;  %v2859_v23 = vcombine.high %v9008_v58, %v9008_v58  ;;  %v9028_v53 = vmul.f32 %v3077_v28, %v8702_v6  ;;  %v9031_v24 = vmul.f32 %v3081_v39, %v8702_v6  ;;  %7103 = vmatprep.subr.bf16.mxu0 %v3211_v17  ;;  %v9035_v10 = vmax.f32 %v3934_v48, 0.0  ;;  %s6543_s18 = sshll.u32 %s7911_s5, 4  ;;  %s6544_s18 = int_to_ptr.vmem [resolvable:$true] %s6543_s18 }
 0x4f8   :  { %7071 = vmatprep.subr.bf16.mxu1 %v2646_v42  ;;  %v4455_v12 = vrot.slane %v4441_v26, %v8277_v0  ;;  %v4459_v14 = vrot.slane %v4448_v29, %v8280_v34  ;;  %v4482_v2 = vcombine.high %v4448_v29, %v4448_v29  ;;  %v5005_v16 = vcombine.high %v5004_v32, %v5004_v32  ;;  %s7858_s1 = scalar_lea.vmem %s6544_s18, 640  ;;  %p7863_p0 = scmp.lt.s32.totalorder %s6544_s18, %s6544_s18 }
 0x4f9   :  { %v5012_v3 = vrot.slane %v5004_v32, %v8277_v0  ;;  %v2861_v22 = vcombine.high %v9019_v36, %v9019_v36  ;;  %v3021_v15 = vrot.slane %v2859_v23, %v8280_v34  ;;  %v9064_v23 = vmax.f32 %v3935_v8, 0.0  ;;  %p7859_p13 = scmp.ne.s32.totalorder %s6544_s18, %s7858_s1  ;;  %p7864_p1 = scmp.lt.s32.totalorder %s7858_s1, %s7858_s1 }
 0x4fa   :  { %v4463_v6 = vrot.slane %v4455_v12, %v8280_v34  ;;  %v4466_v44 = vsub.f32 %v9043_v35, %v4459_v14  ;;  %v4467_v4 = vsub.f32 %v9046_v27, %v4459_v14  ;;  %v4483_v33 = vcombine.high %v4455_v12, %v4455_v12 }
 0x4fb   :  { %v4487_v52 = vrot.slane %v4482_v2, %v8280_v34  ;;  %v5019_v62 = vrot.slane %v5005_v16, %v8277_v0  ;;  %v5023_v5 = vrot.slane %v5012_v3, %v8280_v34  ;;  %v3172_v8 = vmul.f32 %v3021_v15, %v8666_v13  ;;  %p7865_p2 = por %p7864_p1, %p7863_p0 }
 0x4fc   :  { %v4468_v42 = vsub.f32 %v9043_v35, %v4463_v6  ;;  %v4469_v47 = vsub.f32 %v9046_v27, %v4463_v6  ;;  %v4470_v57 = vand.u32 2147483647, %v4466_v44  ;;  %v4471_v55 = vand.u32 2147483647, %v4467_v4 }
 0x4fd   :  { %v4491_v60 = vrot.slane %v4483_v33, %v8280_v34  ;;  %v4494_v28 = vsub.f32 %v9059_v11, %v4487_v52  ;;  %v5027_v48 = vrot.slane %v5019_v62, %v8280_v34  ;;  %v5030_v39 = vsub.f32 %v9043_v35, %v5023_v5  ;;  %p7866_p3 = pnand %p7865_p2, %p7859_p13 }
 0x4fe   :  { %v4472_v17 = vand.u32 2147483647, %v4468_v42  ;;  %v4473_v26 = vand.u32 2147483647, %v4469_v47  ;;  %v4474_v29 = vsub.f32 1.0, %v4470_v57  ;;  %v4475_v32 = vsub.f32 1.0, %v4471_v55 }
 0x4ff   :  { %v4495_v12 = vsub.f32 %v9059_v11, %v4491_v60  ;;  %v4496_v14 = vand.u32 2147483647, %v4494_v28  ;;  %v5031_v2 = vsub.f32 %v9046_v27, %v5023_v5  ;;  %v5032_v4 = vsub.f32 %v9043_v35, %v5027_v48 }
 0x500   :  { %v4476_v16 = vsub.f32 1.0, %v4472_v17  ;;  %v4477_v6 = vsub.f32 1.0, %v4473_v26  ;;  %v4478_v44 = vmax.f32 %v4474_v29, 0.0  ;;  %v4479_v33 = vmax.f32 %v4475_v32, 0.0 }
 0x501   :  { %v4497_v52 = vand.u32 2147483647, %v4495_v12  ;;  %v4498_v31 = vsub.f32 1.0, %v4496_v14  ;;  %v5033_v42 = vsub.f32 %v9046_v27, %v5027_v48  ;;  %v5034_v47 = vand.u32 2147483647, %v5030_v39 }
 0x502   :  { %v3025_v57 = vrot.slane %v2861_v22, %v8280_v34  ;;  %v2449_v55 = vrot.slane %v8973_v59, %v8280_v34  ;;  %v9074_v60 = vmax.f32 %v4476_v16, 0.0  ;;  %v9076_v5 = vmax.f32 %v4477_v6, 0.0 }
 0x503   :  { %v4506_v28 = vcombine.high %v4478_v44, %v4478_v44  ;;  %v5046_v17 = vcombine.high %v5012_v3, %v5012_v3  ;;  %v4499_v26 = vsub.f32 1.0, %v4497_v52  ;;  %v9079_v29 = vrot.slane %v4478_v44, %v8277_v0 }
 0x504   :  { %9901 = vst [vmem:[#allocation34_spill] sm:$0xff] %v9074_v60  ;;  %v5035_v32 = vand.u32 2147483647, %v5031_v2  ;;  %v5036_v48 = vand.u32 2147483647, %v5032_v4  ;;  %v9081_v39 = vmax.f32 %v4498_v31, 0.0  ;;  %v4555_v22 = vcombine.high %v4479_v33, %v4479_v33 }
 0x505   :  { %9902 = vst [vmem:[#allocation36_spill] sm:$0xff] %v9079_v29  ;;  %v9084_v15 = vrot.slane %v4479_v33, %v8277_v0  ;;  %v5037_v12 = vand.u32 2147483647, %v5033_v42  ;;  %v5038_v59 = vsub.f32 1.0, %v5034_v47  ;;  %v5047_v6 = vcombine.high %v5019_v62, %v5019_v62 }
 0x506   :  { %v5039_v14 = vsub.f32 1.0, %v5035_v32  ;;  %v5040_v16 = vsub.f32 1.0, %v5036_v48  ;;  %v5051_v3 = vrot.slane %v5046_v17, %v8280_v34  ;;  %v3173_v52 = vmul.f32 %v3025_v57, %v8666_v13 }
 0x507   :  { %v5041_v60 = vsub.f32 1.0, %v5037_v12  ;;  %v2453_v2 = vrot.slane %v8979_v9, %v8280_v34  ;;  %v9091_v31 = vrot.slane %v4506_v28, %v8277_v0  ;;  %v9095_v4 = vmax.f32 %v5038_v59, 0.0 }
 0x508   :  { %v5055_v33 = vrot.slane %v5047_v6, %v8280_v34  ;;  %v9098_v42 = vmax.f32 %v4499_v26, 0.0  ;;  %v9101_v62 = vrot.slane %v4555_v22, %v8277_v0  ;;  %v3203_v47 = vpack.c.bf16 %v3173_v52, %v3172_v8 }
 0x509   :  { %9903 = vst [vmem:[#allocation37_spill] sm:$0xff] %v9095_v4  ;;  %v2606_v57 = vmul.f32 %v2449_v55, %v8428_v56  ;;  %v9106_v28 = vmax.f32 %v5039_v14, 0.0  ;;  %v9108_v17 = vmax.f32 %v5040_v16, 0.0  ;;  %v9110_v32 = vmax.f32 %v5041_v60, 0.0 }
 0x50a   :  { %v5058_v48 = vsub.f32 %v9059_v11, %v5051_v3  ;;  %v5059_v26 = vsub.f32 %v9059_v11, %v5055_v33  ;;  %7104 = vmatpush3.bf16.msra.mxu0 %v3203_v47  ;;  %v2607_v22 = vmul.f32 %v2453_v2, %v8428_v56  ;;  %v3013_v8 = vrot.slane %v9008_v58, %v8280_v34 }
 0x50b   :  { %v9904_v12 = vpack.c.bf16 %v9031_v24, %v9028_v53  ;;  %v3017_v60 = vrot.slane %v9019_v36, %v8280_v34  ;;  %v3525_v59 = vcombine.high %v8716_v41, %v8716_v41  ;;  %v3443_v14 = vcombine.high %v8740_v25, %v8740_v25 }
 0x50c   :  { %v9130_v56 = vrot.slane %v9095_v4, %v8277_v0  ;;  %v2638_v58 = vpack.c.bf16 %v2607_v22, %v2606_v57  ;;  %v3170_v16 = vmul.f32 %v3013_v8, %v8666_v13  ;;  %v9135_v53 = vrot.slane %v8740_v25, %v8277_v0 }
 0x50d   :  { %7105 = vmatprep.subr.bf16.mxu0 %v9904_v12  ;;  %v3171_v24 = vmul.f32 %v3017_v60, %v8666_v13  ;;  %v3539_v6 = vrot.slane %v3525_v59, %v8277_v0  ;;  %v9142_v3 = vrot.slane %v3443_v14, %v8277_v0  ;;  %v9144_v52 = vand.u32 2147483647, %v5058_v48 }
 0x50e   :  { %9905 = vst [vmem:[#allocation38_spill] sm:$0xff] %v9130_v56  ;;  %7072 = vmatpush3.bf16.msra.mxu1 %v2638_v58  ;;  %v3473_v2 = vcombine.high %v9135_v53, %v9135_v53  ;;  %v4089_v25 = vcombine.high %v8801_v63, %v8801_v63  ;;  %v9906_v33 = vcombine.high %v8749_v30, %v8749_v30  ;;  %v9163_v14 = vand.u32 2147483647, %v5059_v26 }
 0x50f   :  { %v9156_v13 = vrot.slane %v9106_v28, %v8277_v0  ;;  %v3202_v57 = vpack.c.bf16 %v3171_v24, %v3170_v16  ;;  %v3541_v22 = vcombine.high %v3539_v6, %v3539_v6  ;;  %v3555_v48 = vrot.slane %v3539_v6, %v8277_v0 }
 0x510   :  { %v4005_v47 = vrot.slane %v9906_v33, %v8277_v0  ;;  %v3475_v8 = vcombine.high %v9142_v3, %v9142_v3  ;;  %v3633_v12 = vrot.slane %v3473_v2, %v8280_v34  ;;  %v4103_v60 = vrot.slane %v4089_v25, %v8277_v0 }
 0x511   :  { %7106 = vmatpush3.bf16.msra.mxu0 %v3202_v57  ;;  %2687 = vmatmul.mubr.bf16.vlgmr.msra.gmra.mxu1 %v8203_v37  ;;  %v3569_v30 = vrot.slane %v3541_v22, %v8277_v0  ;;  %v3571_v58 = vcombine.high %v3555_v48, %v3555_v48 }
 0x512   :  { %v4007_v59 = vcombine.high %v4005_v47, %v4005_v47  ;;  %v4021_v16 = vrot.slane %v4005_v47, %v8277_v0  ;;  %2694 = vmatprep.mubr.bf16.mxu1 %v8213_v45  ;;  %v3637_v24 = vrot.slane %v3475_v8, %v8280_v34  ;;  %v3748_v6 = vmul.f32 %v3633_v12, %v8727_v18 }
 0x513   :  { %v4105_v2 = vcombine.high %v4103_v60, %v4103_v60  ;;  %v4119_v25 = vrot.slane %v4103_v60, %v8277_v0  ;;  %v3573_v33 = vcombine.high %v3569_v30, %v3569_v30  ;;  %v3697_v26 = vrot.slane %v3571_v58, %v8280_v34 }
 0x514   :  { %v4035_v57 = vrot.slane %v4007_v59, %v8277_v0  ;;  %v4037_v44 = vcombine.high %v4021_v16, %v4021_v16  ;;  %v3749_v22 = vmul.f32 %v3637_v24, %v8727_v18  ;;  %3251 = vmatmul.mubr.bf16.vlgmr.msra.gmra.mxu0 %v8203_v37  ;;  %v3689_v8 = vrot.slane %v3555_v48, %v8280_v34 }
 0x515   :  { %v4133_v47 = vrot.slane %v4105_v2, %v8277_v0  ;;  %v4135_v55 = vcombine.high %v4119_v25, %v4119_v25  ;;  %v3701_v12 = vrot.slane %v3573_v33, %v8280_v34  ;;  %v3764_v9 = vmul.f32 %v3697_v26, %v8737_v50  ;;  %3258 = vmatprep.mubr.bf16.mxu0 %v8213_v45 }
 0x516   :  { %v4039_v60 = vcombine.high %v4035_v57, %v4035_v57  ;;  %v4197_v58 = vrot.slane %v4037_v44, %v8280_v34  ;;  %v3773_v59 = vpack.c.bf16 %v3749_v22, %v3748_v6  ;;  %v3693_v56 = vrot.slane %v3569_v30, %v8280_v34 }
 0x517   :  { %v4137_v36 = vcombine.high %v4133_v47, %v4133_v47  ;;  %v4261_v24 = vrot.slane %v4135_v55, %v8280_v34  ;;  %v3765_v2 = vmul.f32 %v3701_v12, %v8737_v50  ;;  %v3762_v33 = vmul.f32 %v3689_v8, %v8737_v50 }
 0x518   :  { %v4201_v29 = vrot.slane %v4039_v60, %v8280_v34  ;;  %v4312_v48 = vmul.f32 %v4197_v58, %v9035_v10  ;;  %v3763_v44 = vmul.f32 %v3693_v56, %v8737_v50  ;;  %v3625_v6 = vrot.slane %v9135_v53, %v8280_v34 }
 0x519   :  { %v4265_v26 = vrot.slane %v4137_v36, %v8280_v34  ;;  %v4328_v4 = vmul.f32 %v4261_v24, %v9064_v23  ;;  %v3781_v55 = vpack.c.bf16 %v3765_v2, %v3764_v9  ;;  %v3629_v22 = vrot.slane %v9142_v3, %v8280_v34  ;;  %2695 = vmatmul.mubr.bf16.gmra.mxu1 %v8209_v43 }
 0x51a   :  { %v4313_v30 = vmul.f32 %v4201_v29, %v9035_v10  ;;  %v3532_v12 = vrot.slane %v8716_v41, %v8277_v0  ;;  %v3780_v8 = vpack.c.bf16 %v3763_v44, %v3762_v33  ;;  %v3746_v60 = vmul.f32 %v3625_v6, %v8727_v18  ;;  %2702 = vmatprep.mubr.bf16.mxu1 %v8315_v21 }
 0x51b   :  { %v4329_v36 = vmul.f32 %v4265_v26, %v9064_v23  ;;  %v4253_v56 = vrot.slane %v4119_v25, %v8280_v34  ;;  %7125 = vmatprep.subr.bf16.mxu1 %v3781_v55  ;;  %v3747_v29 = vmul.f32 %v3629_v22, %v8727_v18  ;;  %v4257_v58 = vrot.slane %v4133_v47, %v8280_v34 }
 0x51c   :  { %v4337_v9 = vpack.c.bf16 %v4313_v30, %v4312_v48  ;;  %v3540_v53 = vcombine.high %v3532_v12, %v3532_v12  ;;  %v3548_v3 = vrot.slane %v3532_v12, %v8277_v0  ;;  %7126 = vmatpush3.bf16.msra.mxu1 %v3773_v59  ;;  %v4189_v2 = vrot.slane %v4021_v16, %v8280_v34 }
 0x51d   :  { %v4345_v41 = vpack.c.bf16 %v4329_v36, %v4328_v4  ;;  %v4326_v24 = vmul.f32 %v4253_v56, %v9064_v23  ;;  %7127 = vmatprep.subr.bf16.mxu1 %v3780_v8  ;;  %v3772_v33 = vpack.c.bf16 %v3747_v29, %v3746_v60  ;;  %v4193_v48 = vrot.slane %v4035_v57, %v8280_v34 }
 0x51e   :  { %v3562_v25 = vrot.slane %v3540_v53, %v8277_v0  ;;  %v3570_v26 = vcombine.high %v3548_v3, %v3548_v3  ;;  %v4327_v44 = vmul.f32 %v4257_v58, %v9064_v23  ;;  %v4310_v6 = vmul.f32 %v4189_v2, %v9035_v10  ;;  %3259 = vmatmul.mubr.bf16.gmra.mxu0 %v8209_v43 }
 0x51f   :  { %7159 = vmatprep.subr.bf16.mxu0 %v4345_v41  ;;  %v4096_v4 = vrot.slane %v8801_v63, %v8277_v0  ;;  %v3450_v47 = vrot.slane %v8719_v7, %v8277_v0  ;;  %v4311_v55 = vmul.f32 %v4193_v48, %v9035_v10  ;;  %v9907_v57 = vcombine.high %v8719_v7, %v8719_v7 }
 0x520   :  { %7160 = vmatpush3.bf16.msra.mxu0 %v4337_v9  ;;  %v3572_v16 = vcombine.high %v3562_v25, %v3562_v25  ;;  %v3681_v59 = vrot.slane %v3570_v26, %v8280_v34  ;;  %7128 = vmatpush3.bf16.msra.mxu1 %v3772_v33  ;;  %v4344_v22 = vpack.c.bf16 %v4327_v44, %v4326_v24  ;;  %v5062_v58 = vsub.f32 1.0, %v9144_v52 }
 0x521   :  { %v3464_v30 = vrot.slane %v9907_v57, %v8277_v0  ;;  %v4104_v12 = vcombine.high %v4096_v4, %v4096_v4  ;;  %v4112_v36 = vrot.slane %v4096_v4, %v8277_v0  ;;  %v3472_v63 = vcombine.high %v3450_v47, %v3450_v47  ;;  %3266 = vmatprep.mubr.bf16.mxu0 %v8315_v21 }
 0x522   :  { %v3685_v8 = vrot.slane %v3572_v16, %v8280_v34  ;;  %v3760_v60 = vmul.f32 %v3681_v59, %v8737_v50  ;;  %v4336_v56 = vpack.c.bf16 %v4311_v55, %v4310_v6  ;;  %7161 = vmatprep.subr.bf16.mxu0 %v4344_v22  ;;  %v3673_v41 = vrot.slane %v3548_v3, %v8280_v34 }
 0x523   :  { %v3474_v9 = vcombine.high %v3464_v30, %v3464_v30  ;;  %v4126_v29 = vrot.slane %v4104_v12, %v8277_v0  ;;  %v4134_v53 = vcombine.high %v4112_v36, %v4112_v36  ;;  %v3617_v7 = vrot.slane %v3472_v63, %v8280_v34  ;;  %2703 = vmatmul.mubr.bf16.gmra.mxu1 %v8217_v49 }
 0x524   :  { %v3761_v24 = vmul.f32 %v3685_v8, %v8737_v50  ;;  %7162 = vmatpush3.bf16.msra.mxu0 %v4336_v56  ;;  %v3677_v33 = vrot.slane %v3562_v25, %v8280_v34  ;;  %v3758_v6 = vmul.f32 %v3673_v41, %v8737_v50  ;;  %v4006_v59 = vcombine.high %v9016_v46, %v9016_v46 }
 0x525   :  { %v3621_v2 = vrot.slane %v3474_v9, %v8280_v34  ;;  %v4136_v26 = vcombine.high %v4126_v29, %v4126_v29  ;;  %v4245_v48 = vrot.slane %v4134_v53, %v8280_v34  ;;  %v3744_v44 = vmul.f32 %v3617_v7, %v8727_v18  ;;  %3814 = vmatprep.mubr.bf16.mxu1 %v8238_v61 }
 0x526   :  { %v3779_v3 = vpack.c.bf16 %v3761_v24, %v3760_v60  ;;  %v3759_v16 = vmul.f32 %v3677_v33, %v8737_v50  ;;  %v4014_v57 = vrot.slane %v9016_v46, %v8277_v0  ;;  %v4237_v22 = vrot.slane %v4112_v36, %v8280_v34  ;;  %3267 = vmatmul.mubr.bf16.gmra.mxu0 %v8217_v49 }
 0x527   :  { %v3745_v4 = vmul.f32 %v3621_v2, %v8727_v18  ;;  %v4249_v25 = vrot.slane %v4136_v26, %v8280_v34  ;;  %v4324_v55 = vmul.f32 %v4245_v48, %v9064_v23  ;;  %v4028_v8 = vrot.slane %v4006_v59, %v8277_v0  ;;  %4378 = vmatprep.mubr.bf16.mxu0 %v8238_v61 }
 0x528   :  { %7129 = vmatprep.subr.bf16.mxu1 %v3779_v3  ;;  %v3778_v63 = vpack.c.bf16 %v3759_v16, %v3758_v6  ;;  %v4241_v60 = vrot.slane %v4126_v29, %v8280_v34  ;;  %v4036_v9 = vcombine.high %v4014_v57, %v4014_v57  ;;  %v4322_v53 = vmul.f32 %v4237_v22, %v9064_v23 }
 0x529   :  { %v3771_v12 = vpack.c.bf16 %v3745_v4, %v3744_v44  ;;  %v4325_v56 = vmul.f32 %v4249_v25, %v9064_v23  ;;  %v3609_v7 = vrot.slane %v3450_v47, %v8280_v34  ;;  %v4038_v41 = vcombine.high %v4028_v8, %v4028_v8 }
 0x52a   :  { %v4323_v46 = vmul.f32 %v4241_v60, %v9064_v23  ;;  %v3613_v36 = vrot.slane %v3464_v30, %v8280_v34  ;;  %v3476_v24 = vcombine.high %v8714_v1, %v8714_v1  ;;  %v4181_v29 = vrot.slane %v4036_v9, %v8280_v34 }
 0x52b   :  { %7130 = vmatpush3.bf16.msra.mxu1 %v3771_v12  ;;  %v4343_v2 = vpack.c.bf16 %v4325_v56, %v4324_v55  ;;  %v3742_v33 = vmul.f32 %v3609_v7, %v8727_v18  ;;  %v4173_v26 = vrot.slane %v4014_v57, %v8280_v34  ;;  %v4185_v48 = vrot.slane %v4038_v41, %v8280_v34 }
 0x52c   :  { %7131 = vmatprep.subr.bf16.mxu1 %v3778_v63  ;;  %v4342_v47 = vpack.c.bf16 %v4323_v46, %v4322_v53  ;;  %v3743_v44 = vmul.f32 %v3613_v36, %v8727_v18  ;;  %v3490_v6 = vrot.slane %v3476_v24, %v8277_v0  ;;  %v4308_v30 = vmul.f32 %v4181_v29, %v9035_v10 }
 0x52d   :  { %7163 = vmatprep.subr.bf16.mxu0 %v4343_v2  ;;  %v4177_v3 = vrot.slane %v4028_v8, %v8280_v34  ;;  %v4306_v4 = vmul.f32 %v4173_v26, %v9035_v10  ;;  %v4040_v16 = vcombine.high %v8751_v51, %v8751_v51  ;;  %v4309_v59 = vmul.f32 %v4185_v48, %v9035_v10 }
 0x52e   :  { %v3770_v25 = vpack.c.bf16 %v3743_v44, %v3742_v33  ;;  %v3492_v55 = vcombine.high %v3490_v6, %v3490_v6  ;;  %v3506_v57 = vrot.slane %v3490_v6, %v8277_v0  ;;  %v3394_v63 = vcombine.high %v8730_v20, %v8730_v20 }
 0x52f   :  { %v4307_v22 = vmul.f32 %v4177_v3, %v9035_v10  ;;  %v4054_v12 = vrot.slane %v4040_v16, %v8277_v0  ;;  %v3408_v8 = vrot.slane %v8730_v20, %v8277_v0  ;;  %v4335_v60 = vpack.c.bf16 %v4309_v59, %v4308_v30 }
 0x530   :  { %7132 = vmatpush3.bf16.msra.mxu1 %v3770_v25  ;;  %v3520_v56 = vrot.slane %v3492_v55, %v8277_v0  ;;  %v3522_v9 = vcombine.high %v3506_v57, %v3506_v57  ;;  %v3657_v53 = vrot.slane %v3506_v57, %v8280_v34  ;;  %v3422_v36 = vrot.slane %v3394_v63, %v8277_v0 }
 0x531   :  { %v4334_v7 = vpack.c.bf16 %v4307_v22, %v4306_v4  ;;  %v4056_v41 = vcombine.high %v4054_v12, %v4054_v12  ;;  %v4070_v46 = vrot.slane %v4054_v12, %v8277_v0  ;;  %7164 = vmatpush3.bf16.msra.mxu0 %v4335_v60  ;;  %v3424_v29 = vcombine.high %v3408_v8, %v3408_v8 }
 0x532   :  { %v3524_v24 = vcombine.high %v3520_v56, %v3520_v56  ;;  %v3665_v2 = vrot.slane %v3522_v9, %v8280_v34  ;;  %v3661_v20 = vrot.slane %v3520_v56, %v8280_v34  ;;  %7165 = vmatprep.subr.bf16.mxu0 %v4342_v47  ;;  %v3426_v48 = vcombine.high %v3422_v36, %v3422_v36 }
 0x533   :  { %v4084_v33 = vrot.slane %v4056_v41, %v8277_v0  ;;  %v4086_v26 = vcombine.high %v4070_v46, %v4070_v46  ;;  %v3754_v44 = vmul.f32 %v3657_v53, %v8737_v50  ;;  %v3601_v3 = vrot.slane %v3424_v29, %v8280_v34 }
 0x534   :  { %v3669_v6 = vrot.slane %v3524_v24, %v8280_v34  ;;  %v3756_v30 = vmul.f32 %v3665_v2, %v8737_v50  ;;  %v3755_v4 = vmul.f32 %v3661_v20, %v8737_v50  ;;  %v3605_v25 = vrot.slane %v3426_v48, %v8280_v34 }
 0x535   :  { %v4088_v16 = vcombine.high %v4084_v33, %v4084_v33  ;;  %v4229_v59 = vrot.slane %v4086_v26, %v8280_v34  ;;  %v9908_v47 = vcombine.high %v8747_v19, %v8747_v19  ;;  %7166 = vmatpush3.bf16.msra.mxu0 %v4334_v7  ;;  %v3740_v22 = vmul.f32 %v3601_v3, %v8727_v18 }
 0x536   :  { %v3757_v57 = vmul.f32 %v3669_v6, %v8737_v50  ;;  %v3776_v12 = vpack.c.bf16 %v3755_v4, %v3754_v44  ;;  %v4221_v63 = vrot.slane %v4070_v46, %v8280_v34  ;;  %v3741_v9 = vmul.f32 %v3605_v25, %v8727_v18 }
 0x537   :  { %v3956_v55 = vrot.slane %v9908_v47, %v8277_v0  ;;  %v4233_v60 = vrot.slane %v4088_v16, %v8280_v34  ;;  %v4320_v56 = vmul.f32 %v4229_v59, %v9064_v23  ;;  %v4225_v19 = vrot.slane %v4084_v33, %v8280_v34 }
 0x538   :  { %v3777_v41 = vpack.c.bf16 %v3757_v57, %v3756_v30  ;;  %v4318_v2 = vmul.f32 %v4221_v63, %v9064_v23  ;;  %v3769_v29 = vpack.c.bf16 %v3741_v9, %v3740_v22  ;;  %v3593_v46 = vrot.slane %v3408_v8, %v8280_v34 }
 0x539   :  { %v3958_v53 = vcombine.high %v3956_v55, %v3956_v55  ;;  %v3972_v24 = vrot.slane %v3956_v55, %v8277_v0  ;;  %v4321_v7 = vmul.f32 %v4233_v60, %v9064_v23  ;;  %v4319_v48 = vmul.f32 %v4225_v19, %v9064_v23 }
 0x53a   :  { %7133 = vmatprep.subr.bf16.mxu1 %v3777_v41  ;;  %v3597_v44 = vrot.slane %v3422_v36, %v8280_v34  ;;  %v3483_v6 = vrot.slane %v8714_v1, %v8277_v0  ;;  %v3738_v3 = vmul.f32 %v3593_v46, %v8727_v18  ;;  %v4047_v63 = vrot.slane %v8751_v51, %v8277_v0 }
 0x53b   :  { %v3986_v20 = vrot.slane %v3958_v53, %v8277_v0  ;;  %v3988_v26 = vcombine.high %v3972_v24, %v3972_v24  ;;  %v4341_v30 = vpack.c.bf16 %v4321_v7, %v4320_v56  ;;  %7134 = vmatpush3.bf16.msra.mxu1 %v3769_v29  ;;  %v4157_v4 = vrot.slane %v3972_v24, %v8280_v34 }
 0x53c   :  { %7135 = vmatprep.subr.bf16.mxu1 %v3776_v12  ;;  %v4340_v8 = vpack.c.bf16 %v4319_v48, %v4318_v2  ;;  %v3739_v59 = vmul.f32 %v3597_v44, %v8727_v18  ;;  %v3491_v25 = vcombine.high %v3483_v6, %v3483_v6  ;;  %v3499_v47 = vrot.slane %v3483_v6, %v8277_v0 }
 0x53d   :  { %v3990_v33 = vcombine.high %v3986_v20, %v3986_v20  ;;  %v4165_v16 = vrot.slane %v3988_v26, %v8280_v34  ;;  %7167 = vmatprep.subr.bf16.mxu0 %v4341_v30  ;;  %v4161_v1 = vrot.slane %v3986_v20, %v8280_v34  ;;  %v4302_v55 = vmul.f32 %v4157_v4, %v9035_v10 }
 0x53e   :  { %v3768_v22 = vpack.c.bf16 %v3739_v59, %v3738_v3  ;;  %v3513_v12 = vrot.slane %v3491_v25, %v8277_v0  ;;  %v3521_v56 = vcombine.high %v3499_v47, %v3499_v47  ;;  %v3401_v53 = vrot.slane %v8712_v40, %v8277_v0 }
 0x53f   :  { %v4169_v36 = vrot.slane %v3990_v33, %v8280_v34  ;;  %v4304_v57 = vmul.f32 %v4165_v16, %v9035_v10  ;;  %v4303_v9 = vmul.f32 %v4161_v1, %v9035_v10  ;;  %v4055_v24 = vcombine.high %v4047_v63, %v4047_v63 }
 0x540   :  { %7136 = vmatpush3.bf16.msra.mxu1 %v3768_v22  ;;  %v3523_v41 = vcombine.high %v3513_v12, %v3513_v12  ;;  %v4063_v19 = vrot.slane %v4047_v63, %v8277_v0  ;;  %v9909_v2 = vcombine.high %v8712_v40, %v8712_v40  ;;  %v3649_v51 = vrot.slane %v3521_v56, %v8280_v34 }
 0x541   :  { %v4305_v60 = vmul.f32 %v4169_v36, %v9035_v10  ;;  %v4332_v20 = vpack.c.bf16 %v4303_v9, %v4302_v55  ;;  %v3423_v46 = vcombine.high %v3401_v53, %v3401_v53  ;;  %v4077_v48 = vrot.slane %v4055_v24, %v8277_v0  ;;  %v1040_v36 = vld [vmem:[#allocation12 + $0x20] sm:$0xf]  ;;  %v9910_v9 = vld [vmem:[#allocation35_spill] sm:$0xff] }
 0x542   :  { %v3415_v7 = vrot.slane %v9909_v2, %v8277_v0  ;;  %v3653_v26 = vrot.slane %v3523_v41, %v8280_v34  ;;  %v4085_v44 = vcombine.high %v4063_v19, %v4063_v19  ;;  %v3752_v30 = vmul.f32 %v3649_v51, %v8737_v50 }
 0x543   :  { %v4333_v29 = vpack.c.bf16 %v4305_v60, %v4304_v57  ;;  %v3585_v33 = vrot.slane %v3423_v46, %v8280_v34  ;;  %v3641_v3 = vrot.slane %v3499_v47, %v8280_v34  ;;  %v3645_v40 = vrot.slane %v3513_v12, %v8280_v34 }
 0x544   :  { %v3425_v6 = vcombine.high %v3415_v7, %v3415_v7  ;;  %v3753_v4 = vmul.f32 %v3653_v26, %v8737_v50  ;;  %v4087_v16 = vcombine.high %v4077_v48, %v4077_v48  ;;  %v4213_v59 = vrot.slane %v4085_v44, %v8280_v34 }
 0x545   :  { %7168 = vmatpush3.bf16.msra.mxu0 %v4333_v29  ;;  %v3736_v1 = vmul.f32 %v3585_v33, %v8727_v18  ;;  %v3750_v55 = vmul.f32 %v3641_v3, %v8737_v50  ;;  %v3751_v57 = vmul.f32 %v3645_v40, %v8737_v50  ;;  %v1033_v47 = vadd.f32 %v8858_v38, %v8856_v54 }
 0x546   :  { %7169 = vmatprep.subr.bf16.mxu0 %v4340_v8  ;;  %v3589_v25 = vrot.slane %v3425_v6, %v8280_v34  ;;  %v3775_v22 = vpack.c.bf16 %v3753_v4, %v3752_v30  ;;  %v4217_v8 = vrot.slane %v4087_v16, %v8280_v34  ;;  %v4316_v12 = vmul.f32 %v4213_v59, %v9064_v23 }
 0x547   :  { %v3774_v60 = vpack.c.bf16 %v3751_v57, %v3750_v55  ;;  %v1045_v56 = vadd.f32 %v1040_v36, %v1033_v47  ;;  %v3957_v41 = vcombine.high %v9910_v9, %v9910_v9  ;;  %v3965_v24 = vrot.slane %v9910_v9, %v8277_v0 }
 0x548   :  { %v3737_v63 = vmul.f32 %v3589_v25, %v8727_v18  ;;  %7137 = vmatprep.subr.bf16.mxu1 %v3775_v22  ;;  %v4317_v50 = vmul.f32 %v4217_v8, %v9064_v23  ;;  %v4205_v38 = vrot.slane %v4063_v19, %v8280_v34  ;;  %v4209_v2 = vrot.slane %v4077_v48, %v8280_v34 }
 0x549   :  { %7170 = vmatpush3.bf16.msra.mxu0 %v4332_v20  ;;  %v5568_v29 = vrot.slane %v1045_v56, %v8277_v0  ;;  %v3979_v51 = vrot.slane %v3957_v41, %v8277_v0  ;;  %v3987_v20 = vcombine.high %v3965_v24, %v3965_v24  ;;  %v3577_v46 = vrot.slane %v3401_v53, %v8280_v34 }
 0x54a   :  { %v3767_v54 = vpack.c.bf16 %v3737_v63, %v3736_v1  ;;  %v5063_v26 = vsub.f32 1.0, %v9163_v14  ;;  %v4339_v44 = vpack.c.bf16 %v4317_v50, %v4316_v12  ;;  %v4314_v6 = vmul.f32 %v4205_v38, %v9064_v23 }
 0x54b   :  { %v3581_v30 = vrot.slane %v3415_v7, %v8280_v34  ;;  %v5569_v33 = vcombine.high %v5568_v29, %v5568_v29  ;;  %v5576_v19 = vrot.slane %v5568_v29, %v8277_v0  ;;  %v3989_v48 = vcombine.high %v3979_v51, %v3979_v51 }
 0x54c   :  { %7138 = vmatpush3.bf16.msra.mxu1 %v3767_v54  ;;  %v4149_v3 = vrot.slane %v3987_v20, %v8280_v34  ;;  %7171 = vmatprep.subr.bf16.mxu0 %v4339_v44  ;;  %v4315_v40 = vmul.f32 %v4209_v2, %v9064_v23  ;;  %v3734_v53 = vmul.f32 %v3577_v46, %v8727_v18 }
 0x54d   :  { %7139 = vmatprep.subr.bf16.mxu1 %v3774_v60  ;;  %v3735_v14 = vmul.f32 %v3581_v30, %v8727_v18  ;;  %v4141_v4 = vrot.slane %v3965_v24, %v8280_v34  ;;  %v5583_v16 = vrot.slane %v5569_v33, %v8277_v0  ;;  %v5587_v7 = vrot.slane %v5576_v19, %v8280_v34 }
 0x54e   :  { %v5610_v59 = vcombine.high %v5576_v19, %v5576_v19  ;;  %v4153_v25 = vrot.slane %v3989_v48, %v8280_v34  ;;  %v4300_v36 = vmul.f32 %v4149_v3, %v9035_v10  ;;  %v4145_v55 = vrot.slane %v3979_v51, %v8280_v34 }
 0x54f   :  { %v3766_v1 = vpack.c.bf16 %v3735_v14, %v3734_v53  ;;  %v4298_v23 = vmul.f32 %v4141_v4, %v9035_v10  ;;  %v5591_v57 = vrot.slane %v5583_v16, %v8280_v34  ;;  %v5594_v18 = vsub.f32 %v9043_v35, %v5587_v7 }
 0x550   :  { %v5595_v47 = vsub.f32 %v9046_v27, %v5587_v7  ;;  %v5611_v22 = vcombine.high %v5583_v16, %v5583_v16  ;;  %v5615_v8 = vrot.slane %v5610_v59, %v8280_v34  ;;  %v4301_v12 = vmul.f32 %v4153_v25, %v9035_v10 }
 0x551   :  { %7140 = vmatpush3.bf16.msra.mxu1 %v3766_v1  ;;  %v4299_v63 = vmul.f32 %v4145_v55, %v9035_v10  ;;  %v4653_v60 = vcombine.high %v9076_v5, %v9076_v5  ;;  %v5596_v56 = vsub.f32 %v9043_v35, %v5591_v57  ;;  %v5597_v9 = vsub.f32 %v9046_v27, %v5591_v57 }
 0x552   :  { %v5598_v41 = vand.u32 2147483647, %v5594_v18  ;;  %v5599_v24 = vand.u32 2147483647, %v5595_v47  ;;  %v5619_v50 = vrot.slane %v5611_v22, %v8280_v34  ;;  %v5622_v54 = vsub.f32 %v9059_v11, %v5615_v8 }
 0x553   :  { %v4331_v38 = vpack.c.bf16 %v4301_v12, %v4300_v36  ;;  %v4338_v2 = vpack.c.bf16 %v4315_v40, %v4314_v6  ;;  %v5600_v29 = vand.u32 2147483647, %v5596_v56  ;;  %v5601_v51 = vand.u32 2147483647, %v5597_v9 }
 0x554   :  { %v5602_v20 = vsub.f32 1.0, %v5598_v41  ;;  %v5603_v46 = vsub.f32 1.0, %v5599_v24  ;;  %3815 = vmatmul.mubr.bf16.vlgmr.msra.gmra.mxu1 %v8203_v37  ;;  %v5623_v10 = vsub.f32 %v9059_v11, %v5619_v50  ;;  %v5624_v44 = vand.u32 2147483647, %v5622_v54 }
 0x555   :  { %7172 = vmatpush3.bf16.msra.mxu0 %v4331_v38  ;;  %v4330_v35 = vpack.c.bf16 %v4299_v63, %v4298_v23  ;;  %v4667_v27 = vrot.slane %v4653_v60, %v8277_v0  ;;  %3822 = vmatprep.mubr.bf16.mxu1 %v8213_v45  ;;  %v5604_v30 = vsub.f32 1.0, %v5600_v29  ;;  %v5605_v33 = vsub.f32 1.0, %v5601_v51 }
 0x556   :  { %v5606_v19 = vmax.f32 %v5602_v20, 0.0  ;;  %v5607_v48 = vmax.f32 %v5603_v46, 0.0  ;;  %7173 = vmatprep.subr.bf16.mxu0 %v4338_v2  ;;  %v9392_v6 = vand.u32 2147483647, %v5623_v10  ;;  %v5626_v3 = vsub.f32 1.0, %v5624_v44 }
 0x557   :  { %v4669_v40 = vcombine.high %v4667_v27, %v4667_v27  ;;  %v4683_v53 = vrot.slane %v4667_v27, %v8277_v0  ;;  %v9397_v11 = vmax.f32 %v5062_v58, 0.0  ;;  %v9399_v14 = vmax.f32 %v5063_v26, 0.0 }
 0x558   :  { %v5634_v4 = vcombine.high %v5606_v19, %v5606_v19  ;;  %v4571_v16 = vcombine.high %v9101_v62, %v9101_v62  ;;  %v9403_v7 = vmax.f32 %v5604_v30, 0.0  ;;  %v9405_v59 = vmax.f32 %v5605_v33, 0.0 }
 0x559   :  { %v9408_v25 = vrot.slane %v5606_v19, %v8277_v0  ;;  %v5683_v36 = vcombine.high %v5607_v48, %v5607_v48  ;;  %7174 = vmatpush3.bf16.msra.mxu0 %v4330_v35  ;;  %v5627_v1 = vsub.f32 1.0, %v9392_v6  ;;  %v9411_v52 = vmax.f32 %v5626_v3, 0.0 }
 0x55a   :  { %v4697_v58 = vrot.slane %v4669_v40, %v8277_v0  ;;  %v4699_v26 = vcombine.high %v4683_v53, %v4683_v53  ;;  %v9415_v55 = vrot.slane %v5634_v4, %v8277_v0  ;;  %v9418_v23 = vrot.slane %v5607_v48, %v8277_v0 }
 0x55b   :  { %v9421_v57 = vrot.slane %v5683_v36, %v8277_v0  ;;  %v4585_v18 = vrot.slane %v9101_v62, %v8277_v0  ;;  %v4599_v8 = vrot.slane %v4571_v16, %v8277_v0  ;;  %v5217_v12 = vcombine.high %v9110_v32, %v9110_v32 }
 0x55c   :  { %v4701_v47 = vcombine.high %v4697_v58, %v4697_v58  ;;  %v4825_v22 = vrot.slane %v4699_v26, %v8280_v34  ;;  %4379 = vmatmul.mubr.bf16.vlgmr.msra.gmra.mxu0 %v8203_v37  ;;  %v9911_v60 = vcombine.high %v9106_v28, %v9106_v28  ;;  %v4817_v62 = vrot.slane %v4683_v53, %v8280_v34 }
 0x55d   :  { %v4601_v63 = vcombine.high %v4585_v18, %v4585_v18  ;;  %4386 = vmatprep.mubr.bf16.mxu0 %v8213_v45  ;;  %v4821_v9 = vrot.slane %v4697_v58, %v8280_v34  ;;  %v4603_v50 = vcombine.high %v4599_v8, %v4599_v8  ;;  %v5231_v54 = vrot.slane %v5217_v12, %v8277_v0 }
 0x55e   :  { %v5133_v56 = vrot.slane %v9911_v60, %v8277_v0  ;;  %v4829_v41 = vrot.slane %v4701_v47, %v8280_v34  ;;  %v4892_v24 = vmul.f32 %v4825_v22, %v9098_v42  ;;  %3823 = vmatmul.mubr.bf16.gmra.mxu1 %v8209_v43  ;;  %v4890_v28 = vmul.f32 %v4817_v62, %v9098_v42 }
 0x55f   :  { %v4761_v38 = vrot.slane %v4601_v63, %v8280_v34  ;;  %3830 = vmatprep.mubr.bf16.mxu1 %v8315_v21  ;;  %v4765_v20 = vrot.slane %v4603_v50, %v8280_v34  ;;  %v5233_v46 = vcombine.high %v5231_v54, %v5231_v54  ;;  %v5247_v10 = vrot.slane %v5231_v54, %v8277_v0 }
 0x560   :  { %v5135_v2 = vcombine.high %v5133_v56, %v5133_v56  ;;  %v5149_v29 = vrot.slane %v5133_v56, %v8277_v0  ;;  %v4893_v51 = vmul.f32 %v4829_v41, %v9098_v42  ;;  %v4891_v30 = vmul.f32 %v4821_v9, %v9098_v42 }
 0x561   :  { %v4876_v44 = vmul.f32 %v4761_v38, %v9081_v39  ;;  %v4877_v19 = vmul.f32 %v4765_v20, %v9081_v39  ;;  %v5261_v48 = vrot.slane %v5233_v46, %v8277_v0  ;;  %v5263_v3 = vcombine.high %v5247_v10, %v5247_v10 }
 0x562   :  { %v5163_v35 = vrot.slane %v5135_v2, %v8277_v0  ;;  %v5165_v27 = vcombine.high %v5149_v29, %v5149_v29  ;;  %v4909_v33 = vpack.c.bf16 %v4893_v51, %v4892_v24  ;;  %v4908_v4 = vpack.c.bf16 %v4891_v30, %v4890_v28 }
 0x563   :  { %v4753_v16 = vrot.slane %v4585_v18, %v8280_v34  ;;  %v4901_v36 = vpack.c.bf16 %v4877_v19, %v4876_v44  ;;  %v5265_v58 = vcombine.high %v5261_v48, %v5261_v48  ;;  %v5389_v26 = vrot.slane %v5263_v3, %v8280_v34 }
 0x564   :  { %v5167_v40 = vcombine.high %v5163_v35, %v5163_v35  ;;  %v5325_v53 = vrot.slane %v5165_v27, %v8280_v34  ;;  %7193 = vmatprep.subr.bf16.mxu1 %v4909_v33  ;;  %v4757_v47 = vrot.slane %v4599_v8, %v8280_v34  ;;  %v4660_v60 = vrot.slane %v9076_v5, %v8277_v0 }
 0x565   :  { %v4874_v63 = vmul.f32 %v4753_v16, %v9081_v39  ;;  %4387 = vmatmul.mubr.bf16.gmra.mxu0 %v8209_v43  ;;  %7194 = vmatpush3.bf16.msra.mxu1 %v4901_v36  ;;  %v5393_v18 = vrot.slane %v5265_v58, %v8280_v34  ;;  %v5456_v56 = vmul.f32 %v5389_v26, %v9399_v14 }
 0x566   :  { %v5329_v22 = vrot.slane %v5167_v40, %v8280_v34  ;;  %v5440_v12 = vmul.f32 %v5325_v53, %v9397_v11  ;;  %v4875_v62 = vmul.f32 %v4757_v47, %v9081_v39  ;;  %v5381_v8 = vrot.slane %v5247_v10, %v8280_v34  ;;  %7195 = vmatprep.subr.bf16.mxu1 %v4908_v4 }
 0x567   :  { %v4668_v41 = vcombine.high %v4660_v60, %v4660_v60  ;;  %v4676_v24 = vrot.slane %v4660_v60, %v8277_v0  ;;  %v5385_v50 = vrot.slane %v5261_v48, %v8280_v34  ;;  %v5457_v5 = vmul.f32 %v5393_v18, %v9399_v14  ;;  %4394 = vmatprep.mubr.bf16.mxu0 %v8315_v21 }
 0x568   :  { %v5441_v9 = vmul.f32 %v5329_v22, %v9397_v11  ;;  %v4900_v54 = vpack.c.bf16 %v4875_v62, %v4874_v63  ;;  %v5454_v38 = vmul.f32 %v5381_v8, %v9399_v14  ;;  %v5317_v2 = vrot.slane %v5149_v29, %v8280_v34  ;;  %3831 = vmatmul.mubr.bf16.gmra.mxu1 %v8217_v49 }
 0x569   :  { %v4690_v51 = vrot.slane %v4668_v41, %v8277_v0  ;;  %v4698_v20 = vcombine.high %v4676_v24, %v4676_v24  ;;  %v5455_v46 = vmul.f32 %v5385_v50, %v9399_v14  ;;  %v5473_v10 = vpack.c.bf16 %v5457_v5, %v5456_v56  ;;  %4942 = vmatprep.mubr.bf16.mxu1 %v8238_v61 }
 0x56a   :  { %v5465_v28 = vpack.c.bf16 %v5441_v9, %v5440_v12  ;;  %7196 = vmatpush3.bf16.msra.mxu1 %v4900_v54  ;;  %v5321_v44 = vrot.slane %v5163_v35, %v8280_v34  ;;  %v5438_v27 = vmul.f32 %v5317_v2, %v9397_v11  ;;  %v5224_v30 = vrot.slane %v9110_v32, %v8277_v0 }
 0x56b   :  { %v4700_v29 = vcombine.high %v4690_v51, %v4690_v51  ;;  %v4809_v33 = vrot.slane %v4698_v20, %v8280_v34  ;;  %v5472_v19 = vpack.c.bf16 %v5455_v46, %v5454_v38  ;;  %v4578_v48 = vrot.slane %v9084_v15, %v8277_v0  ;;  %7227 = vmatprep.subr.bf16.mxu0 %v5473_v10 }
 0x56c   :  { %v5439_v3 = vmul.f32 %v5321_v44, %v9397_v11  ;;  %v5232_v40 = vcombine.high %v5224_v30, %v5224_v30  ;;  %v5240_v35 = vrot.slane %v5224_v30, %v8277_v0  ;;  %v9912_v53 = vcombine.high %v9084_v15, %v9084_v15  ;;  %7228 = vmatpush3.bf16.msra.mxu0 %v5465_v28 }
 0x56d   :  { %v4813_v4 = vrot.slane %v4700_v29, %v8280_v34  ;;  %v4888_v16 = vmul.f32 %v4809_v33, %v9098_v42  ;;  %v4600_v36 = vcombine.high %v4578_v48, %v4578_v48  ;;  %v4801_v58 = vrot.slane %v4676_v24, %v8280_v34  ;;  %7229 = vmatprep.subr.bf16.mxu0 %v5472_v19 }
 0x56e   :  { %v4592_v32 = vrot.slane %v9912_v53, %v8277_v0  ;;  %v5464_v26 = vpack.c.bf16 %v5439_v3, %v5438_v27  ;;  %v5254_v47 = vrot.slane %v5232_v40, %v8277_v0  ;;  %v5262_v22 = vcombine.high %v5240_v35, %v5240_v35  ;;  %4395 = vmatmul.mubr.bf16.gmra.mxu0 %v8217_v49 }
 0x56f   :  { %v4889_v63 = vmul.f32 %v4813_v4, %v9098_v42  ;;  %v4745_v60 = vrot.slane %v4600_v36, %v8280_v34  ;;  %v4805_v15 = vrot.slane %v4690_v51, %v8280_v34  ;;  %v4886_v18 = vmul.f32 %v4801_v58, %v9098_v42  ;;  %5506 = vmatprep.mubr.bf16.mxu0 %v8238_v61  ;;  %v9913_v4 = vld [vmem:[#allocation34_spill] sm:$0xff] }
 0x570   :  { %v4602_v12 = vcombine.high %v4592_v32, %v4592_v32  ;;  %v5264_v56 = vcombine.high %v5254_v47, %v5254_v47  ;;  %v5373_v62 = vrot.slane %v5262_v22, %v8280_v34  ;;  %v5134_v9 = vcombine.high %v9156_v13, %v9156_v13  ;;  %7230 = vmatpush3.bf16.msra.mxu0 %v5464_v26 }
 0x571   :  { %v4907_v41 = vpack.c.bf16 %v4889_v63, %v4888_v16  ;;  %v4872_v24 = vmul.f32 %v4745_v60, %v9081_v39  ;;  %v4887_v50 = vmul.f32 %v4805_v15, %v9098_v42  ;;  %v5142_v5 = vrot.slane %v9156_v13, %v8277_v0 }
 0x572   :  { %v4749_v8 = vrot.slane %v4602_v12, %v8280_v34  ;;  %v5377_v54 = vrot.slane %v5264_v56, %v8280_v34  ;;  %v5452_v38 = vmul.f32 %v5373_v62, %v9399_v14  ;;  %v5156_v28 = vrot.slane %v5134_v9, %v8277_v0 }
 0x573   :  { %7197 = vmatprep.subr.bf16.mxu1 %v4907_v41  ;;  %v4906_v51 = vpack.c.bf16 %v4887_v50, %v4886_v18  ;;  %v5164_v20 = vcombine.high %v5142_v5, %v5142_v5  ;;  %v5365_v46 = vrot.slane %v5240_v35, %v8280_v34  ;;  %v5369_v10 = vrot.slane %v5254_v47, %v8280_v34 }
 0x574   :  { %v4873_v2 = vmul.f32 %v4749_v8, %v9081_v39  ;;  %v5453_v44 = vmul.f32 %v5377_v54, %v9399_v14  ;;  %v5166_v30 = vcombine.high %v5156_v28, %v5156_v28  ;;  %v4737_v13 = vrot.slane %v4578_v48, %v8280_v34 }
 0x575   :  { %v5309_v29 = vrot.slane %v5164_v20, %v8280_v34  ;;  %v5450_v33 = vmul.f32 %v5365_v46, %v9399_v14  ;;  %v5451_v19 = vmul.f32 %v5369_v10, %v9399_v14  ;;  %v4741_v3 = vrot.slane %v4592_v32, %v8280_v34 }
 0x576   :  { %v4899_v27 = vpack.c.bf16 %v4873_v2, %v4872_v24  ;;  %v5471_v40 = vpack.c.bf16 %v5453_v44, %v5452_v38  ;;  %v5313_v35 = vrot.slane %v5166_v30, %v8280_v34  ;;  %v4870_v53 = vmul.f32 %v4737_v13, %v9081_v39 }
 0x577   :  { %v4604_v16 = vcombine.high %v9913_v4, %v9913_v4  ;;  %v5436_v48 = vmul.f32 %v5309_v29, %v9397_v11  ;;  %v5470_v36 = vpack.c.bf16 %v5451_v19, %v5450_v33  ;;  %v4871_v58 = vmul.f32 %v4741_v3, %v9081_v39 }
 0x578   :  { %7198 = vmatpush3.bf16.msra.mxu1 %v4899_v27  ;;  %v5301_v26 = vrot.slane %v5142_v5, %v8280_v34  ;;  %7231 = vmatprep.subr.bf16.mxu0 %v5471_v40  ;;  %v5437_v32 = vmul.f32 %v5313_v35, %v9397_v11  ;;  %v5305_v22 = vrot.slane %v5156_v28, %v8280_v34  ;;  %v9914_v5 = vld [vmem:[#allocation37_spill] sm:$0xff] }
 0x579   :  { %7199 = vmatprep.subr.bf16.mxu1 %v4906_v51  ;;  %v4618_v47 = vrot.slane %v4604_v16, %v8277_v0  ;;  %v5168_v12 = vcombine.high %v9108_v17, %v9108_v17  ;;  %v4898_v63 = vpack.c.bf16 %v4871_v58, %v4870_v53  ;;  %v4522_v15 = vcombine.high %v9091_v31, %v9091_v31 }
 0x57a   :  { %v5434_v60 = vmul.f32 %v5301_v26, %v9397_v11  ;;  %v4536_v18 = vrot.slane %v9091_v31, %v8277_v0  ;;  %v5463_v56 = vpack.c.bf16 %v5437_v32, %v5436_v48  ;;  %v5435_v9 = vmul.f32 %v5305_v22, %v9397_v11 }
 0x57b   :  { %v4620_v62 = vcombine.high %v4618_v47, %v4618_v47  ;;  %v4634_v8 = vrot.slane %v4618_v47, %v8277_v0  ;;  %v5182_v41 = vrot.slane %v5168_v12, %v8277_v0  ;;  %v4550_v24 = vrot.slane %v4522_v15, %v8277_v0 }
 0x57c   :  { %7200 = vmatpush3.bf16.msra.mxu1 %v4898_v63  ;;  %v4552_v50 = vcombine.high %v4536_v18, %v4536_v18  ;;  %v9915_v54 = vcombine.high %v9914_v5, %v9914_v5  ;;  %7232 = vmatpush3.bf16.msra.mxu0 %v5463_v56  ;;  %v5462_v28 = vpack.c.bf16 %v5435_v9, %v5434_v60 }
 0x57d   :  { %v4648_v31 = vrot.slane %v4620_v62, %v8277_v0  ;;  %v4650_v2 = vcombine.high %v4634_v8, %v4634_v8  ;;  %v4785_v51 = vrot.slane %v4634_v8, %v8280_v34  ;;  %7233 = vmatprep.subr.bf16.mxu0 %v5470_v36  ;;  %v5184_v20 = vcombine.high %v5182_v41, %v5182_v41 }
 0x57e   :  { %v5084_v38 = vrot.slane %v9915_v54, %v8277_v0  ;;  %v5198_v46 = vrot.slane %v5182_v41, %v8277_v0  ;;  %v4554_v10 = vcombine.high %v4550_v24, %v4550_v24  ;;  %v4729_v44 = vrot.slane %v4552_v50, %v8280_v34 }
 0x57f   :  { %v4652_v27 = vcombine.high %v4648_v31, %v4648_v31  ;;  %v4793_v30 = vrot.slane %v4650_v2, %v8280_v34  ;;  %v4789_v13 = vrot.slane %v4648_v31, %v8280_v34  ;;  %v4882_v29 = vmul.f32 %v4785_v51, %v9098_v42 }
 0x580   :  { %v5212_v33 = vrot.slane %v5184_v20, %v8277_v0  ;;  %v5214_v19 = vcombine.high %v5198_v46, %v5198_v46  ;;  %v4733_v3 = vrot.slane %v4554_v10, %v8280_v34  ;;  %v4868_v40 = vmul.f32 %v4729_v44, %v9081_v39  ;;  %7234 = vmatpush3.bf16.msra.mxu0 %v5462_v28 }
 0x581   :  { %v4797_v35 = vrot.slane %v4652_v27, %v8280_v34  ;;  %v4884_v53 = vmul.f32 %v4793_v30, %v9098_v42  ;;  %v4883_v16 = vmul.f32 %v4789_v13, %v9098_v42  ;;  %v5086_v48 = vcombine.high %v5084_v38, %v5084_v38 }
 0x582   :  { %v5216_v36 = vcombine.high %v5212_v33, %v5212_v33  ;;  %v5357_v58 = vrot.slane %v5214_v19, %v8280_v34  ;;  %v4869_v26 = vmul.f32 %v4733_v3, %v9081_v39  ;;  %v5100_v32 = vrot.slane %v5084_v38, %v8277_v0 }
 0x583   :  { %v4885_v47 = vmul.f32 %v4797_v35, %v9098_v42  ;;  %v4904_v22 = vpack.c.bf16 %v4883_v16, %v4882_v29  ;;  %v5114_v12 = vrot.slane %v5086_v48, %v8277_v0  ;;  %v5349_v63 = vrot.slane %v5198_v46, %v8280_v34 }
 0x584   :  { %v5361_v60 = vrot.slane %v5216_v36, %v8280_v34  ;;  %v5448_v15 = vmul.f32 %v5357_v58, %v9399_v14  ;;  %v4897_v56 = vpack.c.bf16 %v4869_v26, %v4868_v40  ;;  %v5116_v62 = vcombine.high %v5100_v32, %v5100_v32 }
 0x585   :  { %v4905_v8 = vpack.c.bf16 %v4885_v47, %v4884_v53  ;;  %v5118_v9 = vcombine.high %v5114_v12, %v5114_v12  ;;  %v5353_v41 = vrot.slane %v5212_v33, %v8280_v34  ;;  %v5446_v50 = vmul.f32 %v5349_v63, %v9399_v14  ;;  %v9916_v53 = vld [vmem:[#allocation36_spill] sm:$0xff]  ;;  %v9598_v63 = vpop.f32.mrf.mxu1 }
 0x586   :  { %v5449_v5 = vmul.f32 %v5361_v60, %v9399_v14  ;;  %v5293_v54 = vrot.slane %v5116_v62, %v8280_v34  ;;  %v4721_v38 = vrot.slane %v4536_v18, %v8280_v34  ;;  %v4725_v31 = vrot.slane %v4550_v24, %v8280_v34 }
 0x587   :  { %7201 = vmatprep.subr.bf16.mxu1 %v4905_v8  ;;  %v5297_v2 = vrot.slane %v5118_v9, %v8280_v34  ;;  %v5447_v28 = vmul.f32 %v5353_v41, %v9399_v14  ;;  %v4611_v51 = vrot.slane %v9913_v4, %v8277_v0  ;;  %v5285_v20 = vrot.slane %v5100_v32, %v8280_v34  ;;  %v9601_v8 = vpop.f32.mrf.mxu0 }
 0x588   :  { %v5469_v46 = vpack.c.bf16 %v5449_v5, %v5448_v15  ;;  %7202 = vmatpush3.bf16.msra.mxu1 %v4897_v56  ;;  %v5432_v10 = vmul.f32 %v5293_v54, %v9397_v11  ;;  %v4866_v44 = vmul.f32 %v4721_v38, %v9081_v39  ;;  %v4867_v18 = vmul.f32 %v4725_v31, %v9081_v39 }
 0x589   :  { %7203 = vmatprep.subr.bf16.mxu1 %v4904_v22  ;;  %v5433_v24 = vmul.f32 %v5297_v2, %v9397_v11  ;;  %v5468_v27 = vpack.c.bf16 %v5447_v28, %v5446_v50  ;;  %v4619_v30 = vcombine.high %v4611_v51, %v4611_v51  ;;  %v4627_v13 = vrot.slane %v4611_v51, %v8277_v0 }
 0x58a   :  { %7235 = vmatprep.subr.bf16.mxu0 %v5469_v46  ;;  %v4896_v29 = vpack.c.bf16 %v4867_v18, %v4866_v44  ;;  %v5289_v4 = vrot.slane %v5114_v12, %v8280_v34  ;;  %v5430_v33 = vmul.f32 %v5285_v20, %v9397_v11  ;;  %v5175_v19 = vrot.slane %v9108_v17, %v8277_v0  ;;  %v9918_v46 = vld [vmem:[#allocation38_spill] sm:$0xff]  ;;  %v9615_v44 = vpop.f32.mrf.mxu1 }
 0x58b   :  { %v5461_v3 = vpack.c.bf16 %v5433_v24, %v5432_v10  ;;  %v4641_v40 = vrot.slane %v4619_v30, %v8277_v0  ;;  %v4649_v35 = vcombine.high %v4627_v13, %v4627_v13  ;;  %v4529_v16 = vrot.slane %v9916_v53, %v8277_v0 }
 0x58c   :  { %7204 = vmatpush3.bf16.msra.mxu1 %v4896_v29  ;;  %v5431_v48 = vmul.f32 %v5289_v4, %v9397_v11  ;;  %v5183_v36 = vcombine.high %v5175_v19, %v5175_v19  ;;  %v5191_v58 = vrot.slane %v5175_v19, %v8277_v0  ;;  %v9917_v26 = vcombine.high %v9916_v53, %v9916_v53 }
 0x58d   :  { %7236 = vmatpush3.bf16.msra.mxu0 %v5461_v3  ;;  %v4651_v17 = vcombine.high %v4641_v40, %v4641_v40  ;;  %v4777_v47 = vrot.slane %v4649_v35, %v8280_v34  ;;  %v4551_v22 = vcombine.high %v4529_v16, %v4529_v16  ;;  %v4769_v12 = vrot.slane %v4627_v13, %v8280_v34  ;;  %v9622_v13 = vpop.f32.mrf.mxu0 }
 0x58e   :  { %v4543_v32 = vrot.slane %v9917_v26, %v8277_v0  ;;  %7237 = vmatprep.subr.bf16.mxu0 %v5468_v27  ;;  %v5460_v60 = vpack.c.bf16 %v5431_v48, %v5430_v33  ;;  %v5205_v15 = vrot.slane %v5183_v36, %v8277_v0  ;;  %v5213_v56 = vcombine.high %v5191_v58, %v5191_v58 }
 0x58f   :  { %v4781_v9 = vrot.slane %v4651_v17, %v8280_v34  ;;  %v4880_v41 = vmul.f32 %v4777_v47, %v9098_v42  ;;  %v4713_v50 = vrot.slane %v4551_v22, %v8280_v34  ;;  %v4773_v5 = vrot.slane %v4641_v40, %v8280_v34  ;;  %v9631_v17 = vpop.f32.mrf.mxu1 }
 0x590   :  { %v4553_v62 = vcombine.high %v4543_v32, %v4543_v32  ;;  %v5215_v54 = vcombine.high %v5205_v15, %v5205_v15  ;;  %v5341_v38 = vrot.slane %v5213_v56, %v8280_v34  ;;  %v4878_v2 = vmul.f32 %v4769_v12, %v9098_v42 }
 0x591   :  { %v4881_v28 = vmul.f32 %v4781_v9, %v9098_v42  ;;  %7238 = vmatpush3.bf16.msra.mxu0 %v5460_v60  ;;  %v4864_v51 = vmul.f32 %v4713_v50, %v9081_v39  ;;  %v4879_v20 = vmul.f32 %v4773_v5, %v9098_v42  ;;  %v5085_v10 = vcombine.high %v9918_v46, %v9918_v46  ;;  %v9636_v60 = vpop.f32.mrf.mxu0 }
 0x592   :  { %v4717_v31 = vrot.slane %v4553_v62, %v8280_v34  ;;  %v5345_v18 = vrot.slane %v5215_v54, %v8280_v34  ;;  %v5444_v24 = vmul.f32 %v5341_v38, %v9399_v14  ;;  %v5093_v30 = vrot.slane %v9918_v46, %v8277_v0  ;;  %v9652_v38 = vpop.f32.mrf.mxu1 }
 0x593   :  { %v4903_v29 = vpack.c.bf16 %v4881_v28, %v4880_v41  ;;  %v4902_v4 = vpack.c.bf16 %v4879_v20, %v4878_v2  ;;  %v5107_v42 = vrot.slane %v5085_v10, %v8277_v0  ;;  %v5333_v33 = vrot.slane %v5191_v58, %v8280_v34  ;;  %v9660_v20 = vpop.f32.mrf.mxu0 }
 0x594   :  { %v4865_v27 = vmul.f32 %v4717_v31, %v9081_v39  ;;  %v5445_v19 = vmul.f32 %v5345_v18, %v9399_v14  ;;  %v5115_v40 = vcombine.high %v5093_v30, %v5093_v30  ;;  %v5337_v35 = vrot.slane %v5205_v15, %v8280_v34 }
 0x595   :  { %7205 = vmatprep.subr.bf16.mxu1 %v4903_v29  ;;  %v5117_v53 = vcombine.high %v5107_v42, %v5107_v42  ;;  %v5442_v48 = vmul.f32 %v5333_v33, %v9399_v14  ;;  %v4705_v36 = vrot.slane %v4529_v16, %v8280_v34  ;;  %v4709_v26 = vrot.slane %v4543_v32, %v8280_v34 }
 0x596   :  { %v4895_v3 = vpack.c.bf16 %v4865_v27, %v4864_v51  ;;  %v5467_v47 = vpack.c.bf16 %v5445_v19, %v5444_v24  ;;  %v5277_v58 = vrot.slane %v5115_v40, %v8280_v34  ;;  %v5443_v22 = vmul.f32 %v5337_v35, %v9399_v14  ;;  %v9681_v35 = vpop.f32.mrf.mxu0 }
 0x597   :  { %v5269_v12 = vrot.slane %v5093_v30, %v8280_v34  ;;  %v5281_v15 = vrot.slane %v5117_v53, %v8280_v34  ;;  %v4862_v56 = vmul.f32 %v4705_v36, %v9081_v39  ;;  %v4863_v16 = vmul.f32 %v4709_v26, %v9081_v39 }
 0x598   :  { %7206 = vmatpush3.bf16.msra.mxu1 %v4895_v3  ;;  %v5273_v32 = vrot.slane %v5107_v42, %v8280_v34  ;;  %v5649_v62 = vcombine.high %v9408_v25, %v9408_v25  ;;  %v5698_v9 = vcombine.high %v9418_v23, %v9418_v23  ;;  %7239 = vmatprep.subr.bf16.mxu0 %v5467_v47  ;;  %v9676_v19 = vmax.f32 %v5627_v1, 0.0 }
 0x599   :  { %7207 = vmatprep.subr.bf16.mxu1 %v4902_v4  ;;  %v5428_v14 = vmul.f32 %v5277_v58, %v9397_v11  ;;  %v5781_v41 = vcombine.high %v9405_v59, %v9405_v59  ;;  %v5429_v50 = vmul.f32 %v5281_v15, %v9397_v11  ;;  %v5466_v5 = vpack.c.bf16 %v5443_v22, %v5442_v48 }
 0x59a   :  { %v4894_v54 = vpack.c.bf16 %v4863_v16, %v4862_v56  ;;  %v5699_v39 = vcombine.high %v9421_v57, %v9421_v57  ;;  %v5426_v31 = vmul.f32 %v5269_v12, %v9397_v11  ;;  %v5713_v28 = vrot.slane %v9421_v57, %v8277_v0 }
 0x59b   :  { %v5795_v2 = vrot.slane %v5781_v41, %v8277_v0  ;;  %v5788_v51 = vrot.slane %v9405_v59, %v8277_v0  ;;  %v5459_v46 = vpack.c.bf16 %v5429_v50, %v5428_v14  ;;  %v5427_v10 = vmul.f32 %v5273_v32, %v9397_v11  ;;  %v9672_v11 = vpop.f32.mrf.mxu1  ;;  %v9699_v50 = vpop.f32.mrf.mxu0 }
 0x59c   :  { %7208 = vmatpush3.bf16.msra.mxu1 %v4894_v54  ;;  %v5727_v18 = vrot.slane %v5699_v39, %v8277_v0  ;;  %v9666_v24 = vrot.slane %v9418_v23, %v8277_v0  ;;  %v5729_v29 = vcombine.high %v5713_v28, %v5713_v28  ;;  %v5881_v57 = vrot.slane %v5713_v28, %v8280_v34 }
 0x59d   :  { %v5797_v27 = vcombine.high %v5795_v2, %v5795_v2  ;;  %v5811_v30 = vrot.slane %v5795_v2, %v8277_v0  ;;  %7240 = vmatpush3.bf16.msra.mxu0 %v5459_v46  ;;  %v5796_v42 = vcombine.high %v5788_v51, %v5788_v51  ;;  %v5804_v33 = vrot.slane %v5788_v51, %v8277_v0  ;;  %v9694_v16 = vpop.f32.mrf.mxu1 }
 0x59e   :  { %v5731_v59 = vcombine.high %v5727_v18, %v5727_v18  ;;  %v5885_v4 = vrot.slane %v5727_v18, %v8280_v34  ;;  %7241 = vmatprep.subr.bf16.mxu0 %v5466_v5  ;;  %v5889_v40 = vrot.slane %v5729_v29, %v8280_v34  ;;  %v5458_v53 = vpack.c.bf16 %v5427_v10, %v5426_v31 }
 0x59f   :  { %4943 = vmatmul.mubr.bf16.vlgmr.msra.gmra.mxu1 %v8203_v37  ;;  %v5825_v23 = vrot.slane %v5797_v27, %v8277_v0  ;;  %v5827_v3 = vcombine.high %v5811_v30, %v5811_v30  ;;  %v5945_v36 = vrot.slane %v5811_v30, %v8280_v34  ;;  %v5720_v6 = vrot.slane %v5698_v9, %v8277_v0  ;;  %v9713_v29 = vpop.f32.mrf.mxu1 }
 0x5a0   :  { %4950 = vmatprep.mubr.bf16.mxu1 %v8213_v45  ;;  %v5893_v48 = vrot.slane %v5731_v59, %v8280_v34  ;;  %v6004_v47 = vmul.f32 %v5889_v40, %v9411_v52  ;;  %v6002_v12 = vmul.f32 %v5881_v57, %v9411_v52  ;;  %v6003_v15 = vmul.f32 %v5885_v4, %v9411_v52 }
 0x5a1   :  { %v5829_v1 = vcombine.high %v5825_v23, %v5825_v23  ;;  %v5953_v26 = vrot.slane %v5827_v3, %v8280_v34  ;;  %v5949_v58 = vrot.slane %v5825_v23, %v8280_v34  ;;  %7242 = vmatpush3.bf16.msra.mxu0 %v5458_v53  ;;  %v5818_v56 = vrot.slane %v5796_v42, %v8277_v0 }
 0x5a2   :  { %v6005_v22 = vmul.f32 %v5893_v48, %v9411_v52  ;;  %v6018_v14 = vmul.f32 %v5945_v36, %v9676_v19  ;;  %v5826_v41 = vcombine.high %v5804_v33, %v5804_v33  ;;  %v5728_v39 = vcombine.high %v9666_v24, %v9666_v24 }
 0x5a3   :  { %v5957_v32 = vrot.slane %v5829_v1, %v8280_v34  ;;  %v6020_v9 = vmul.f32 %v5953_v26, %v9676_v19  ;;  %v6019_v5 = vmul.f32 %v5949_v58, %v9676_v19  ;;  %v5828_v54 = vcombine.high %v5818_v56, %v5818_v56 }
 0x5a4   :  { %v5730_v31 = vcombine.high %v5720_v6, %v5720_v6  ;;  %v6029_v28 = vpack.c.bf16 %v6005_v22, %v6004_v47  ;;  %5507 = vmatmul.mubr.bf16.vlgmr.msra.gmra.mxu0 %v8203_v37  ;;  %v5937_v51 = vrot.slane %v5826_v41, %v8280_v34  ;;  %v5929_v46 = vrot.slane %v5804_v33, %v8280_v34  ;;  %v9720_v33 = vpop.f32.mrf.mxu0 }
 0x5a5   :  { %v6021_v2 = vmul.f32 %v5957_v32, %v9676_v19  ;;  %5514 = vmatprep.mubr.bf16.mxu0 %v8213_v45  ;;  %v5941_v10 = vrot.slane %v5828_v54, %v8280_v34  ;;  %v5873_v18 = vrot.slane %v5728_v39, %v8280_v34  ;;  %v5933_v30 = vrot.slane %v5818_v56, %v8280_v34  ;;  %v9735_v56 = vpop.f32.mrf.mxu1 }
 0x5a6   :  { %v5877_v27 = vrot.slane %v5730_v31, %v8280_v34  ;;  %v6016_v59 = vmul.f32 %v5937_v51, %v9676_v19  ;;  %v6014_v4 = vmul.f32 %v5929_v46, %v9676_v19  ;;  %v5865_v42 = vrot.slane %v9666_v24, %v8280_v34  ;;  %v9739_v41 = vpop.f32.mrf.mxu0 }
 0x5a7   :  { %v6037_v57 = vpack.c.bf16 %v6021_v2, %v6020_v9  ;;  %4951 = vmatmul.mubr.bf16.gmra.mxu1 %v8209_v43  ;;  %v6017_v23 = vmul.f32 %v5941_v10, %v9676_v19  ;;  %v6000_v3 = vmul.f32 %v5873_v18, %v9411_v52  ;;  %v6015_v53 = vmul.f32 %v5933_v30, %v9676_v19  ;;  %v9760_v46 = vpop.f32.mrf.mxu1 }
 0x5a8   :  { %4958 = vmatprep.mubr.bf16.mxu1 %v8315_v21  ;;  %v6001_v40 = vmul.f32 %v5877_v27, %v9411_v52  ;;  %v6036_v48 = vpack.c.bf16 %v6019_v5, %v6018_v14  ;;  %v5869_v36 = vrot.slane %v5720_v6, %v8280_v34  ;;  %v5732_v1 = vcombine.high %v9403_v7, %v9403_v7  ;;  %v9765_v30 = vpop.f32.mrf.mxu0 }
 0x5a9   :  { %7261 = vmatprep.subr.bf16.mxu1 %v6037_v57  ;;  %v5650_v24 = vcombine.high %v9415_v55, %v9415_v55  ;;  %v6028_v26 = vpack.c.bf16 %v6003_v15, %v6002_v12  ;;  %v6035_v47 = vpack.c.bf16 %v6017_v23, %v6016_v59  ;;  %v5998_v58 = vmul.f32 %v5865_v42, %v9411_v52 }
 0x5aa   :  { %7262 = vmatpush3.bf16.msra.mxu1 %v6029_v28  ;;  %v5664_v22 = vrot.slane %v9415_v55, %v8277_v0  ;;  %v6027_v32 = vpack.c.bf16 %v6001_v40, %v6000_v3  ;;  %v6034_v9 = vpack.c.bf16 %v6015_v53, %v6014_v4  ;;  %v5746_v6 = vrot.slane %v5732_v1, %v8277_v0 }
 0x5ab   :  { %7263 = vmatprep.subr.bf16.mxu1 %v6036_v48  ;;  %v5678_v14 = vrot.slane %v5650_v24, %v8277_v0  ;;  %v5999_v5 = vmul.f32 %v5869_v36, %v9411_v52  ;;  %v5739_v54 = vrot.slane %v9403_v7, %v8277_v0  ;;  %v9749_v2 = vrot.slane %v9408_v25, %v8277_v0  ;;  %v7018_v36 = vpop.f32.mrf.mxu1 }
 0x5ac   :  { %v5680_v12 = vcombine.high %v5664_v22, %v5664_v22  ;;  %v5849_v15 = vrot.slane %v5664_v22, %v8280_v34  ;;  %5515 = vmatmul.mubr.bf16.gmra.mxu0 %v8209_v43  ;;  %v5748_v55 = vcombine.high %v5746_v6, %v5746_v6  ;;  %v5762_v39 = vrot.slane %v5746_v6, %v8277_v0 }
 0x5ad   :  { %v5682_v31 = vcombine.high %v5678_v14, %v5678_v14  ;;  %5522 = vmatprep.mubr.bf16.mxu0 %v8315_v21  ;;  %v5853_v51 = vrot.slane %v5678_v14, %v8280_v34  ;;  %v9758_v7 = vrot.slane %v5649_v62, %v8277_v0  ;;  %v6026_v57 = vpack.c.bf16 %v5999_v5, %v5998_v58  ;;  %v7052_v58 = vpop.f32.mrf.mxu0 }
 0x5ae   :  { %7264 = vmatpush3.bf16.msra.mxu1 %v6028_v26  ;;  %v5857_v28 = vrot.slane %v5680_v12, %v8280_v34  ;;  %v5776_v10 = vrot.slane %v5748_v55, %v8277_v0  ;;  %v5778_v18 = vcombine.high %v5762_v39, %v5762_v39  ;;  %v5913_v59 = vrot.slane %v5762_v39, %v8280_v34  ;;  %v7020_v39 = vpop.f32.mrf.mxu1 }
 0x5af   :  { %7265 = vmatprep.subr.bf16.mxu1 %v6035_v47  ;;  %4959 = vmatmul.mubr.bf16.gmra.mxu1 %v8217_v49  ;;  %v5861_v27 = vrot.slane %v5682_v31, %v8280_v34  ;;  %v9770_v25 = vmul.f32 %v5849_v15, %v9411_v52  ;;  %v5747_v62 = vcombine.high %v5739_v54, %v5739_v54 }
 0x5b0   :  { %6070 = vmatprep.mubr.bf16.mxu1 %v8238_v61  ;;  %v5780_v4 = vcombine.high %v5776_v10, %v5776_v10  ;;  %v5921_v42 = vrot.slane %v5778_v18, %v8280_v34  ;;  %v5996_v23 = vmul.f32 %v5857_v28, %v9411_v52  ;;  %v5917_v3 = vrot.slane %v5776_v10, %v8280_v34  ;;  %v7054_v28 = vpop.f32.mrf.mxu0 }
 0x5b1   :  { %v5997_v40 = vmul.f32 %v5861_v27, %v9411_v52  ;;  %v5995_v53 = vmul.f32 %v5853_v51, %v9411_v52  ;;  %v5755_v61 = vrot.slane %v5739_v54, %v8277_v0  ;;  %v5769_v48 = vrot.slane %v5747_v62, %v8277_v0 }
 0x5b2   :  { %7266 = vmatpush3.bf16.msra.mxu1 %v6027_v32  ;;  %v5925_v1 = vrot.slane %v5780_v4, %v8280_v34  ;;  %v6012_v24 = vmul.f32 %v5921_v42, %v9676_v19  ;;  %v6010_v26 = vmul.f32 %v5913_v59, %v9676_v19  ;;  %v6011_v47 = vmul.f32 %v5917_v3, %v9676_v19 }
 0x5b3   :  { %7267 = vmatprep.subr.bf16.mxu1 %v6034_v9  ;;  %v5777_v22 = vcombine.high %v5755_v61, %v5755_v61  ;;  %v5779_v32 = vcombine.high %v5769_v48, %v5769_v48  ;;  %v5679_v6 = vcombine.high %v9749_v2, %v9749_v2  ;;  %v5681_v14 = vcombine.high %v9758_v7, %v9758_v7 }
 0x5b4   :  { %v6013_v0 = vmul.f32 %v5925_v1, %v9676_v19  ;;  %5523 = vmatmul.mubr.bf16.gmra.mxu0 %v8217_v49  ;;  %v5897_v9 = vrot.slane %v5755_v61, %v8280_v34  ;;  %v5901_v5 = vrot.slane %v5769_v48, %v8280_v34  ;;  %v6025_v51 = vpack.c.bf16 %v5997_v40, %v5996_v23  ;;  %v7021_v40 = vpop.f32.mrf.mxu1  ;;  %v7055_v48 = vpop.f32.mrf.mxu0 }
 0x5b5   :  { %v5905_v12 = vrot.slane %v5777_v22, %v8280_v34  ;;  %v5909_v15 = vrot.slane %v5779_v32, %v8280_v34  ;;  %v5841_v54 = vrot.slane %v5679_v6, %v8280_v34  ;;  %v5845_v55 = vrot.slane %v5681_v14, %v8280_v34 }
 0x5b6   :  { %7268 = vmatpush3.bf16.msra.mxu1 %v6026_v57  ;;  %v6033_v31 = vpack.c.bf16 %v6013_v0, %v6012_v24  ;;  %v6032_v10 = vpack.c.bf16 %v6011_v47, %v6010_v26  ;;  %v6024_v18 = vpack.c.bf16 %v5995_v53, %v9770_v25  ;;  %v6006_v27 = vmul.f32 %v5897_v9, %v9676_v19 }
 0x5b7   :  { %v6008_v57 = vmul.f32 %v5905_v12, %v9676_v19  ;;  %v6009_v59 = vmul.f32 %v5909_v15, %v9676_v19  ;;  %v6007_v62 = vmul.f32 %v5901_v5, %v9676_v19  ;;  %v5833_v4 = vrot.slane %v9749_v2, %v8280_v34 }
 0x5b8   :  { %7269 = vmatprep.subr.bf16.mxu1 %v6033_v31  ;;  %v5992_v42 = vmul.f32 %v5841_v54, %v9411_v52  ;;  %v5993_v23 = vmul.f32 %v5845_v55, %v9411_v52  ;;  %v7007_v25 = vadd.f32 %v9615_v44, %v9598_v63  ;;  %v7010_v3 = vadd.f32 %v9652_v38, %v9631_v17 }
 0x5b9   :  { %v5837_v53 = vrot.slane %v9758_v7, %v8280_v34  ;;  %v7041_v19 = vadd.f32 %v9622_v13, %v9601_v8  ;;  %v7044_v2 = vadd.f32 %v9660_v20, %v9636_v60  ;;  %v7013_v61 = vadd.f32 %v9694_v16, %v9672_v11 }
 0x5ba   :  { %7270 = vmatpush3.bf16.msra.mxu1 %v6025_v51  ;;  %v6753_v1 = vpack.c.bf16 %v7010_v3, %v7007_v25  ;;  %v7047_v63 = vadd.f32 %v9699_v50, %v9681_v35  ;;  %v7016_v44 = vadd.f32 %v9735_v56, %v9713_v29  ;;  %v7050_v34 = vadd.f32 %v9739_v41, %v9720_v33 }
 0x5bb   :  { %7271 = vmatprep.subr.bf16.mxu1 %v6032_v10  ;;  %v6031_v17 = vpack.c.bf16 %v6009_v59, %v6008_v57  ;;  %v6768_v38 = vpack.c.bf16 %v7044_v2, %v7041_v19  ;;  %v7019_v8 = vadd.f32 %v7018_v36, %v9760_v46  ;;  %v7022_v13 = vadd.f32 %v7021_v40, %v7020_v39 }
 0x5bc   :  { %6754 = vst [vmem:[#allocation2] sm:$0xff] %v6753_v1   ;;  %v6758_v60 = vpack.c.bf16 %v7016_v44, %v7013_v61  ;;  %v6773_v20 = vpack.c.bf16 %v7050_v34, %v7047_v63  ;;  %v7053_v11 = vadd.f32 %v7052_v58, %v9765_v30  ;;  %v7056_v16 = vadd.f32 %v7055_v48, %v7054_v28 }
 0x5bd   :  { %6887 = vst [vmem:[#allocation2 + $0x18] sm:$0xff] %v6768_v38   ;;  %v6763_v35 = vpack.c.bf16 %v7022_v13, %v7019_v8  ;;  %v6023_v50 = vpack.c.bf16 %v5993_v23, %v5992_v42  ;;  %v5990_v29 = vmul.f32 %v5833_v4, %v9411_v52  ;;  %v5991_v33 = vmul.f32 %v5837_v53, %v9411_v52 }
 0x5be   :  { %7272 = vmatpush3.bf16.msra.mxu1 %v6024_v18  ;;  %6885 = vst [vmem:[#allocation2 + $0x8] sm:$0xff] %v6758_v60   ;;  %6888 = vst [vmem:[#allocation2 + $0x20] sm:$0xff] %v6773_v20   ;;  %v6778_v56 = vpack.c.bf16 %v7056_v16, %v7053_v11  ;;  %v6030_v41 = vpack.c.bf16 %v6007_v62, %v6006_v27  ;;  %v7910_v2 = vmov 0  }
 0x5bf   :  { %7273 = vmatprep.subr.bf16.mxu1 %v6031_v17  ;;  %6886 = vst [vmem:[#allocation2 + $0x10] sm:$0xff] %v6763_v35   ;;  %v6022_v7 = vpack.c.bf16 %v5991_v33, %v5990_v29 }
 0x5c0   :  { %6889 = vst [vmem:[#allocation2 + $0x28] sm:$0xff] %v6778_v56  }
 0x5c2   :  { %7274 = vmatpush3.bf16.msra.mxu1 %v6023_v50 }
 0x5c3   :  { %7275 = vmatprep.subr.bf16.mxu1 %v6030_v41 }
 0x5c6   :  { %7276 = vmatpush3.bf16.msra.mxu1 %v6022_v7 }
 0x5c7   :  { %6467 = vmatprep.subr.bf16.mxu1 %v7910_v2 }
 0x5c9   :  { %6071 = vmatmul.mubr.bf16.vlgmr.msra.gmra.mxu1 %v8203_v37 }
 0x5ca   :  { %6078 = vmatprep.mubr.bf16.mxu1 %v8213_v45 }
 0x5d1   :  { %6079 = vmatmul.mubr.bf16.gmra.mxu1 %v8209_v43  ;;  %v7073_v46 = vpop.f32.mrf.mxu1 }
 0x5d2   :  { %6086 = vmatprep.mubr.bf16.mxu1 %v8315_v21 }
 0x5d3   :  { %v7074_v52 = vpop.f32.mrf.mxu1 }
 0x5d4   :  { %v7107_v30 = vpop.f32.mrf.mxu0  ;;  %v7075_v47 = vadd.f32 %v7074_v52, %v7073_v46 }
 0x5d5   :  { %v7076_v36 = vpop.f32.mrf.mxu1 }
 0x5d6   :  { %v7108_v24 = vpop.f32.mrf.mxu0 }
 0x5d7   :  { %v7077_v26 = vpop.f32.mrf.mxu1  ;;  %v7109_v14 = vadd.f32 %v7108_v24, %v7107_v30 }
 0x5d8   :  { %v7078_v58 = vadd.f32 %v7077_v26, %v7076_v36  ;;  %v7110_v22 = vpop.f32.mrf.mxu0 }
 0x5d9   :  { %6087 = vmatmul.mubr.bf16.gmra.mxu1 %v8217_v49  ;;  %v7079_v32 = vpop.f32.mrf.mxu1 }
 0x5da   :  { %v6783_v6 = vpack.c.bf16 %v7078_v58, %v7075_v47  ;;  %v7111_v37 = vpop.f32.mrf.mxu0 }
 0x5db   :  { %v7112_v45 = vadd.f32 %v7111_v37, %v7110_v22  ;;  %v7080_v0 = vpop.f32.mrf.mxu1 }
 0x5dc   :  { %6890 = vst [vmem:[#allocation2 + $0x30] sm:$0xff] %v6783_v6   ;;  %v7081_v5 = vadd.f32 %v7080_v0, %v7079_v32  ;;  %v7584_v0 = vld [vmem:[#allocation20 + $0x4] ss:$16 sps:$4 sm:$0xff]  }
 0x5dd   :  { %v6798_v43 = vpack.c.bf16 %v7112_v45, %v7109_v14  ;;  %v7082_v21 = vpop.f32.mrf.mxu1  ;;  %6443 = vmatprep.mubr.bf16.mxu0 %v7584_v0 }
 0x5de   :  { %v7113_v49 = vpop.f32.mrf.mxu0 }
 0x5df   :  { %6893 = vst [vmem:[#allocation2 + $0x48] sm:$0xff] %v6798_v43   ;;  %v7083_v9 = vpop.f32.mrf.mxu1 }
 0x5e0   :  { %v7084_v12 = vadd.f32 %v7083_v9, %v7082_v21  ;;  %v7114_v54 = vpop.f32.mrf.mxu0 }
 0x5e1   :  { %v7115_v51 = vadd.f32 %v7114_v54, %v7113_v49  ;;  %v7588_v49 = vld [vmem:[#allocation20 + $0xc] ss:$16 sps:$4 sm:$0xff]  }
 0x5e2   :  { %v6788_v15 = vpack.c.bf16 %v7084_v12, %v7081_v5  ;;  %v7116_v39 = vpop.f32.mrf.mxu0  ;;  %6693 = vmatprep.mubr.msk.bf16.mxu1 %vm820_vm3, %v7588_v49 }
 0x5e3   :  { %v7085_v55 = vpop.f32.mrf.mxu1 }
 0x5e4   :  { %6891 = vst [vmem:[#allocation2 + $0x38] sm:$0xff] %v6788_v15   ;;  %v7117_v28 = vpop.f32.mrf.mxu0 }
 0x5e5   :  { %v7086_v31 = vpop.f32.mrf.mxu1  ;;  %v7118_v10 = vadd.f32 %v7117_v28, %v7116_v39  ;;  %v7559_v28 = vld [vmem:[#allocation2 + $0x30] sm:$0xff]  }
 0x5e6   :  { %v7087_v59 = vadd.f32 %v7086_v31, %v7085_v55  ;;  %v7119_v62 = vpop.f32.mrf.mxu0 }
 0x5e7   :  { %v7088_v18 = vpop.f32.mrf.mxu1  ;;  %v6803_v27 = vpack.c.bf16 %v7118_v10, %v7115_v51  ;;  %v7561_v10 = vld [vmem:[#allocation2 + $0x28] sm:$0xff]  }
 0x5e8   :  { %v7120_v42 = vpop.f32.mrf.mxu0 }
 0x5e9   :  { %v7089_v57 = vpop.f32.mrf.mxu1  ;;  %6894 = vst [vmem:[#allocation2 + $0x50] sm:$0xff] %v6803_v27   ;;  %v7121_v40 = vadd.f32 %v7120_v42, %v7119_v62  ;;  %v7563_v27 = vld [vmem:[#allocation2 + $0x20] sm:$0xff]   ;;  %v7568_v42 = vld [vmem:[#allocation2 + $0x48] sm:$0xff]  }
 0x5ea   :  { %v7090_v4 = vadd.f32 %v7089_v57, %v7088_v18  ;;  %v7122_v25 = vpop.f32.mrf.mxu0 }
 0x5eb   :  { %v7557_v45 = vld [vmem:[#allocation2 + $0x38] sm:$0xff]  }
 0x5ec   :  { %v6793_v23 = vpack.c.bf16 %v7090_v4, %v7087_v59  ;;  %v7123_v3 = vpop.f32.mrf.mxu0  ;;  %v7565_v59 = vld [vmem:[#allocation2 + $0x18] sm:$0xff]   ;;  %v7567_v4 = vld [vmem:[#allocation2 + $0x10] sm:$0xff]  }
 0x5ed   :  { %v7124_v53 = vadd.f32 %v7123_v3, %v7122_v25  ;;  %v7571_v3 = vld [vmem:[#allocation2] sm:$0xff]  }
 0x5ee   :  { %6892 = vst [vmem:[#allocation2 + $0x40] sm:$0xff] %v6793_v23   ;;  %v7569_v23 = vld [vmem:[#allocation2 + $0x8] sm:$0xff]  }
 0x5ef   :  { %v6808_v19 = vpack.c.bf16 %v7124_v53, %v7121_v40  ;;  %v7582_v40 = vld [vmem:[#allocation20] ss:$16 sps:$4 sm:$0xff]   ;;  %v7589_v53 = vld [vmem:[#allocation20 + $0x24] ss:$16 sps:$4 sm:$0xff]  }
 0x5f0   :  { %v7566_v62 = vld [vmem:[#allocation2 + $0x50] sm:$0xff]  }
 0x5f1   :  { %6895 = vst [vmem:[#allocation2 + $0x58] sm:$0xff] %v6808_v19   ;;  %v6133_v19 = vld [vmem:[#allocation20 + $0x40] sm:$0x33] }
 0x5f5   :  { %v7570_v25 = vld [vmem:[#allocation2 + $0x40] sm:$0xff]  }
 0x5f8   :  { %v7564_v57 = vld [vmem:[#allocation2 + $0x58] sm:$0xff]  }
 0x614   :  { %v7141_v61 = vpop.f32.mrf.mxu1 }
 0x616   :  { %v7142_v48 = vpop.f32.mrf.mxu1 }
 0x617   :  { %v7143_v44 = vadd.f32 %v7142_v48, %v7141_v61  ;;  %v7591_v48 = vld [vmem:[#allocation20 + $0x20] ss:$16 sps:$4 sm:$0xff]  }
 0x618   :  { %v7144_v1 = vpop.f32.mrf.mxu1 }
 0x61a   :  { %v7145_v63 = vpop.f32.mrf.mxu1 }
 0x61b   :  { %v7146_v34 = vadd.f32 %v7145_v63, %v7144_v1  ;;  %v6663_v1 = vcombine.high %v6133_v19, %v6133_v19 }
 0x61c   :  { %v7175_v17 = vpop.f32.mrf.mxu0 }
 0x61d   :  { %v6813_v38 = vpack.c.bf16 %v7146_v34, %v7143_v44 }
 0x61e   :  { %v7176_v8 = vpop.f32.mrf.mxu0  ;;  %v7147_v13 = vpop.f32.mrf.mxu1 }
 0x61f   :  { %6896 = vst [vmem:[#allocation2 + $0x60] sm:$0xff] %v6813_v38   ;;  %v7177_v35 = vadd.f32 %v7176_v8, %v7175_v17 }
 0x620   :  { %v7178_v60 = vpop.f32.mrf.mxu0  ;;  %v7148_v20 = vpop.f32.mrf.mxu1 }
 0x621   :  { %v7149_v56 = vadd.f32 %v7148_v20, %v7147_v13  ;;  %v6662_v20 = vcombine.low %v6133_v19, %v6133_v19 }
 0x622   :  { %v7179_v11 = vpop.f32.mrf.mxu0  ;;  %v7150_v16 = vpop.f32.mrf.mxu1 }
 0x623   :  { %v7180_v50 = vadd.f32 %v7179_v11, %v7178_v60 }
 0x624   :  { %v7151_v29 = vpop.f32.mrf.mxu1 }
 0x625   :  { %v6828_v33 = vpack.c.bf16 %v7180_v50, %v7177_v35  ;;  %v7181_v41 = vpop.f32.mrf.mxu0  ;;  %v7152_v7 = vadd.f32 %v7151_v29, %v7150_v16 }
 0x626   :  { %v7562_v18 = vld [vmem:[#allocation2 + $0x60] sm:$0xff]  }
 0x627   :  { %6899 = vst [vmem:[#allocation2 + $0x78] sm:$0xff] %v6828_v33   ;;  %v7182_v46 = vpop.f32.mrf.mxu0  ;;  %v6818_v52 = vpack.c.bf16 %v7152_v7, %v7149_v56 }
 0x628   :  { %v7153_v36 = vpop.f32.mrf.mxu1  ;;  %v7183_v47 = vadd.f32 %v7182_v46, %v7181_v41 }
 0x629   :  { %6897 = vst [vmem:[#allocation2 + $0x68] sm:$0xff] %v6818_v52   ;;  %v7184_v30 = vpop.f32.mrf.mxu0 }
 0x62a   :  { %v7154_v26 = vpop.f32.mrf.mxu1 }
 0x62b   :  { %v7185_v24 = vpop.f32.mrf.mxu0  ;;  %v7155_v43 = vadd.f32 %v7154_v26, %v7153_v36 }
 0x62c   :  { %v7186_v58 = vadd.f32 %v7185_v24, %v7184_v30  ;;  %v7156_v22 = vpop.f32.mrf.mxu1 }
 0x62e   :  { %v6833_v32 = vpack.c.bf16 %v7186_v58, %v7183_v47  ;;  %v7556_v6 = vld [vmem:[#allocation2 + $0x78] sm:$0xff]   ;;  %v7187_v37 = vpop.f32.mrf.mxu0  ;;  %v7157_v14 = vpop.f32.mrf.mxu1 }
 0x62f   :  { %v7158_v21 = vadd.f32 %v7157_v14, %v7156_v22  ;;  %7295 = vmatprep.subr.bf16.mxu0 %v7556_v6 }
 0x630   :  { %6900 = vst [vmem:[#allocation2 + $0x80] sm:$0xff] %v6833_v32   ;;  %v7188_v9 = vpop.f32.mrf.mxu0  ;;  %7296 = vmatpush3.bf16.msra.mxu0 %v7557_v45  ;;  %v7560_v51 = vld [vmem:[#allocation2 + $0x68] sm:$0xff]  }
 0x631   :  { %v6823_v5 = vpack.c.bf16 %v7158_v21, %v7155_v43  ;;  %v7189_v54 = vadd.f32 %v7188_v9, %v7187_v37 }
 0x632   :  { %v7190_v12 = vpop.f32.mrf.mxu0 }
 0x633   :  { %6898 = vst [vmem:[#allocation2 + $0x70] sm:$0xff] %v6823_v5  }
 0x634   :  { %v7191_v15 = vpop.f32.mrf.mxu0 }
 0x635   :  { %v7192_v55 = vadd.f32 %v7191_v15, %v7190_v12 }
 0x637   :  { %v6838_v39 = vpack.c.bf16 %v7192_v55, %v7189_v54 }
 0x639   :  { %6901 = vst [vmem:[#allocation2 + $0x88] sm:$0xff] %v6838_v39  }
 0x63a   :  { %v7558_v31 = vld [vmem:[#allocation2 + $0x70] sm:$0xff]  }
 0x63b   :  { %7297 = vmatprep.subr.bf16.mxu0 %v7558_v31 }
 0x63c   :  { %7298 = vmatpush3.bf16.msra.mxu0 %v7559_v28 }
 0x63d   :  { %7299 = vmatprep.subr.bf16.mxu0 %v7560_v51 }
 0x640   :  { %7300 = vmatpush3.bf16.msra.mxu0 %v7561_v10 }
 0x641   :  { %7301 = vmatprep.subr.bf16.mxu0 %v7562_v18 }
 0x644   :  { %7302 = vmatpush3.bf16.msra.mxu0 %v7563_v27 }
 0x645   :  { %7303 = vmatprep.subr.bf16.mxu0 %v7564_v57 }
 0x648   :  { %7304 = vmatpush3.bf16.msra.mxu0 %v7565_v59 }
 0x649   :  { %7305 = vmatprep.subr.bf16.mxu0 %v7566_v62 }
 0x64c   :  { %7306 = vmatpush3.bf16.msra.mxu0 %v7567_v4 }
 0x64d   :  { %7307 = vmatprep.subr.bf16.mxu0 %v7568_v42 }
 0x650   :  { %7308 = vmatpush3.bf16.msra.mxu0 %v7569_v23 }
 0x651   :  { %7309 = vmatprep.subr.bf16.mxu0 %v7570_v25 }
 0x654   :  { %7310 = vmatpush3.bf16.msra.mxu0 %v7571_v3 }
 0x657   :  { %6444 = vmatmul.mubr.bf16.vlgmr.msra.gmra.mxu0 %v7582_v40 }
 0x658   :  { %6451 = vmatprep.mubr.bf16.mxu0 %v7589_v53 }
 0x65f   :  { %v7209_v61 = vpop.f32.mrf.mxu1  ;;  %6452 = vmatmul.mubr.bf16.gmra.mxu0 %v7591_v48 }
 0x660   :  { %6459 = vmatprep.mubr.bf16.mxu0 %v6663_v1 }
 0x661   :  { %v7210_v63 = vpop.f32.mrf.mxu1 }
 0x662   :  { %v7211_v38 = vadd.f32 %v7210_v63, %v7209_v61 }
 0x663   :  { %v7212_v44 = vpop.f32.mrf.mxu1 }
 0x664   :  { %v7243_v34 = vpop.f32.mrf.mxu0 }
 0x665   :  { %v7213_v17 = vpop.f32.mrf.mxu1 }
 0x666   :  { %v7214_v8 = vadd.f32 %v7213_v17, %v7212_v44  ;;  %v7244_v13 = vpop.f32.mrf.mxu0  ;;  %v7578_v17 = vld [vmem:[#allocation2 + $0x88] sm:$0xff]  }
 0x667   :  { %v7215_v60 = vpop.f32.mrf.mxu1  ;;  %6460 = vmatmul.mubr.bf16.gmra.mxu0 %v6662_v20  ;;  %v7245_v33 = vadd.f32 %v7244_v13, %v7243_v34 }
 0x668   :  { %v6843_v11 = vpack.c.bf16 %v7214_v8, %v7211_v38  ;;  %v7246_v16 = vpop.f32.mrf.mxu0 }
 0x669   :  { %v7216_v35 = vpop.f32.mrf.mxu1 }
 0x66a   :  { %6902 = vst [vmem:[#allocation2 + $0x90] sm:$0xff] %v6843_v11   ;;  %v7247_v50 = vpop.f32.mrf.mxu0  ;;  %v7217_v52 = vadd.f32 %v7216_v35, %v7215_v60  ;;  %v7579_v60 = vld [vmem:[#allocation2 + $0x80] sm:$0xff]  }
 0x66b   :  { %v7218_v29 = vpop.f32.mrf.mxu1  ;;  %v7248_v56 = vadd.f32 %v7247_v50, %v7246_v16  ;;  %v7586_v35 = vld [vmem:[#allocation20 + $0x8] ss:$16 sps:$4 sm:$0xff]   ;;  %v7592_v50 = vld [vmem:[#allocation20 + $0x2c] ss:$16 sps:$4 sm:$0xff]  }
 0x66c   :  { %v7249_v41 = vpop.f32.mrf.mxu0 }
 0x66d   :  { %v7219_v7 = vpop.f32.mrf.mxu1  ;;  %v6858_v46 = vpack.c.bf16 %v7248_v56, %v7245_v33  ;;  %v7594_v33 = vld [vmem:[#allocation20 + $0x28] ss:$16 sps:$4 sm:$0xff]  }
 0x66e   :  { %v7220_v30 = vadd.f32 %v7219_v7, %v7218_v29  ;;  %v7250_v36 = vpop.f32.mrf.mxu0  ;;  %v6134_v29 = vld [vmem:[#allocation20 + $0x48] sm:$0x33] }
 0x66f   :  { %v7221_v24 = vpop.f32.mrf.mxu1  ;;  %6905 = vst [vmem:[#allocation2 + $0xa8] sm:$0xff] %v6858_v46   ;;  %v7251_v6 = vadd.f32 %v7250_v36, %v7249_v41  ;;  %v6665_v56 = vcombine.high %v6134_v29, %v6134_v29  ;;  %v6664_v41 = vcombine.low %v6134_v29, %v6134_v29 }
 0x670   :  { %v6848_v26 = vpack.c.bf16 %v7220_v30, %v7217_v52  ;;  %v7252_v47 = vpop.f32.mrf.mxu0 }
 0x671   :  { %v7222_v58 = vpop.f32.mrf.mxu1  ;;  %v7577_v63 = vld [vmem:[#allocation2 + $0x90] sm:$0xff]  }
 0x672   :  { %6903 = vst [vmem:[#allocation2 + $0x98] sm:$0xff] %v6848_v26   ;;  %v7253_v22 = vpop.f32.mrf.mxu0  ;;  %v7223_v43 = vadd.f32 %v7222_v58, %v7221_v24 }
 0x673   :  { %v7224_v32 = vpop.f32.mrf.mxu1  ;;  %v7254_v37 = vadd.f32 %v7253_v22, %v7252_v47 }
 0x674   :  { %v7255_v14 = vpop.f32.mrf.mxu0 }
 0x675   :  { %v7225_v45 = vpop.f32.mrf.mxu1  ;;  %v6863_v0 = vpack.c.bf16 %v7254_v37, %v7251_v6 }
 0x676   :  { %v7226_v21 = vadd.f32 %v7225_v45, %v7224_v32  ;;  %v7256_v9 = vpop.f32.mrf.mxu0  ;;  %v7574_v27 = vld [vmem:[#allocation2 + $0xa8] sm:$0xff]  }
 0x677   :  { %6906 = vst [vmem:[#allocation2 + $0xb0] sm:$0xff] %v6863_v0   ;;  %v7257_v15 = vadd.f32 %v7256_v9, %v7255_v14 }
 0x678   :  { %v6853_v5 = vpack.c.bf16 %v7226_v21, %v7223_v43  ;;  %v7258_v12 = vpop.f32.mrf.mxu0 }
 0x679   :  { %v7576_v40 = vld [vmem:[#allocation2 + $0x98] sm:$0xff]  }
 0x67a   :  { %6904 = vst [vmem:[#allocation2 + $0xa0] sm:$0xff] %v6853_v5   ;;  %v7259_v49 = vpop.f32.mrf.mxu0 }
 0x67b   :  { %v7260_v54 = vadd.f32 %v7259_v49, %v7258_v12  ;;  %v9919_v49 = vld [vmem:[#allocation29_spill] sm:$0xff] }
 0x67d   :  { %v6868_v55 = vpack.c.bf16 %v7260_v54, %v7257_v15 }
 0x67e   :  { %v7573_v51 = vld [vmem:[#allocation2 + $0xb0] sm:$0xff]  }
 0x67f   :  { %6907 = vst [vmem:[#allocation2 + $0xb8] sm:$0xff] %v6868_v55  }
 0x681   :  { %v7575_v23 = vld [vmem:[#allocation2 + $0xa0] sm:$0xff]  }
 0x686   :  { %v7572_v39 = vld [vmem:[#allocation2 + $0xb8] sm:$0xff]  }
 0x687   :  { %6468 = vmatpush1.bf16.msra.mxu1 %v7572_v39 }
 0x688   :  { %6469 = vmatprep.subr.bf16.mxu1 %v7910_v2 }
 0x689   :  { %v7277_v31 = vpop.f32.mrf.mxu1 }
 0x68b   :  { %v7278_v28 = vpop.f32.mrf.mxu1  ;;  %6470 = vmatpush1.bf16.msra.mxu1 %v7573_v51 }
 0x68c   :  { %6471 = vmatprep.subr.bf16.mxu1 %v7910_v2  ;;  %v7279_v57 = vadd.f32 %v7278_v28, %v7277_v31  ;;  %v9920_v28 = vld [vmem:[#allocation30_spill] sm:$0xff] }
 0x68d   :  { %v7280_v10 = vpop.f32.mrf.mxu1 }
 0x68f   :  { %v7281_v18 = vpop.f32.mrf.mxu1  ;;  %6472 = vmatpush1.bf16.msra.mxu1 %v7574_v27 }
 0x690   :  { %v7282_v59 = vadd.f32 %v7281_v18, %v7280_v10  ;;  %6473 = vmatprep.subr.bf16.mxu1 %v7910_v2 }
 0x691   :  { %v7283_v62 = vpop.f32.mrf.mxu1 }
 0x692   :  { %v6873_v4 = vpack.c.bf16 %v7282_v59, %v7279_v57  ;;  %v9921_v59 = vld [vmem:[#allocation31_spill] sm:$0xff] }
 0x693   :  { %v7284_v42 = vpop.f32.mrf.mxu1  ;;  %6474 = vmatpush1.bf16.msra.mxu1 %v7575_v23 }
 0x694   :  { %6908 = vst [vmem:[#allocation2 + $0xc0] sm:$0xff] %v6873_v4   ;;  %6475 = vmatprep.subr.bf16.mxu1 %v7910_v2  ;;  %v7285_v53 = vadd.f32 %v7284_v42, %v7283_v62 }
 0x695   :  { %v7286_v25 = vpop.f32.mrf.mxu1 }
 0x697   :  { %v7287_v3 = vpop.f32.mrf.mxu1  ;;  %6476 = vmatpush1.bf16.msra.mxu1 %v7576_v40 }
 0x698   :  { %v7288_v19 = vadd.f32 %v7287_v3, %v7286_v25  ;;  %6477 = vmatprep.subr.bf16.mxu1 %v7910_v2  ;;  %v9922_v3 = vld [vmem:[#allocation32_spill] sm:$0xff] }
 0x699   :  { %v7289_v61 = vpop.f32.mrf.mxu1 }
 0x69a   :  { %v6878_v48 = vpack.c.bf16 %v7288_v19, %v7285_v53 }
 0x69b   :  { %v7290_v1 = vpop.f32.mrf.mxu1  ;;  %6478 = vmatpush1.bf16.msra.mxu1 %v7577_v63  ;;  %v7585_v16 = vld [vmem:[#allocation2 + $0xc0] sm:$0xff]  }
 0x69c   :  { %6909 = vst [vmem:[#allocation2 + $0xc8] sm:$0xff] %v6878_v48   ;;  %6479 = vmatprep.subr.bf16.mxu1 %v7910_v2  ;;  %v7291_v38 = vadd.f32 %v7290_v1, %v7289_v61  ;;  %v9923_v1 = vld [vmem:[#allocation33_spill] sm:$0xff] }
 0x69d   :  { %v7292_v44 = vpop.f32.mrf.mxu1 }
 0x69f   :  { %v7293_v34 = vpop.f32.mrf.mxu1  ;;  %6480 = vmatpush1.bf16.msra.mxu1 %v7578_v17 }
 0x6a0   :  { %v7294_v8 = vadd.f32 %v7293_v34, %v7292_v44  ;;  %6481 = vmatprep.subr.bf16.mxu1 %v7910_v2 }
 0x6a2   :  { %v6883_v13 = vpack.c.bf16 %v7294_v8, %v7291_v38 }
 0x6a3   :  { %6482 = vmatpush1.bf16.msra.mxu1 %v7579_v60  ;;  %v7581_v11 = vld [vmem:[#allocation2 + $0xc8] sm:$0xff]  }
 0x6a4   :  { %6910 = vst [vmem:[#allocation2 + $0xd0] sm:$0xff] %v6883_v13   ;;  %6493 = vmatprep.subr.bf16.mxu1 %v7910_v2 }
 0x6ab   :  { %v7580_v20 = vld [vmem:[#allocation2 + $0xd0] sm:$0xff]  }
 0x6ac   :  { %6494 = vmatpush2.bf16.msra.mxu1 %v7580_v20 }
 0x6ad   :  { %6495 = vmatprep.subr.bf16.mxu1 %v7910_v2 }
 0x6b0   :  { %6496 = vmatpush2.bf16.msra.mxu1 %v7581_v11 }
 0x6b1   :  { %6497 = vmatprep.subr.bf16.mxu1 %v7910_v2 }
 0x6b4   :  { %6498 = vmatpush2.bf16.msra.mxu1 %v7585_v16 }
 0x6b7   :  { %6500 = vmatmul.mubr.bf16.vlgmr.msra.gmra.mxu1 %v7586_v35 }
 0x6b8   :  { %6694 = vmatprep.mubr.msk.bf16.mxu1 %vm820_vm3, %v7592_v50 }
 0x6bf   :  { %6508 = vmatmul.mubr.bf16.gmra.mxu1 %v7594_v33 }
 0x6c0   :  { %6695 = vmatprep.mubr.msk.bf16.mxu1 %vm820_vm3, %v6665_v56 }
 0x6c7   :  { %6516 = vmatmul.mubr.bf16.gmra.mxu1 %v6664_v41 }
 0x717   :  { %v7311_v7 = vpop.f32.mrf.mxu0 }
 0x719   :  { %v7312_v46 = vpop.f32.mrf.mxu0 }
 0x71a   :  { %v7313_v52 = vadd.f32 %v7312_v46, %v7311_v7 }
 0x71b   :  { %v7314_v30 = vpop.f32.mrf.mxu0 }
 0x71d   :  { %v7315_v2 = vpop.f32.mrf.mxu0 }
 0x71e   :  { %v7316_v36 = vadd.f32 %v7315_v2, %v7314_v30 }
 0x71f   :  { %v7317_v24 = vpop.f32.mrf.mxu0 }
 0x721   :  { %v7318_v26 = vpop.f32.mrf.mxu0 }
 0x722   :  { %v7319_v47 = vadd.f32 %v7318_v26, %v7317_v24 }
 0x723   :  { %v7320_v58 = vpop.f32.mrf.mxu0 }
 0x725   :  { %v7321_v22 = vpop.f32.mrf.mxu0 }
 0x726   :  { %v7322_v32 = vadd.f32 %v7321_v22, %v7320_v58 }
 0x727   :  { %v7323_v6 = vpop.f32.mrf.mxu0 }
 0x729   :  { %v7324_v37 = vpop.f32.mrf.mxu0 }
 0x72a   :  { %v7325_v14 = vadd.f32 %v7324_v37, %v7323_v6 }
 0x72b   :  { %v7326_v45 = vpop.f32.mrf.mxu0 }
 0x72d   :  { %v7327_v0 = vpop.f32.mrf.mxu0 }
 0x777   :  { %v6501_v43 = vpop.f32.mrf.mxu1 }
 0x778   :  { %v6502_v21 = vadd.f32 %v7313_v52, %v6501_v43 }
 0x779   :  { %v6503_v9 = vpop.f32.mrf.mxu1 }
 0x77a   :  { %v6523_v5 = vmax.f32 %v6502_v21, 0.0 }
 0x77b   :  { %v6504_v12 = vpop.f32.mrf.mxu1 }
 0x77c   :  { %v6528_v15 = vadd.f32 %v6523_v5, %v9919_v49  ;;  %v6505_v54 = vadd.f32 %v7316_v36, %v6504_v12 }
 0x77d   :  { %v6506_v55 = vpop.f32.mrf.mxu1 }
 0x77e   :  { %6533 = vst [vmem:[#allocation21] sm:$0xff] %v6528_v15  ;;  %v6524_v39 = vmax.f32 %v6505_v54, 0.0 }
 0x77f   :  { %v6509_v31 = vpop.f32.mrf.mxu1 }
 0x780   :  { %v6529_v51 = vadd.f32 %v6524_v39, %v9920_v28  ;;  %v6510_v10 = vadd.f32 %v7319_v47, %v6509_v31 }
 0x781   :  { %v6511_v18 = vpop.f32.mrf.mxu1 }
 0x782   :  { %6534 = vst [vmem:[#allocation21 + $0x8] sm:$0xff] %v6529_v51  ;;  %v6525_v27 = vmax.f32 %v6510_v10, 0.0 }
 0x783   :  { %v6512_v57 = vpop.f32.mrf.mxu1 }
 0x784   :  { %v6530_v62 = vadd.f32 %v6525_v27, %v9921_v59  ;;  %v6513_v4 = vadd.f32 %v7322_v32, %v6512_v57 }
 0x785   :  { %v6514_v42 = vpop.f32.mrf.mxu1 }
 0x786   :  { %6535 = vst [vmem:[#allocation21 + $0x10] sm:$0xff] %v6530_v62  ;;  %v6526_v23 = vmax.f32 %v6513_v4, 0.0 }
 0x787   :  { %v6517_v25 = vpop.f32.mrf.mxu1 }
 0x788   :  { %v6531_v40 = vadd.f32 %v6526_v23, %v9922_v3  ;;  %v6518_v53 = vadd.f32 %v7325_v14, %v6517_v25 }
 0x789   :  { %v6519_v19 = vpop.f32.mrf.mxu1 }
 0x78a   :  { %6536 = vst [vmem:[#allocation21 + $0x18] sm:$0xff] %v6531_v40  ;;  %v6527_v61 = vmax.f32 %v6518_v53, 0.0 }
 0x78b   :  { %v6520_v48 = vpop.f32.mrf.mxu1 }
 0x78c   :  { %v6532_v63 = vadd.f32 %v6527_v61, %v9923_v1 }
 0x78d   :  { %v6521_v44 = vpop.f32.mrf.mxu1 }
 0x78e   :  { %6537 = vst [vmem:[#allocation21 + $0x20] sm:$0xf] %v6532_v63 }
 0x78f   :  { %7869 = shalt.err (!%p7866_p3)
}
 0x790   :  { %6549 = dma.vmem_to_hbm [thread:$0]  %s6544_s18, 640, %s9868_s12, [#allocation5], %s7894_s26, %s7894_s26, %s7895_s27  }
 0x791   :  { %7890 = dma.done.wait [#allocation5], 640  }
 0x792   :  { %7891 = vsyncadd [#allocation5], 4294966656 }
 0x793   :  { %6553 = vsyncpa [#allocation4], 1 }
 0x794   :  { %6554 = vsyncpa [#allocation7], 1 }
 0x795   :  { %6555 = vsyncpa [#allocation10], 1 }
 0x796   :  { %6556 = vsyncpa [#allocation13], 1 }
 0x797   :  { %6557 = vsyncpa [#allocation16], 1 }
 0x798   :  { %6558 = vsyncpa [#allocation19], 1 }
 0x799   :  { %6559 = vsyncpa [#allocation5], 1 }

</bundles_post_ra>
